<compile_context>
chip_gen: v7x
topology: tpu7x:2x2x1
jax: 0.10.0
libtpu: 0.0.40
codegen_flags: <defaults>
</compile_context>

<pallas_src>
import functools

import jax
import jax.numpy as jnp
from jax import lax
from jax.experimental import pallas as pl
from jax.experimental.pallas import tpu as pltpu

# ----------------------------- config ---------------------------------
BATCH = 2
CHANNELS = 4          # config.channels
IMAGE_SIZE = 16       # config.image_size
MESSAGE_LENGTH = 8    # config.message_length
LDPC_EXPANSION = 2
LENC = MESSAGE_LENGTH * LDPC_EXPANSION   # max_encoded_length
HIDDEN = 32
MSG_CH = 4
LATENT = 16

HW = IMAGE_SIZE * IMAGE_SIZE
BHW = BATCH * HW
CHW = CHANNELS * HW

assert (IMAGE_SIZE & (IMAGE_SIZE - 1)) == 0 and (HW & (HW - 1)) == 0
W_SHIFT = IMAGE_SIZE.bit_length() - 1     # log2(W)
HW_SHIFT = HW.bit_length() - 1            # log2(H*W)

# packed per-batch-vector output slab (single lane-dense [B, 128] output)
SMALL_W = 128
OFF_ENC = 0            # ldpc encoded bits      (LENC)
OFF_SOFT = 16          # decoder soft logits    (LENC)
OFF_MSG = 32           # decoded message bits   (MESSAGE_LENGTH)
OFF_MU = 48            # CVAE mu                (LATENT)
OFF_LV = 64            # CVAE logvar            (LATENT)
OFF_DISC = 80          # discriminator pred     (1)

# conv weight slab: taps flattened to K = 9*8 (or 9*HIDDEN), bias in last col
CIN8 = 2 * CHANNELS          # every conv input is padded/fused to 8 channels
K72 = 9 * CIN8
K288 = 9 * HIDDEN
CONV_COLS = K288 + 1
BIAS_COL = K288
CV_ENC1 = 0                  # rows   0: 32  enc_c1   (input = [cover, msg_map])
CV_ST = HIDDEN               # rows  32:128  dec|disc|rec_c1 (input = [stego, cover])
CV_C2 = CV_ST + 3 * HIDDEN   # rows 128:136  enc_c2   (padded to 8 output rows)
CONV_ROWS = CV_C2 + CIN8

# small dense slab (lane width 128); big blocks start at multiples of 8 rows
SM_HEADW = 0                          # 96 rows: dec_fc | disc_fc | rec_mu/lv
SM_HEADB = SM_HEADW + 3 * HIDDEN      # 96
SM_G = 104                            # 8 rows : LDPC generator
SM_WMSG = SM_G + MESSAGE_LENGTH       # 112    : message embedding (16 rows)
SM_WLD = SM_WMSG + LENC               # 128    : soft LDPC decoder (16 rows)
SM_BMSG = SM_WLD + LENC               # 144
SM_BLD = SM_BMSG + 1                  # 145
SMALL_ROWS = SM_BLD + 1               # 146

RD_ROWS = LATENT + 1                  # recovery decoder weight + bias row

# flattened-column offset of each 3x3 tap (kh, kw) relative to the centre
TAP_OFFSETS = tuple((kh - 1) * IMAGE_SIZE + (kw - 1)
                    for kh in range(3) for kw in range(3))


# --------------------------- fused kernel -------------------------------
def _stego_forward_kernel(cover_dup_ref, msgs_ref, eps_ref, convw_ref,
                          smallw_ref, rdw_ref,
                          stego_ref, recov_ref, small_ref):
  f32 = jnp.float32
  cover_dup = cover_dup_ref[...]                        # [8, BHW] (cover twice)

  # ---- iota-built constants (no DMA'd masks / selector inputs) ----
  pcol = lax.broadcasted_iota(jnp.int32, (1, BHW), 1)
  w_idx = jnp.bitwise_and(pcol, IMAGE_SIZE - 1)
  h_idx = jnp.bitwise_and(jnp.right_shift(pcol, W_SHIFT), IMAGE_SIZE - 1)
  masks = []
  for kh in range(3):
    for kw in range(3):
      oh, ow = kh - 1, kw - 1
      ok = ((h_idx + oh >= 0) & (h_idx + oh < IMAGE_SIZE) &
            (w_idx + ow >= 0) & (w_idx + ow < IMAGE_SIZE))
      masks.append(ok.astype(f32))                      # [1, BHW]

  bsel = (jnp.right_shift(lax.broadcasted_iota(jnp.int32, (BATCH, BHW), 1),
                          HW_SHIFT)
          == lax.broadcasted_iota(jnp.int32, (BATCH, BHW), 0)).astype(f32)
  poolT = ((jnp.right_shift(lax.broadcasted_iota(jnp.int32, (BHW, BATCH), 0),
                            HW_SHIFT)
            == lax.broadcasted_iota(jnp.int32, (BHW, BATCH), 1)).astype(f32)
           * (1.0 / float(HW)))                         # [BHW, B]
  topmask = (lax.broadcasted_iota(jnp.int32, (CIN8, 1), 0)
             < CHANNELS).astype(f32)                    # rows 0:4 = 1, 4:8 = 0

  def tapped(x):
    """im2col for a 3x3 'same' conv: [cin, BHW] -> [9*cin, BHW] (stacked K)."""
    blocks = []
    for k in range(9):
      d = TAP_OFFSETS[k]
      if d == 0:
        blocks.append(x)
      else:
        blocks.append(pltpu.roll(x, (-d) % BHW, 1) * masks[k])
    return jnp.concatenate(blocks, axis=0)

  # ---- LDPC encode (parity), emitted directly at its packed lane offset ----
  g_wide = smallw_ref[SM_G:SM_G + MESSAGE_LENGTH, :]    # [8, 128]
  enc_sum = jnp.dot(msgs_ref[...], g_wide, preferred_element_type=f32)
  ldpc_enc_wide = jnp.bitwise_and((enc_sum + 0.5).astype(jnp.int32),
                                  1).astype(f32)        # [B, 128]
  ldpc_enc = ldpc_enc_wide[:, OFF_ENC:OFF_ENC + LENC]   # [B, LENC]

  # ---- message embedding -> per-batch spatial map (channels 4:8) ----
  wmsg8 = smallw_ref[SM_WMSG:SM_WMSG + LENC, 0:CIN8]
  bmsg8 = smallw_ref[SM_BMSG:SM_BMSG + 1, 0:CIN8]
  msg_feat8 = jnp.maximum(
      jnp.dot(ldpc_enc, wmsg8, preferred_element_type=f32) + bmsg8, 0.0)
  msg_map8 = lax.dot_general(msg_feat8, bsel, (((0,), (0,)), ((), ())),
                             preferred_element_type=f32)  # [8, BHW]

  # ---- encoder conv1 on [cover, msg_map] (single stacked-K matmul) ----
  x8 = cover_dup * topmask + msg_map8
  t8 = tapped(x8)                                       # [72, BHW]
  w_enc1 = convw_ref[CV_ENC1:CV_ENC1 + HIDDEN, 0:K72]
  b_enc1 = convw_ref[CV_ENC1:CV_ENC1 + HIDDEN, BIAS_COL:BIAS_COL + 1]
  h1 = jnp.maximum(jnp.dot(w_enc1, t8, preferred_element_type=f32) + b_enc1,
                   0.0)                                  # [32, BHW]

  # ---- encoder conv2 -> residual delta (output rows 4:8 are exactly zero) ----
  th1 = tapped(h1)                                       # [288, BHW]
  w2 = convw_ref[CV_C2:CV_C2 + CIN8, 0:K288]
  b2 = convw_ref[CV_C2:CV_C2 + CIN8, BIAS_COL:BIAS_COL + 1]
  delta8 = jnp.tanh(jnp.dot(w2, th1, preferred_element_type=f32) + b2)

  # rows 0:4 = stego = cover + 0.1*delta ; rows 4:8 = cover (rec conditioning)
  x_sc8 = cover_dup + 0.1 * delta8

  # ---- fused dec_c1 / disc_c1 / rec_c1 conv over [stego, cover] ----
  t_sc = tapped(x_sc8)                                   # [72, BHW]
  w_st = convw_ref[CV_ST:CV_ST + 3 * HIDDEN, 0:K72]
  b_st = convw_ref[CV_ST:CV_ST + 3 * HIDDEN, BIAS_COL:BIAS_COL + 1]
  relu96 = jnp.maximum(jnp.dot(w_st, t_sc, preferred_element_type=f32) + b_st,
                       0.0)                              # [96, BHW]

  # ---- all three global-average-pools as one K=BHW matmul ----
  gaps96 = jnp.dot(relu96, poolT, preferred_element_type=f32)   # [96, B]

  # ---- fused heads (dec_fc | disc_fc | rec_mu | rec_lv), pre-placed lanes ----
  head_w = smallw_ref[SM_HEADW:SM_HEADW + 3 * HIDDEN, :]        # [96, 128]
  head_b = smallw_ref[SM_HEADB:SM_HEADB + 1, :]
  heads = lax.dot_general(gaps96, head_w, (((0,), (0,)), ((), ())),
                          preferred_element_type=f32) + head_b  # [B, 128]

  col = lax.broadcasted_iota(jnp.int32, (BATCH, SMALL_W), 1)
  packed = jnp.where(col == OFF_DISC, jax.nn.sigmoid(heads), heads)
  packed = packed + ldpc_enc_wide

  # ---- soft LDPC decode, masked to its packed lanes ----
  probs = jax.nn.sigmoid(heads[:, OFF_SOFT:OFF_SOFT + LENC])
  wld = smallw_ref[SM_WLD:SM_WLD + LENC, :]
  bld = smallw_ref[SM_BLD:SM_BLD + 1, :]
  msg_mask = ((col >= OFF_MSG) & (col < OFF_MSG + MESSAGE_LENGTH)).astype(f32)
  packed = packed + msg_mask * jax.nn.sigmoid(
      jnp.dot(probs, wld, preferred_element_type=f32) + bld)
  small_ref[...] = packed                 # one unmasked full-width store

  # ---- recovery CVAE decoder ----
  mu = heads[:, OFF_MU:OFF_MU + LATENT]
  logvar = heads[:, OFF_LV:OFF_LV + LATENT]
  z = mu + jnp.exp(0.5 * logvar) * eps_ref[...]
  wrd = rdw_ref[0:LATENT, :]
  brd = rdw_ref[LATENT:LATENT + 1, :]
  recdec = jnp.tanh(jnp.dot(z, wrd, preferred_element_type=f32) + brd)

  # ---- emit stego / recovered batch-major (no post-kernel transpose/add) ----
  for b in range(BATCH):
    row = jnp.concatenate(
        [x_sc8[c:c + 1, b * HW:(b + 1) * HW] for c in range(CHANNELS)], axis=1)
    stego_ref[b:b + 1, :] = row
    recov_ref[b:b + 1, :] = row + 0.1 * recdec[b:b + 1, :]


# --------------------------- parameters ---------------------------------
def init_params(key):
  """Create synthetic sub-network weights and pack them kernel-ready ONCE."""
  ks = iter(jax.random.split(key, 24))

  def dense(cin, cout):
    w = (jax.random.normal(next(ks), (cin, cout), jnp.float32)
         / jnp.sqrt(jnp.float32(cin)))
    return w, jnp.zeros((cout,), jnp.float32)

  def conv(cin, cout):   # per-tap, channels-first: [9, cout, cin]
    w = (jax.random.normal(next(ks), (9, cout, cin), jnp.float32)
         / jnp.sqrt(jnp.float32(9 * cin)))
    return w, jnp.zeros((cout,), jnp.float32)

  ldpc_G = (jax.random.uniform(next(ks), (MESSAGE_LENGTH, LENC))
            < 0.5).astype(jnp.float32)
  ldpc_D_w, ldpc_D_b = dense(LENC, MESSAGE_LENGTH)
  enc_msg_w, enc_msg_b = dense(LENC, MSG_CH)
  enc_c1_w, enc_c1_b = conv(CHANNELS + MSG_CH, HIDDEN)
  enc_c2_w, enc_c2_b = conv(HIDDEN, CHANNELS)
  dec_c1_w, dec_c1_b = conv(CHANNELS, HIDDEN)
  dec_fc_w, dec_fc_b = dense(HIDDEN, LENC)
  rec_c1_w, rec_c1_b = conv(2 * CHANNELS, HIDDEN)   # channels: [attacked, cover]
  rec_mu_w, rec_mu_b = dense(HIDDEN, LATENT)
  rec_lv_w, rec_lv_b = dense(HIDDEN, LATENT)
  rec_dec_w, rec_dec_b = dense(LATENT, CHW)
  disc_c1_w, disc_c1_b = conv(CHANNELS, HIDDEN)
  disc_fc_w, disc_fc_b = dense(HIDDEN, 1)

  def flat9(w):      # [9, cout, cin] -> [cout, 9*cin]   (tap-major K blocks)
    return jnp.transpose(w, (1, 0, 2)).reshape(w.shape[1], 9 * w.shape[2])

  def pad_to8(w):    # [9, cout, 4] -> [9, cout, 8] (unused half gets 0 weights)
    return jnp.concatenate([w, jnp.zeros_like(w)], axis=2)

  wst96 = jnp.concatenate(
      [flat9(pad_to8(dec_c1_w)), flat9(pad_to8(disc_c1_w)), flat9(rec_c1_w)],
      axis=0)                                            # [96, 72]
  w2_8 = jnp.concatenate(
      [flat9(enc_c2_w), jnp.zeros((CIN8 - CHANNELS, K288), jnp.float32)],
      axis=0)                                            # [8, 288]

  conv_slab = jnp.zeros((CONV_ROWS, CONV_COLS), jnp.float32)
  conv_slab = conv_slab.at[CV_ENC1:CV_ENC1 + HIDDEN, 0:K72].set(flat9(enc_c1_w))
  conv_slab = conv_slab.at[CV_ENC1:CV_ENC1 + HIDDEN, BIAS_COL].set(enc_c1_b)
  conv_slab = conv_slab.at[CV_ST:CV_ST + 3 * HIDDEN, 0:K72].set(wst96)
  conv_slab = conv_slab.at[CV_ST:CV_ST + 3 * HIDDEN, BIAS_COL].set(
      jnp.concatenate([dec_c1_b, disc_c1_b, rec_c1_b]))
  conv_slab = conv_slab.at[CV_C2:CV_C2 + CIN8, 0:K288].set(w2_8)
  conv_slab = conv_slab.at[CV_C2:CV_C2 + CHANNELS, BIAS_COL].set(enc_c2_b)

  small_slab = jnp.zeros((SMALL_ROWS, SMALL_W), jnp.float32)
  small_slab = small_slab.at[SM_HEADW:SM_HEADW + HIDDEN,
                             OFF_SOFT:OFF_SOFT + LENC].set(dec_fc_w)
  small_slab = small_slab.at[SM_HEADW + HIDDEN:SM_HEADW + 2 * HIDDEN,
                             OFF_DISC:OFF_DISC + 1].set(disc_fc_w)
  small_slab = small_slab.at[SM_HEADW + 2 * HIDDEN:SM_HEADW + 3 * HIDDEN,
                             OFF_MU:OFF_MU + LATENT].set(rec_mu_w)
  small_slab = small_slab.at[SM_HEADW + 2 * HIDDEN:SM_HEADW + 3 * HIDDEN,
                             OFF_LV:OFF_LV + LATENT].set(rec_lv_w)
  small_slab = small_slab.at[SM_HEADB, OFF_SOFT:OFF_SOFT + LENC].set(dec_fc_b)
  small_slab = small_slab.at[SM_HEADB, OFF_DISC].set(disc_fc_b[0])
  small_slab = small_slab.at[SM_HEADB, OFF_MU:OFF_MU + LATENT].set(rec_mu_b)
  small_slab = small_slab.at[SM_HEADB, OFF_LV:OFF_LV + LATENT].set(rec_lv_b)
  small_slab = small_slab.at[SM_G:SM_G + MESSAGE_LENGTH,
                             OFF_ENC:OFF_ENC + LENC].set(ldpc_G)
  small_slab = small_slab.at[SM_WMSG:SM_WMSG + LENC, MSG_CH:CIN8].set(enc_msg_w)
  small_slab = small_slab.at[SM_BMSG, MSG_CH:CIN8].set(enc_msg_b)
  small_slab = small_slab.at[SM_WLD:SM_WLD + LENC,
                             OFF_MSG:OFF_MSG + MESSAGE_LENGTH].set(ldpc_D_w)
  small_slab = small_slab.at[SM_BLD,
                             OFF_MSG:OFF_MSG + MESSAGE_LENGTH].set(ldpc_D_b)

  rd_slab = jnp.zeros((RD_ROWS, CHW), jnp.float32)
  rd_slab = rd_slab.at[0:LATENT, :].set(rec_dec_w)
  rd_slab = rd_slab.at[LATENT, :].set(rec_dec_b)

  return {"conv_slab": conv_slab, "small_slab": small_slab, "rd_slab": rd_slab}


# ----------------------------- forward ----------------------------------
def forward(params, cover_images, messages, eps, attack_type="none",
            attack_strength=0.5, training=True):
  """cover_images: [B, C, H, W]; messages: [B, L]; eps: [B, LATENT]."""
  B, C, H, W = cover_images.shape
  f32 = jnp.float32

  # input formatting only (all weight repacking lives in init_params)
  cover_cf = jnp.transpose(cover_images, (1, 0, 2, 3)).reshape(C, B * H * W)
  cover_cf = cover_cf.astype(f32)
  cover_dup = jnp.concatenate([cover_cf, cover_cf], axis=0)      # [8, BHW]
  msgs = messages.astype(f32)
  eps_in = eps.astype(f32) if training else jnp.zeros((B, LATENT), f32)

  out_shapes = (
      jax.ShapeDtypeStruct((B, C * H * W), f32),   # stego, batch-major
      jax.ShapeDtypeStruct((B, C * H * W), f32),   # recovered, batch-major
      jax.ShapeDtypeStruct((B, SMALL_W), f32),     # packed per-batch vectors
  )
  stego_bm, recov_bm, small = pl.pallas_call(
      _stego_forward_kernel, out_shape=out_shapes,
  )(cover_dup, msgs, eps_in,
    params["conv_slab"], params["small_slab"], params["rd_slab"])

  stego = stego_bm.reshape(B, C, H, W)
  recovered = recov_bm.reshape(B, C, H, W)
  # TODO(synk): only attack_type='none' (identity) is implemented.
  attacked = stego

  return {
      "stego_images": stego,
      "attacked_images": attacked,
      "ldpc_encoded_messages": small[:, OFF_ENC:OFF_ENC + LENC],
      "decoded_ldpc_soft": small[:, OFF_SOFT:OFF_SOFT + LENC],
      "decoded_messages": small[:, OFF_MSG:OFF_MSG + MESSAGE_LENGTH],
      "recovered_images": recovered,
      "mu": small[:, OFF_MU:OFF_MU + LATENT],
      "logvar": small[:, OFF_LV:OFF_LV + LATENT],
      "discriminator_pred": small[:, OFF_DISC:OFF_DISC + 1] if training else None,
  }


# ------------------------------ main -------------------------------------
if __name__ == "__main__":
  key = jax.random.PRNGKey(0)
  k_param, k_cover, k_msg, k_eps = jax.random.split(key, 4)

  params = init_params(k_param)
  cover = jax.random.normal(
      k_cover, (BATCH, CHANNELS, IMAGE_SIZE, IMAGE_SIZE), jnp.float32)
  messages = jax.random.bernoulli(
      k_msg, 0.5, (BATCH, MESSAGE_LENGTH)).astype(jnp.float32)
  eps = jax.random.normal(k_eps, (BATCH, LATENT), jnp.float32)

  fwd = jax.jit(functools.partial(forward, attack_type="none",
                                  attack_strength=0.5, training=True))
  outputs = fwd(params, cover, messages, eps)
  jax.block_until_ready(outputs)

  # sanity on output shapes (mirror of the PyTorch contract)
  assert outputs["stego_images"].shape == cover.shape
  assert outputs["attacked_images"].shape == cover.shape
  assert outputs["recovered_images"].shape == cover.shape
  assert outputs["ldpc_encoded_messages"].shape == (BATCH, LENC)
  assert outputs["decoded_ldpc_soft"].shape == (BATCH, LENC)
  assert outputs["decoded_messages"].shape == (BATCH, MESSAGE_LENGTH)
  assert outputs["mu"].shape == (BATCH, LATENT)
  assert outputs["logvar"].shape == (BATCH, LATENT)
  assert outputs["discriminator_pred"].shape == (BATCH, 1)
  assert bool(jnp.isfinite(outputs["stego_images"]).all())
  assert bool(jnp.isfinite(outputs["recovered_images"]).all())
  assert bool(jnp.isfinite(outputs["decoded_messages"]).all())
  assert bool(jnp.isfinite(outputs["ldpc_encoded_messages"]).all())

  print("KERNEL_OK")
</pallas_src>

<mosaic_0001>
module attributes {stable_mosaic.version = 11 : i64} {
  func.func @_stego_forward_kernel(%arg0: memref<8x512xf32, #tpu.memory_space<vmem>>, %arg1: memref<2x8xf32, #tpu.memory_space<vmem>>, %arg2: memref<2x16xf32, #tpu.memory_space<vmem>>, %arg3: memref<136x289xf32, #tpu.memory_space<vmem>>, %arg4: memref<146x128xf32, #tpu.memory_space<vmem>>, %arg5: memref<17x1024xf32, #tpu.memory_space<vmem>>, %arg6: memref<2x1024xf32, #tpu.memory_space<vmem>>, %arg7: memref<2x1024xf32, #tpu.memory_space<vmem>>, %arg8: memref<2x128xf32, #tpu.memory_space<vmem>>) attributes {dimension_semantics = [], scalar_prefetch = 0 : i64, scratch_operands = 0 : i64, tpu.core_type = #tpu.core_type<tc>} {
    %c0 = arith.constant 0 : index
    %c0_0 = arith.constant 0 : index
    %0 = vector.load %arg0[%c0, %c0_0] : memref<8x512xf32, #tpu.memory_space<vmem>>, vector<8x512xf32>
    %1 = tpu.iota {dimensions = array<i32: 1>} : vector<1x512xi32>
    %c15_i32 = arith.constant 15 : i32
    %2 = vector.broadcast %c15_i32 : i32 to vector<1x512xi32>
    %3 = arith.andi %1, %2 : vector<1x512xi32>
    %c4_i32 = arith.constant 4 : i32
    %4 = vector.broadcast %c4_i32 : i32 to vector<1x512xi32>
    %5 = arith.shrsi %1, %4 : vector<1x512xi32>
    %c15_i32_1 = arith.constant 15 : i32
    %6 = vector.broadcast %c15_i32_1 : i32 to vector<1x512xi32>
    %7 = arith.andi %5, %6 : vector<1x512xi32>
    %c-1_i32 = arith.constant -1 : i32
    %8 = vector.broadcast %c-1_i32 : i32 to vector<1x512xi32>
    %9 = arith.addi %7, %8 : vector<1x512xi32>
    %c0_i32 = arith.constant 0 : i32
    %10 = vector.broadcast %c0_i32 : i32 to vector<1x512xi32>
    %11 = arith.cmpi sge, %9, %10 : vector<1x512xi32>
    %c-1_i32_2 = arith.constant -1 : i32
    %12 = vector.broadcast %c-1_i32_2 : i32 to vector<1x512xi32>
    %13 = arith.addi %7, %12 : vector<1x512xi32>
    %c16_i32 = arith.constant 16 : i32
    %14 = vector.broadcast %c16_i32 : i32 to vector<1x512xi32>
    %15 = arith.cmpi slt, %13, %14 : vector<1x512xi32>
    %16 = arith.andi %11, %15 : vector<1x512xi1>
    %c-1_i32_3 = arith.constant -1 : i32
    %17 = vector.broadcast %c-1_i32_3 : i32 to vector<1x512xi32>
    %18 = arith.addi %3, %17 : vector<1x512xi32>
    %c0_i32_4 = arith.constant 0 : i32
    %19 = vector.broadcast %c0_i32_4 : i32 to vector<1x512xi32>
    %20 = arith.cmpi sge, %18, %19 : vector<1x512xi32>
    %21 = arith.andi %16, %20 : vector<1x512xi1>
    %c-1_i32_5 = arith.constant -1 : i32
    %22 = vector.broadcast %c-1_i32_5 : i32 to vector<1x512xi32>
    %23 = arith.addi %3, %22 : vector<1x512xi32>
    %c16_i32_6 = arith.constant 16 : i32
    %24 = vector.broadcast %c16_i32_6 : i32 to vector<1x512xi32>
    %25 = arith.cmpi slt, %23, %24 : vector<1x512xi32>
    %26 = arith.andi %21, %25 : vector<1x512xi1>
    %27 = arith.extui %26 : vector<1x512xi1> to vector<1x512xi32>
    %28 = arith.sitofp %27 : vector<1x512xi32> to vector<1x512xf32>
    %c-1_i32_7 = arith.constant -1 : i32
    %29 = vector.broadcast %c-1_i32_7 : i32 to vector<1x512xi32>
    %30 = arith.addi %7, %29 : vector<1x512xi32>
    %c0_i32_8 = arith.constant 0 : i32
    %31 = vector.broadcast %c0_i32_8 : i32 to vector<1x512xi32>
    %32 = arith.cmpi sge, %30, %31 : vector<1x512xi32>
    %c-1_i32_9 = arith.constant -1 : i32
    %33 = vector.broadcast %c-1_i32_9 : i32 to vector<1x512xi32>
    %34 = arith.addi %7, %33 : vector<1x512xi32>
    %c16_i32_10 = arith.constant 16 : i32
    %35 = vector.broadcast %c16_i32_10 : i32 to vector<1x512xi32>
    %36 = arith.cmpi slt, %34, %35 : vector<1x512xi32>
    %37 = arith.andi %32, %36 : vector<1x512xi1>
    %c0_i32_11 = arith.constant 0 : i32
    %38 = vector.broadcast %c0_i32_11 : i32 to vector<1x512xi32>
    %39 = arith.addi %3, %38 : vector<1x512xi32>
    %c0_i32_12 = arith.constant 0 : i32
    %40 = vector.broadcast %c0_i32_12 : i32 to vector<1x512xi32>
    %41 = arith.cmpi sge, %39, %40 : vector<1x512xi32>
    %42 = arith.andi %37, %41 : vector<1x512xi1>
    %c0_i32_13 = arith.constant 0 : i32
    %43 = vector.broadcast %c0_i32_13 : i32 to vector<1x512xi32>
    %44 = arith.addi %3, %43 : vector<1x512xi32>
    %c16_i32_14 = arith.constant 16 : i32
    %45 = vector.broadcast %c16_i32_14 : i32 to vector<1x512xi32>
    %46 = arith.cmpi slt, %44, %45 : vector<1x512xi32>
    %47 = arith.andi %42, %46 : vector<1x512xi1>
    %48 = arith.extui %47 : vector<1x512xi1> to vector<1x512xi32>
    %49 = arith.sitofp %48 : vector<1x512xi32> to vector<1x512xf32>
    %c-1_i32_15 = arith.constant -1 : i32
    %50 = vector.broadcast %c-1_i32_15 : i32 to vector<1x512xi32>
    %51 = arith.addi %7, %50 : vector<1x512xi32>
    %c0_i32_16 = arith.constant 0 : i32
    %52 = vector.broadcast %c0_i32_16 : i32 to vector<1x512xi32>
    %53 = arith.cmpi sge, %51, %52 : vector<1x512xi32>
    %c-1_i32_17 = arith.constant -1 : i32
    %54 = vector.broadcast %c-1_i32_17 : i32 to vector<1x512xi32>
    %55 = arith.addi %7, %54 : vector<1x512xi32>
    %c16_i32_18 = arith.constant 16 : i32
    %56 = vector.broadcast %c16_i32_18 : i32 to vector<1x512xi32>
    %57 = arith.cmpi slt, %55, %56 : vector<1x512xi32>
    %58 = arith.andi %53, %57 : vector<1x512xi1>
    %c1_i32 = arith.constant 1 : i32
    %59 = vector.broadcast %c1_i32 : i32 to vector<1x512xi32>
    %60 = arith.addi %3, %59 : vector<1x512xi32>
    %c0_i32_19 = arith.constant 0 : i32
    %61 = vector.broadcast %c0_i32_19 : i32 to vector<1x512xi32>
    %62 = arith.cmpi sge, %60, %61 : vector<1x512xi32>
    %63 = arith.andi %58, %62 : vector<1x512xi1>
    %c1_i32_20 = arith.constant 1 : i32
    %64 = vector.broadcast %c1_i32_20 : i32 to vector<1x512xi32>
    %65 = arith.addi %3, %64 : vector<1x512xi32>
    %c16_i32_21 = arith.constant 16 : i32
    %66 = vector.broadcast %c16_i32_21 : i32 to vector<1x512xi32>
    %67 = arith.cmpi slt, %65, %66 : vector<1x512xi32>
    %68 = arith.andi %63, %67 : vector<1x512xi1>
    %69 = arith.extui %68 : vector<1x512xi1> to vector<1x512xi32>
    %70 = arith.sitofp %69 : vector<1x512xi32> to vector<1x512xf32>
    %c0_i32_22 = arith.constant 0 : i32
    %71 = vector.broadcast %c0_i32_22 : i32 to vector<1x512xi32>
    %72 = arith.addi %7, %71 : vector<1x512xi32>
    %c0_i32_23 = arith.constant 0 : i32
    %73 = vector.broadcast %c0_i32_23 : i32 to vector<1x512xi32>
    %74 = arith.cmpi sge, %72, %73 : vector<1x512xi32>
    %c0_i32_24 = arith.constant 0 : i32
    %75 = vector.broadcast %c0_i32_24 : i32 to vector<1x512xi32>
    %76 = arith.addi %7, %75 : vector<1x512xi32>
    %c16_i32_25 = arith.constant 16 : i32
    %77 = vector.broadcast %c16_i32_25 : i32 to vector<1x512xi32>
    %78 = arith.cmpi slt, %76, %77 : vector<1x512xi32>
    %79 = arith.andi %74, %78 : vector<1x512xi1>
    %c-1_i32_26 = arith.constant -1 : i32
    %80 = vector.broadcast %c-1_i32_26 : i32 to vector<1x512xi32>
    %81 = arith.addi %3, %80 : vector<1x512xi32>
    %c0_i32_27 = arith.constant 0 : i32
    %82 = vector.broadcast %c0_i32_27 : i32 to vector<1x512xi32>
    %83 = arith.cmpi sge, %81, %82 : vector<1x512xi32>
    %84 = arith.andi %79, %83 : vector<1x512xi1>
    %c-1_i32_28 = arith.constant -1 : i32
    %85 = vector.broadcast %c-1_i32_28 : i32 to vector<1x512xi32>
    %86 = arith.addi %3, %85 : vector<1x512xi32>
    %c16_i32_29 = arith.constant 16 : i32
    %87 = vector.broadcast %c16_i32_29 : i32 to vector<1x512xi32>
    %88 = arith.cmpi slt, %86, %87 : vector<1x512xi32>
    %89 = arith.andi %84, %88 : vector<1x512xi1>
    %90 = arith.extui %89 : vector<1x512xi1> to vector<1x512xi32>
    %91 = arith.sitofp %90 : vector<1x512xi32> to vector<1x512xf32>
    %c0_i32_30 = arith.constant 0 : i32
    %92 = vector.broadcast %c0_i32_30 : i32 to vector<1x512xi32>
    %93 = arith.addi %7, %92 : vector<1x512xi32>
    %c0_i32_31 = arith.constant 0 : i32
    %94 = vector.broadcast %c0_i32_31 : i32 to vector<1x512xi32>
    %95 = arith.cmpi sge, %93, %94 : vector<1x512xi32>
    %c0_i32_32 = arith.constant 0 : i32
    %96 = vector.broadcast %c0_i32_32 : i32 to vector<1x512xi32>
    %97 = arith.addi %7, %96 : vector<1x512xi32>
    %c16_i32_33 = arith.constant 16 : i32
    %98 = vector.broadcast %c16_i32_33 : i32 to vector<1x512xi32>
    %99 = arith.cmpi slt, %97, %98 : vector<1x512xi32>
    %100 = arith.andi %95, %99 : vector<1x512xi1>
    %c1_i32_34 = arith.constant 1 : i32
    %101 = vector.broadcast %c1_i32_34 : i32 to vector<1x512xi32>
    %102 = arith.addi %3, %101 : vector<1x512xi32>
    %c0_i32_35 = arith.constant 0 : i32
    %103 = vector.broadcast %c0_i32_35 : i32 to vector<1x512xi32>
    %104 = arith.cmpi sge, %102, %103 : vector<1x512xi32>
    %105 = arith.andi %100, %104 : vector<1x512xi1>
    %c1_i32_36 = arith.constant 1 : i32
    %106 = vector.broadcast %c1_i32_36 : i32 to vector<1x512xi32>
    %107 = arith.addi %3, %106 : vector<1x512xi32>
    %c16_i32_37 = arith.constant 16 : i32
    %108 = vector.broadcast %c16_i32_37 : i32 to vector<1x512xi32>
    %109 = arith.cmpi slt, %107, %108 : vector<1x512xi32>
    %110 = arith.andi %105, %109 : vector<1x512xi1>
    %111 = arith.extui %110 : vector<1x512xi1> to vector<1x512xi32>
    %112 = arith.sitofp %111 : vector<1x512xi32> to vector<1x512xf32>
    %c1_i32_38 = arith.constant 1 : i32
    %113 = vector.broadcast %c1_i32_38 : i32 to vector<1x512xi32>
    %114 = arith.addi %7, %113 : vector<1x512xi32>
    %c0_i32_39 = arith.constant 0 : i32
    %115 = vector.broadcast %c0_i32_39 : i32 to vector<1x512xi32>
    %116 = arith.cmpi sge, %114, %115 : vector<1x512xi32>
    %c1_i32_40 = arith.constant 1 : i32
    %117 = vector.broadcast %c1_i32_40 : i32 to vector<1x512xi32>
    %118 = arith.addi %7, %117 : vector<1x512xi32>
    %c16_i32_41 = arith.constant 16 : i32
    %119 = vector.broadcast %c16_i32_41 : i32 to vector<1x512xi32>
    %120 = arith.cmpi slt, %118, %119 : vector<1x512xi32>
    %121 = arith.andi %116, %120 : vector<1x512xi1>
    %c-1_i32_42 = arith.constant -1 : i32
    %122 = vector.broadcast %c-1_i32_42 : i32 to vector<1x512xi32>
    %123 = arith.addi %3, %122 : vector<1x512xi32>
    %c0_i32_43 = arith.constant 0 : i32
    %124 = vector.broadcast %c0_i32_43 : i32 to vector<1x512xi32>
    %125 = arith.cmpi sge, %123, %124 : vector<1x512xi32>
    %126 = arith.andi %121, %125 : vector<1x512xi1>
    %c-1_i32_44 = arith.constant -1 : i32
    %127 = vector.broadcast %c-1_i32_44 : i32 to vector<1x512xi32>
    %128 = arith.addi %3, %127 : vector<1x512xi32>
    %c16_i32_45 = arith.constant 16 : i32
    %129 = vector.broadcast %c16_i32_45 : i32 to vector<1x512xi32>
    %130 = arith.cmpi slt, %128, %129 : vector<1x512xi32>
    %131 = arith.andi %126, %130 : vector<1x512xi1>
    %132 = arith.extui %131 : vector<1x512xi1> to vector<1x512xi32>
    %133 = arith.sitofp %132 : vector<1x512xi32> to vector<1x512xf32>
    %c1_i32_46 = arith.constant 1 : i32
    %134 = vector.broadcast %c1_i32_46 : i32 to vector<1x512xi32>
    %135 = arith.addi %7, %134 : vector<1x512xi32>
    %c0_i32_47 = arith.constant 0 : i32
    %136 = vector.broadcast %c0_i32_47 : i32 to vector<1x512xi32>
    %137 = arith.cmpi sge, %135, %136 : vector<1x512xi32>
    %c1_i32_48 = arith.constant 1 : i32
    %138 = vector.broadcast %c1_i32_48 : i32 to vector<1x512xi32>
    %139 = arith.addi %7, %138 : vector<1x512xi32>
    %c16_i32_49 = arith.constant 16 : i32
    %140 = vector.broadcast %c16_i32_49 : i32 to vector<1x512xi32>
    %141 = arith.cmpi slt, %139, %140 : vector<1x512xi32>
    %142 = arith.andi %137, %141 : vector<1x512xi1>
    %c0_i32_50 = arith.constant 0 : i32
    %143 = vector.broadcast %c0_i32_50 : i32 to vector<1x512xi32>
    %144 = arith.addi %3, %143 : vector<1x512xi32>
    %c0_i32_51 = arith.constant 0 : i32
    %145 = vector.broadcast %c0_i32_51 : i32 to vector<1x512xi32>
    %146 = arith.cmpi sge, %144, %145 : vector<1x512xi32>
    %147 = arith.andi %142, %146 : vector<1x512xi1>
    %c0_i32_52 = arith.constant 0 : i32
    %148 = vector.broadcast %c0_i32_52 : i32 to vector<1x512xi32>
    %149 = arith.addi %3, %148 : vector<1x512xi32>
    %c16_i32_53 = arith.constant 16 : i32
    %150 = vector.broadcast %c16_i32_53 : i32 to vector<1x512xi32>
    %151 = arith.cmpi slt, %149, %150 : vector<1x512xi32>
    %152 = arith.andi %147, %151 : vector<1x512xi1>
    %153 = arith.extui %152 : vector<1x512xi1> to vector<1x512xi32>
    %154 = arith.sitofp %153 : vector<1x512xi32> to vector<1x512xf32>
    %c1_i32_54 = arith.constant 1 : i32
    %155 = vector.broadcast %c1_i32_54 : i32 to vector<1x512xi32>
    %156 = arith.addi %7, %155 : vector<1x512xi32>
    %c0_i32_55 = arith.constant 0 : i32
    %157 = vector.broadcast %c0_i32_55 : i32 to vector<1x512xi32>
    %158 = arith.cmpi sge, %156, %157 : vector<1x512xi32>
    %c1_i32_56 = arith.constant 1 : i32
    %159 = vector.broadcast %c1_i32_56 : i32 to vector<1x512xi32>
    %160 = arith.addi %7, %159 : vector<1x512xi32>
    %c16_i32_57 = arith.constant 16 : i32
    %161 = vector.broadcast %c16_i32_57 : i32 to vector<1x512xi32>
    %162 = arith.cmpi slt, %160, %161 : vector<1x512xi32>
    %163 = arith.andi %158, %162 : vector<1x512xi1>
    %c1_i32_58 = arith.constant 1 : i32
    %164 = vector.broadcast %c1_i32_58 : i32 to vector<1x512xi32>
    %165 = arith.addi %3, %164 : vector<1x512xi32>
    %c0_i32_59 = arith.constant 0 : i32
    %166 = vector.broadcast %c0_i32_59 : i32 to vector<1x512xi32>
    %167 = arith.cmpi sge, %165, %166 : vector<1x512xi32>
    %168 = arith.andi %163, %167 : vector<1x512xi1>
    %c1_i32_60 = arith.constant 1 : i32
    %169 = vector.broadcast %c1_i32_60 : i32 to vector<1x512xi32>
    %170 = arith.addi %3, %169 : vector<1x512xi32>
    %c16_i32_61 = arith.constant 16 : i32
    %171 = vector.broadcast %c16_i32_61 : i32 to vector<1x512xi32>
    %172 = arith.cmpi slt, %170, %171 : vector<1x512xi32>
    %173 = arith.andi %168, %172 : vector<1x512xi1>
    %174 = arith.extui %173 : vector<1x512xi1> to vector<1x512xi32>
    %175 = arith.sitofp %174 : vector<1x512xi32> to vector<1x512xf32>
    %176 = tpu.iota {dimensions = array<i32: 1>} : vector<2x512xi32>
    %c8_i32 = arith.constant 8 : i32
    %177 = vector.broadcast %c8_i32 : i32 to vector<2x512xi32>
    %178 = arith.shrsi %176, %177 : vector<2x512xi32>
    %179 = tpu.iota {dimensions = array<i32: 0>} : vector<2x512xi32>
    %180 = arith.cmpi eq, %178, %179 : vector<2x512xi32>
    %181 = arith.extui %180 : vector<2x512xi1> to vector<2x512xi32>
    %182 = arith.sitofp %181 : vector<2x512xi32> to vector<2x512xf32>
    %183 = tpu.iota {dimensions = array<i32: 0>} : vector<512x2xi32>
    %c8_i32_62 = arith.constant 8 : i32
    %184 = vector.broadcast %c8_i32_62 : i32 to vector<512x2xi32>
    %185 = arith.shrsi %183, %184 : vector<512x2xi32>
    %186 = tpu.iota {dimensions = array<i32: 1>} : vector<512x2xi32>
    %187 = arith.cmpi eq, %185, %186 : vector<512x2xi32>
    %188 = arith.extui %187 : vector<512x2xi1> to vector<512x2xi32>
    %189 = arith.sitofp %188 : vector<512x2xi32> to vector<512x2xf32>
    %cst = arith.constant 3.906250e-03 : f32
    %190 = vector.broadcast %cst : f32 to vector<512x2xf32>
    %191 = arith.mulf %189, %190 : vector<512x2xf32>
    %192 = tpu.iota {dimensions = array<i32: 0>} : vector<8x1xi32>
    %c4_i32_63 = arith.constant 4 : i32
    %193 = vector.broadcast %c4_i32_63 : i32 to vector<8x1xi32>
    %194 = arith.cmpi slt, %192, %193 : vector<8x1xi32>
    %195 = arith.extui %194 : vector<8x1xi1> to vector<8x1xi32>
    %196 = arith.sitofp %195 : vector<8x1xi32> to vector<8x1xf32>
    %c104 = arith.constant 104 : index
    %c0_64 = arith.constant 0 : index
    %197 = vector.load %arg4[%c104, %c0_64] : memref<146x128xf32, #tpu.memory_space<vmem>>, vector<8x128xf32>
    %c0_65 = arith.constant 0 : index
    %c0_66 = arith.constant 0 : index
    %198 = vector.load %arg1[%c0_65, %c0_66] : memref<2x8xf32, #tpu.memory_space<vmem>>, vector<2x8xf32>
    %cst_67 = arith.constant dense<0.000000e+00> : vector<2x128xf32>
    %199 = tpu.matmul %198, %197, %cst_67 {dimension_numbers = #tpu.dot_dimension_numbers<[1], [0], [0], [1], [0, 0, 1, 1], [], []>} : vector<2x8xf32>, vector<8x128xf32>, vector<2x128xf32> -> vector<2x128xf32>
    %cst_68 = arith.constant 5.000000e-01 : f32
    %200 = vector.broadcast %cst_68 : f32 to vector<2x128xf32>
    %201 = arith.addf %199, %200 : vector<2x128xf32>
    %202 = arith.fptosi %201 : vector<2x128xf32> to vector<2x128xi32>
    %c1_i32_69 = arith.constant 1 : i32
    %203 = vector.broadcast %c1_i32_69 : i32 to vector<2x128xi32>
    %204 = arith.andi %202, %203 : vector<2x128xi32>
    %205 = arith.sitofp %204 : vector<2x128xi32> to vector<2x128xf32>
    %206 = vector.extract_strided_slice %205 {offsets = [0, 0], sizes = [2, 16], strides = [1, 1]} : vector<2x128xf32> to vector<2x16xf32>
    %c112 = arith.constant 112 : index
    %c0_70 = arith.constant 0 : index
    %207 = vector.load %arg4[%c112, %c0_70] : memref<146x128xf32, #tpu.memory_space<vmem>>, vector<16x8xf32>
    %c144 = arith.constant 144 : index
    %c0_71 = arith.constant 0 : index
    %208 = vector.load %arg4[%c144, %c0_71] : memref<146x128xf32, #tpu.memory_space<vmem>>, vector<1x8xf32>
    %cst_72 = arith.constant dense<0.000000e+00> : vector<2x8xf32>
    %209 = tpu.matmul %206, %207, %cst_72 {dimension_numbers = #tpu.dot_dimension_numbers<[1], [0], [0], [1], [0, 0, 1, 1], [], []>} : vector<2x16xf32>, vector<16x8xf32>, vector<2x8xf32> -> vector<2x8xf32>
    %210 = vector.broadcast %208 : vector<1x8xf32> to vector<2x8xf32>
    %211 = arith.addf %209, %210 : vector<2x8xf32>
    %cst_73 = arith.constant 0.000000e+00 : f32
    %212 = vector.broadcast %cst_73 : f32 to vector<2x8xf32>
    %213 = arith.maximumf %211, %212 : vector<2x8xf32>
    %cst_74 = arith.constant dense<0.000000e+00> : vector<8x512xf32>
    %214 = tpu.matmul %213, %182, %cst_74 {dimension_numbers = #tpu.dot_dimension_numbers<[0], [0], [1], [1], [0, 1, 1, 1], [], []>} : vector<2x8xf32>, vector<2x512xf32>, vector<8x512xf32> -> vector<8x512xf32>
    %215 = vector.broadcast %196 : vector<8x1xf32> to vector<8x512xf32>
    %216 = arith.mulf %0, %215 : vector<8x512xf32>
    %217 = arith.addf %216, %214 : vector<8x512xf32>
    %c17_i32 = arith.constant 17 : i32
    %218 = tpu.dynamic_rotate %217 by %c17_i32 dim 1 : vector<8x512xf32>, i32 -> vector<8x512xf32>
    %219 = vector.broadcast %28 : vector<1x512xf32> to vector<8x512xf32>
    %220 = arith.mulf %218, %219 : vector<8x512xf32>
    %c16_i32_75 = arith.constant 16 : i32
    %221 = tpu.dynamic_rotate %217 by %c16_i32_75 dim 1 : vector<8x512xf32>, i32 -> vector<8x512xf32>
    %222 = vector.broadcast %49 : vector<1x512xf32> to vector<8x512xf32>
    %223 = arith.mulf %221, %222 : vector<8x512xf32>
    %c15_i32_76 = arith.constant 15 : i32
    %224 = tpu.dynamic_rotate %217 by %c15_i32_76 dim 1 : vector<8x512xf32>, i32 -> vector<8x512xf32>
    %225 = vector.broadcast %70 : vector<1x512xf32> to vector<8x512xf32>
    %226 = arith.mulf %224, %225 : vector<8x512xf32>
    %c1_i32_77 = arith.constant 1 : i32
    %227 = tpu.dynamic_rotate %217 by %c1_i32_77 dim 1 : vector<8x512xf32>, i32 -> vector<8x512xf32>
    %228 = vector.broadcast %91 : vector<1x512xf32> to vector<8x512xf32>
    %229 = arith.mulf %227, %228 : vector<8x512xf32>
    %c511_i32 = arith.constant 511 : i32
    %230 = tpu.dynamic_rotate %217 by %c511_i32 dim 1 : vector<8x512xf32>, i32 -> vector<8x512xf32>
    %231 = vector.broadcast %112 : vector<1x512xf32> to vector<8x512xf32>
    %232 = arith.mulf %230, %231 : vector<8x512xf32>
    %c497_i32 = arith.constant 497 : i32
    %233 = tpu.dynamic_rotate %217 by %c497_i32 dim 1 : vector<8x512xf32>, i32 -> vector<8x512xf32>
    %234 = vector.broadcast %133 : vector<1x512xf32> to vector<8x512xf32>
    %235 = arith.mulf %233, %234 : vector<8x512xf32>
    %c496_i32 = arith.constant 496 : i32
    %236 = tpu.dynamic_rotate %217 by %c496_i32 dim 1 : vector<8x512xf32>, i32 -> vector<8x512xf32>
    %237 = vector.broadcast %154 : vector<1x512xf32> to vector<8x512xf32>
    %238 = arith.mulf %236, %237 : vector<8x512xf32>
    %c495_i32 = arith.constant 495 : i32
    %239 = tpu.dynamic_rotate %217 by %c495_i32 dim 1 : vector<8x512xf32>, i32 -> vector<8x512xf32>
    %240 = vector.broadcast %175 : vector<1x512xf32> to vector<8x512xf32>
    %241 = arith.mulf %239, %240 : vector<8x512xf32>
    %242 = tpu.concatenate %220, %223, %226, %229, %217, %232, %235, %238, %241 in 0 : vector<8x512xf32>, vector<8x512xf32>, vector<8x512xf32>, vector<8x512xf32>, vector<8x512xf32>, vector<8x512xf32>, vector<8x512xf32>, vector<8x512xf32>, vector<8x512xf32> -> vector<72x512xf32>
    %c0_78 = arith.constant 0 : index
    %c0_79 = arith.constant 0 : index
    %243 = vector.load %arg3[%c0_78, %c0_79] : memref<136x289xf32, #tpu.memory_space<vmem>>, vector<32x72xf32>
    %c0_80 = arith.constant 0 : index
    %c288 = arith.constant 288 : index
    %244 = vector.load %arg3[%c0_80, %c288] : memref<136x289xf32, #tpu.memory_space<vmem>>, vector<32x1xf32>
    %cst_81 = arith.constant dense<0.000000e+00> : vector<32x512xf32>
    %245 = tpu.matmul %243, %242, %cst_81 {dimension_numbers = #tpu.dot_dimension_numbers<[1], [0], [0], [1], [0, 0, 1, 1], [], []>} : vector<32x72xf32>, vector<72x512xf32>, vector<32x512xf32> -> vector<32x512xf32>
    %246 = vector.broadcast %244 : vector<32x1xf32> to vector<32x512xf32>
    %247 = arith.addf %245, %246 : vector<32x512xf32>
    %cst_82 = arith.constant 0.000000e+00 : f32
    %248 = vector.broadcast %cst_82 : f32 to vector<32x512xf32>
    %249 = arith.maximumf %247, %248 : vector<32x512xf32>
    %c17_i32_83 = arith.constant 17 : i32
    %250 = tpu.dynamic_rotate %249 by %c17_i32_83 dim 1 : vector<32x512xf32>, i32 -> vector<32x512xf32>
    %251 = vector.broadcast %28 : vector<1x512xf32> to vector<32x512xf32>
    %252 = arith.mulf %250, %251 : vector<32x512xf32>
    %c16_i32_84 = arith.constant 16 : i32
    %253 = tpu.dynamic_rotate %249 by %c16_i32_84 dim 1 : vector<32x512xf32>, i32 -> vector<32x512xf32>
    %254 = vector.broadcast %49 : vector<1x512xf32> to vector<32x512xf32>
    %255 = arith.mulf %253, %254 : vector<32x512xf32>
    %c15_i32_85 = arith.constant 15 : i32
    %256 = tpu.dynamic_rotate %249 by %c15_i32_85 dim 1 : vector<32x512xf32>, i32 -> vector<32x512xf32>
    %257 = vector.broadcast %70 : vector<1x512xf32> to vector<32x512xf32>
    %258 = arith.mulf %256, %257 : vector<32x512xf32>
    %c1_i32_86 = arith.constant 1 : i32
    %259 = tpu.dynamic_rotate %249 by %c1_i32_86 dim 1 : vector<32x512xf32>, i32 -> vector<32x512xf32>
    %260 = vector.broadcast %91 : vector<1x512xf32> to vector<32x512xf32>
    %261 = arith.mulf %259, %260 : vector<32x512xf32>
    %c511_i32_87 = arith.constant 511 : i32
    %262 = tpu.dynamic_rotate %249 by %c511_i32_87 dim 1 : vector<32x512xf32>, i32 -> vector<32x512xf32>
    %263 = vector.broadcast %112 : vector<1x512xf32> to vector<32x512xf32>
    %264 = arith.mulf %262, %263 : vector<32x512xf32>
    %c497_i32_88 = arith.constant 497 : i32
    %265 = tpu.dynamic_rotate %249 by %c497_i32_88 dim 1 : vector<32x512xf32>, i32 -> vector<32x512xf32>
    %266 = vector.broadcast %133 : vector<1x512xf32> to vector<32x512xf32>
    %267 = arith.mulf %265, %266 : vector<32x512xf32>
    %c496_i32_89 = arith.constant 496 : i32
    %268 = tpu.dynamic_rotate %249 by %c496_i32_89 dim 1 : vector<32x512xf32>, i32 -> vector<32x512xf32>
    %269 = vector.broadcast %154 : vector<1x512xf32> to vector<32x512xf32>
    %270 = arith.mulf %268, %269 : vector<32x512xf32>
    %c495_i32_90 = arith.constant 495 : i32
    %271 = tpu.dynamic_rotate %249 by %c495_i32_90 dim 1 : vector<32x512xf32>, i32 -> vector<32x512xf32>
    %272 = vector.broadcast %175 : vector<1x512xf32> to vector<32x512xf32>
    %273 = arith.mulf %271, %272 : vector<32x512xf32>
    %274 = tpu.concatenate %252, %255, %258, %261, %249, %264, %267, %270, %273 in 0 : vector<32x512xf32>, vector<32x512xf32>, vector<32x512xf32>, vector<32x512xf32>, vector<32x512xf32>, vector<32x512xf32>, vector<32x512xf32>, vector<32x512xf32>, vector<32x512xf32> -> vector<288x512xf32>
    %c128 = arith.constant 128 : index
    %c0_91 = arith.constant 0 : index
    %275 = vector.load %arg3[%c128, %c0_91] : memref<136x289xf32, #tpu.memory_space<vmem>>, vector<8x288xf32>
    %c128_92 = arith.constant 128 : index
    %c288_93 = arith.constant 288 : index
    %276 = vector.load %arg3[%c128_92, %c288_93] : memref<136x289xf32, #tpu.memory_space<vmem>>, vector<8x1xf32>
    %cst_94 = arith.constant dense<0.000000e+00> : vector<8x512xf32>
    %277 = tpu.matmul %275, %274, %cst_94 {dimension_numbers = #tpu.dot_dimension_numbers<[1], [0], [0], [1], [0, 0, 1, 1], [], []>} : vector<8x288xf32>, vector<288x512xf32>, vector<8x512xf32> -> vector<8x512xf32>
    %278 = vector.broadcast %276 : vector<8x1xf32> to vector<8x512xf32>
    %279 = arith.addf %277, %278 : vector<8x512xf32>
    %280 = math.tanh %279 : vector<8x512xf32>
    %cst_95 = arith.constant 1.000000e-01 : f32
    %281 = vector.broadcast %cst_95 : f32 to vector<8x512xf32>
    %282 = arith.mulf %281, %280 : vector<8x512xf32>
    %283 = arith.addf %0, %282 : vector<8x512xf32>
    %c17_i32_96 = arith.constant 17 : i32
    %284 = tpu.dynamic_rotate %283 by %c17_i32_96 dim 1 : vector<8x512xf32>, i32 -> vector<8x512xf32>
    %285 = vector.broadcast %28 : vector<1x512xf32> to vector<8x512xf32>
    %286 = arith.mulf %284, %285 : vector<8x512xf32>
    %c16_i32_97 = arith.constant 16 : i32
    %287 = tpu.dynamic_rotate %283 by %c16_i32_97 dim 1 : vector<8x512xf32>, i32 -> vector<8x512xf32>
    %288 = vector.broadcast %49 : vector<1x512xf32> to vector<8x512xf32>
    %289 = arith.mulf %287, %288 : vector<8x512xf32>
    %c15_i32_98 = arith.constant 15 : i32
    %290 = tpu.dynamic_rotate %283 by %c15_i32_98 dim 1 : vector<8x512xf32>, i32 -> vector<8x512xf32>
    %291 = vector.broadcast %70 : vector<1x512xf32> to vector<8x512xf32>
    %292 = arith.mulf %290, %291 : vector<8x512xf32>
    %c1_i32_99 = arith.constant 1 : i32
    %293 = tpu.dynamic_rotate %283 by %c1_i32_99 dim 1 : vector<8x512xf32>, i32 -> vector<8x512xf32>
    %294 = vector.broadcast %91 : vector<1x512xf32> to vector<8x512xf32>
    %295 = arith.mulf %293, %294 : vector<8x512xf32>
    %c511_i32_100 = arith.constant 511 : i32
    %296 = tpu.dynamic_rotate %283 by %c511_i32_100 dim 1 : vector<8x512xf32>, i32 -> vector<8x512xf32>
    %297 = vector.broadcast %112 : vector<1x512xf32> to vector<8x512xf32>
    %298 = arith.mulf %296, %297 : vector<8x512xf32>
    %c497_i32_101 = arith.constant 497 : i32
    %299 = tpu.dynamic_rotate %283 by %c497_i32_101 dim 1 : vector<8x512xf32>, i32 -> vector<8x512xf32>
    %300 = vector.broadcast %133 : vector<1x512xf32> to vector<8x512xf32>
    %301 = arith.mulf %299, %300 : vector<8x512xf32>
    %c496_i32_102 = arith.constant 496 : i32
    %302 = tpu.dynamic_rotate %283 by %c496_i32_102 dim 1 : vector<8x512xf32>, i32 -> vector<8x512xf32>
    %303 = vector.broadcast %154 : vector<1x512xf32> to vector<8x512xf32>
    %304 = arith.mulf %302, %303 : vector<8x512xf32>
    %c495_i32_103 = arith.constant 495 : i32
    %305 = tpu.dynamic_rotate %283 by %c495_i32_103 dim 1 : vector<8x512xf32>, i32 -> vector<8x512xf32>
    %306 = vector.broadcast %175 : vector<1x512xf32> to vector<8x512xf32>
    %307 = arith.mulf %305, %306 : vector<8x512xf32>
    %308 = tpu.concatenate %286, %289, %292, %295, %283, %298, %301, %304, %307 in 0 : vector<8x512xf32>, vector<8x512xf32>, vector<8x512xf32>, vector<8x512xf32>, vector<8x512xf32>, vector<8x512xf32>, vector<8x512xf32>, vector<8x512xf32>, vector<8x512xf32> -> vector<72x512xf32>
    %c32 = arith.constant 32 : index
    %c0_104 = arith.constant 0 : index
    %309 = vector.load %arg3[%c32, %c0_104] : memref<136x289xf32, #tpu.memory_space<vmem>>, vector<96x72xf32>
    %c32_105 = arith.constant 32 : index
    %c288_106 = arith.constant 288 : index
    %310 = vector.load %arg3[%c32_105, %c288_106] : memref<136x289xf32, #tpu.memory_space<vmem>>, vector<96x1xf32>
    %cst_107 = arith.constant dense<0.000000e+00> : vector<96x512xf32>
    %311 = tpu.matmul %309, %308, %cst_107 {dimension_numbers = #tpu.dot_dimension_numbers<[1], [0], [0], [1], [0, 0, 1, 1], [], []>} : vector<96x72xf32>, vector<72x512xf32>, vector<96x512xf32> -> vector<96x512xf32>
    %312 = vector.broadcast %310 : vector<96x1xf32> to vector<96x512xf32>
    %313 = arith.addf %311, %312 : vector<96x512xf32>
    %cst_108 = arith.constant 0.000000e+00 : f32
    %314 = vector.broadcast %cst_108 : f32 to vector<96x512xf32>
    %315 = arith.maximumf %313, %314 : vector<96x512xf32>
    %cst_109 = arith.constant dense<0.000000e+00> : vector<96x2xf32>
    %316 = tpu.matmul %315, %191, %cst_109 {dimension_numbers = #tpu.dot_dimension_numbers<[1], [0], [0], [1], [0, 0, 1, 1], [], []>} : vector<96x512xf32>, vector<512x2xf32>, vector<96x2xf32> -> vector<96x2xf32>
    %c0_110 = arith.constant 0 : index
    %c0_111 = arith.constant 0 : index
    %317 = vector.load %arg4[%c0_110, %c0_111] : memref<146x128xf32, #tpu.memory_space<vmem>>, vector<96x128xf32>
    %c96 = arith.constant 96 : index
    %c0_112 = arith.constant 0 : index
    %318 = vector.load %arg4[%c96, %c0_112] : memref<146x128xf32, #tpu.memory_space<vmem>>, vector<1x128xf32>
    %cst_113 = arith.constant dense<0.000000e+00> : vector<2x128xf32>
    %319 = tpu.matmul %316, %317, %cst_113 {dimension_numbers = #tpu.dot_dimension_numbers<[0], [0], [1], [1], [0, 1, 1, 1], [], []>} : vector<96x2xf32>, vector<96x128xf32>, vector<2x128xf32> -> vector<2x128xf32>
    %320 = vector.broadcast %318 : vector<1x128xf32> to vector<2x128xf32>
    %321 = arith.addf %319, %320 : vector<2x128xf32>
    %322 = tpu.iota {dimensions = array<i32: 1>} : vector<2x128xi32>
    %c80_i32 = arith.constant 80 : i32
    %323 = vector.broadcast %c80_i32 : i32 to vector<2x128xi32>
    %324 = arith.cmpi eq, %322, %323 : vector<2x128xi32>
    %325 = arith.negf %321 : vector<2x128xf32>
    %326 = math.exp %325 : vector<2x128xf32>
    %cst_114 = arith.constant 1.000000e+00 : f32
    %327 = vector.broadcast %cst_114 : f32 to vector<2x128xf32>
    %328 = arith.addf %327, %326 : vector<2x128xf32>
    %329 = arith.divf %327, %328 : vector<2x128xf32>
    %330 = arith.select %324, %329, %321 : vector<2x128xi1>, vector<2x128xf32>
    %331 = arith.addf %330, %205 : vector<2x128xf32>
    %332 = vector.extract_strided_slice %321 {offsets = [0, 16], sizes = [2, 16], strides = [1, 1]} : vector<2x128xf32> to vector<2x16xf32>
    %333 = arith.negf %332 : vector<2x16xf32>
    %334 = math.exp %333 : vector<2x16xf32>
    %cst_115 = arith.constant 1.000000e+00 : f32
    %335 = vector.broadcast %cst_115 : f32 to vector<2x16xf32>
    %336 = arith.addf %335, %334 : vector<2x16xf32>
    %337 = arith.divf %335, %336 : vector<2x16xf32>
    %c128_116 = arith.constant 128 : index
    %c0_117 = arith.constant 0 : index
    %338 = vector.load %arg4[%c128_116, %c0_117] : memref<146x128xf32, #tpu.memory_space<vmem>>, vector<16x128xf32>
    %c145 = arith.constant 145 : index
    %c0_118 = arith.constant 0 : index
    %339 = vector.load %arg4[%c145, %c0_118] : memref<146x128xf32, #tpu.memory_space<vmem>>, vector<1x128xf32>
    %c32_i32 = arith.constant 32 : i32
    %340 = vector.broadcast %c32_i32 : i32 to vector<2x128xi32>
    %341 = arith.cmpi sge, %322, %340 : vector<2x128xi32>
    %c40_i32 = arith.constant 40 : i32
    %342 = vector.broadcast %c40_i32 : i32 to vector<2x128xi32>
    %343 = arith.cmpi slt, %322, %342 : vector<2x128xi32>
    %344 = arith.andi %341, %343 : vector<2x128xi1>
    %345 = arith.extui %344 : vector<2x128xi1> to vector<2x128xi32>
    %346 = arith.sitofp %345 : vector<2x128xi32> to vector<2x128xf32>
    %cst_119 = arith.constant dense<0.000000e+00> : vector<2x128xf32>
    %347 = tpu.matmul %337, %338, %cst_119 {dimension_numbers = #tpu.dot_dimension_numbers<[1], [0], [0], [1], [0, 0, 1, 1], [], []>} : vector<2x16xf32>, vector<16x128xf32>, vector<2x128xf32> -> vector<2x128xf32>
    %348 = vector.broadcast %339 : vector<1x128xf32> to vector<2x128xf32>
    %349 = arith.addf %347, %348 : vector<2x128xf32>
    %350 = arith.negf %349 : vector<2x128xf32>
    %351 = math.exp %350 : vector<2x128xf32>
    %cst_120 = arith.constant 1.000000e+00 : f32
    %352 = vector.broadcast %cst_120 : f32 to vector<2x128xf32>
    %353 = arith.addf %352, %351 : vector<2x128xf32>
    %354 = arith.divf %352, %353 : vector<2x128xf32>
    %355 = arith.mulf %346, %354 : vector<2x128xf32>
    %356 = arith.addf %331, %355 : vector<2x128xf32>
    %c0_121 = arith.constant 0 : index
    %c0_122 = arith.constant 0 : index
    %357 = vector.load %arg8[%c0_121, %c0_122] : memref<2x128xf32, #tpu.memory_space<vmem>>, vector<2x128xf32>
    tpu.vector_store %arg8[%c0_121, %c0_122], %356 {strides = array<i32>} : memref<2x128xf32, #tpu.memory_space<vmem>>, vector<2x128xf32>,
    %358 = vector.extract_strided_slice %321 {offsets = [0, 48], sizes = [2, 16], strides = [1, 1]} : vector<2x128xf32> to vector<2x16xf32>
    %359 = vector.extract_strided_slice %321 {offsets = [0, 64], sizes = [2, 16], strides = [1, 1]} : vector<2x128xf32> to vector<2x16xf32>
    %cst_123 = arith.constant 5.000000e-01 : f32
    %360 = vector.broadcast %cst_123 : f32 to vector<2x16xf32>
    %361 = arith.mulf %360, %359 : vector<2x16xf32>
    %362 = math.exp %361 : vector<2x16xf32>
    %c0_124 = arith.constant 0 : index
    %c0_125 = arith.constant 0 : index
    %363 = vector.load %arg2[%c0_124, %c0_125] : memref<2x16xf32, #tpu.memory_space<vmem>>, vector<2x16xf32>
    %364 = arith.mulf %362, %363 : vector<2x16xf32>
    %365 = arith.addf %358, %364 : vector<2x16xf32>
    %c0_126 = arith.constant 0 : index
    %c0_127 = arith.constant 0 : index
    %366 = vector.load %arg5[%c0_126, %c0_127] : memref<17x1024xf32, #tpu.memory_space<vmem>>, vector<16x1024xf32>
    %c16 = arith.constant 16 : index
    %c0_128 = arith.constant 0 : index
    %367 = vector.load %arg5[%c16, %c0_128] : memref<17x1024xf32, #tpu.memory_space<vmem>>, vector<1x1024xf32>
    %cst_129 = arith.constant dense<0.000000e+00> : vector<2x1024xf32>
    %368 = tpu.matmul %365, %366, %cst_129 {dimension_numbers = #tpu.dot_dimension_numbers<[1], [0], [0], [1], [0, 0, 1, 1], [], []>} : vector<2x16xf32>, vector<16x1024xf32>, vector<2x1024xf32> -> vector<2x1024xf32>
    %369 = vector.broadcast %367 : vector<1x1024xf32> to vector<2x1024xf32>
    %370 = arith.addf %368, %369 : vector<2x1024xf32>
    %371 = math.tanh %370 : vector<2x1024xf32>
    %372 = vector.extract_strided_slice %283 {offsets = [0, 0], sizes = [1, 256], strides = [1, 1]} : vector<8x512xf32> to vector<1x256xf32>
    %373 = vector.extract_strided_slice %283 {offsets = [1, 0], sizes = [1, 256], strides = [1, 1]} : vector<8x512xf32> to vector<1x256xf32>
    %374 = vector.extract_strided_slice %283 {offsets = [2, 0], sizes = [1, 256], strides = [1, 1]} : vector<8x512xf32> to vector<1x256xf32>
    %375 = vector.extract_strided_slice %283 {offsets = [3, 0], sizes = [1, 256], strides = [1, 1]} : vector<8x512xf32> to vector<1x256xf32>
    %376 = tpu.concatenate %372, %373, %374, %375 in 1 : vector<1x256xf32>, vector<1x256xf32>, vector<1x256xf32>, vector<1x256xf32> -> vector<1x1024xf32>
    %c0_130 = arith.constant 0 : index
    %c0_131 = arith.constant 0 : index
    %377 = vector.load %arg6[%c0_130, %c0_131] : memref<2x1024xf32, #tpu.memory_space<vmem>>, vector<1x1024xf32>
    tpu.vector_store %arg6[%c0_130, %c0_131], %376 {strides = array<i32>} : memref<2x1024xf32, #tpu.memory_space<vmem>>, vector<1x1024xf32>,
    %378 = vector.extract_strided_slice %371 {offsets = [0, 0], sizes = [1, 1024], strides = [1, 1]} : vector<2x1024xf32> to vector<1x1024xf32>
    %cst_132 = arith.constant 1.000000e-01 : f32
    %379 = vector.broadcast %cst_132 : f32 to vector<1x1024xf32>
    %380 = arith.mulf %379, %378 : vector<1x1024xf32>
    %381 = arith.addf %376, %380 : vector<1x1024xf32>
    %c0_133 = arith.constant 0 : index
    %c0_134 = arith.constant 0 : index
    %382 = vector.load %arg7[%c0_133, %c0_134] : memref<2x1024xf32, #tpu.memory_space<vmem>>, vector<1x1024xf32>
    tpu.vector_store %arg7[%c0_133, %c0_134], %381 {strides = array<i32>} : memref<2x1024xf32, #tpu.memory_space<vmem>>, vector<1x1024xf32>,
    %383 = vector.extract_strided_slice %283 {offsets = [0, 256], sizes = [1, 256], strides = [1, 1]} : vector<8x512xf32> to vector<1x256xf32>
    %384 = vector.extract_strided_slice %283 {offsets = [1, 256], sizes = [1, 256], strides = [1, 1]} : vector<8x512xf32> to vector<1x256xf32>
    %385 = vector.extract_strided_slice %283 {offsets = [2, 256], sizes = [1, 256], strides = [1, 1]} : vector<8x512xf32> to vector<1x256xf32>
    %386 = vector.extract_strided_slice %283 {offsets = [3, 256], sizes = [1, 256], strides = [1, 1]} : vector<8x512xf32> to vector<1x256xf32>
    %387 = tpu.concatenate %383, %384, %385, %386 in 1 : vector<1x256xf32>, vector<1x256xf32>, vector<1x256xf32>, vector<1x256xf32> -> vector<1x1024xf32>
    %c1 = arith.constant 1 : index
    %c0_135 = arith.constant 0 : index
    %388 = vector.load %arg6[%c1, %c0_135] : memref<2x1024xf32, #tpu.memory_space<vmem>>, vector<1x1024xf32>
    tpu.vector_store %arg6[%c1, %c0_135], %387 {strides = array<i32>} : memref<2x1024xf32, #tpu.memory_space<vmem>>, vector<1x1024xf32>,
    %389 = vector.extract_strided_slice %371 {offsets = [1, 0], sizes = [1, 1024], strides = [1, 1]} : vector<2x1024xf32> to vector<1x1024xf32>
    %cst_136 = arith.constant 1.000000e-01 : f32
    %390 = vector.broadcast %cst_136 : f32 to vector<1x1024xf32>
    %391 = arith.mulf %390, %389 : vector<1x1024xf32>
    %392 = arith.addf %387, %391 : vector<1x1024xf32>
    %c1_137 = arith.constant 1 : index
    %c0_138 = arith.constant 0 : index
    %393 = vector.load %arg7[%c1_137, %c0_138] : memref<2x1024xf32, #tpu.memory_space<vmem>>, vector<1x1024xf32>
    tpu.vector_store %arg7[%c1_137, %c0_138], %392 {strides = array<i32>} : memref<2x1024xf32, #tpu.memory_space<vmem>>, vector<1x1024xf32>,
    return
  }
}

</mosaic_0001>

<bundles_post_ra>
// kernel: forward.1
= control target key start
LH: loop header
LB: loop body
LE: loop exit
PB: predicated region body
PF: predicated region fallthrough
CT: control target
= control target key end

     0   :  { %14 = vsyncpa [#allocation3], 0  ;;  %s7932_s0 = inlined_call_operand.vmem [shape: f32[8,512], index: 0, kind: input, shape index: {}]   ;;  %s7933_s1 = inlined_call_operand.vmem [shape: f32[2,8], index: 1, kind: input, shape index: {}]   ;;  %s7934_s2 = inlined_call_operand.vmem [shape: f32[2,16], index: 2, kind: input, shape index: {}]   ;;  %s7935_s3 = inlined_call_operand.vmem [shape: f32[136,289], index: 3, kind: input, shape index: {}]   ;;  %s7936_s4 = inlined_call_operand.hbm [shape: f32[146,128], index: 4, kind: input, shape index: {}]   ;;  %s7937_s5 = inlined_call_operand.hbm [shape: f32[17,1024], index: 5, kind: input, shape index: {}]   ;;  %s7938_s6 = inlined_call_operand.vmem [shape: f32[2,1024], index: 6, kind: output, shape index: {0}]   ;;  %s7939_s7 = inlined_call_operand.vmem [shape: f32[2,1024], index: 7, kind: output, shape index: {1}]   ;;  %s7940_s8 = inlined_call_operand.vmem [shape: f32[2,128], index: 8, kind: output, shape index: {2}]  }
   0x1   :  { %15 = vsyncpa [#allocation5], 0  ;;  %s4755_s27 = smov [#allocation2]   ;;  %s4707_s9 = scalar_lea.hbm %s7936_s4, 2432 }
   0x2   :  { %s29_s28 = sshll.u32 %s4755_s27, 4  ;;  %p4708_p0 = scmp.ne.s32.totalorder %s7936_s4, %s4707_s9  ;;  %s30_s28 = int_to_ptr.vmem [resolvable:$true] %s29_s28 }
   0x3   :  { %p4711_p1 = scmp.lt.u32.totalorder %s4707_s9, %s7936_s4 }
   0x5   :  { %p4713_p2 = pnand %p4711_p1, %p4708_p0 }
   0x7   :  { %4716 = shalt.err (!%p4713_p2)
}
   0x8   :  { %s4717_s14 = scalar_lea.vmem %s30_s28, 2432  ;;  %p4722_p4 = scmp.lt.s32.totalorder %s30_s28, %s30_s28 }
   0x9   :  { %p4718_p3 = scmp.ne.s32.totalorder %s30_s28, %s4717_s14  ;;  %p4723_p5 = scmp.lt.s32.totalorder %s4717_s14, %s4717_s14 }
   0xb   :  { %p4724_p6 = por %p4723_p5, %p4722_p4 }
   0xd   :  { %p4725_p7 = pnand %p4724_p6, %p4718_p3 }
   0xf   :  { %4728 = shalt.err (!%p4725_p7)
}
  0x10   :  { %s4756_s15 = smov 128   ;;  %s4757_s16 = smov 8  }
  0x11   :  { %35 = dma.hbm_to_vmem [thread:$0]  %s7936_s4, 2432, %s30_s28, [#allocation3], %s4756_s15, %s4756_s15, %s4757_s16  }
  0x12   :  { %s4758_s19 = smov [#allocation4]   ;;  %s4729_s23 = scalar_lea.hbm %s7937_s5, 3072 }
  0x13   :  { %s41_s20 = sshll.u32 %s4758_s19, 4  ;;  %p4730_p8 = scmp.ne.s32.totalorder %s7937_s5, %s4729_s23  ;;  %s42_s20 = int_to_ptr.vmem [resolvable:$true] %s41_s20 }
  0x14   :  { %p4733_p9 = scmp.lt.u32.totalorder %s4729_s23, %s7937_s5 }
  0x16   :  { %p4735_p10 = pnand %p4733_p9, %p4730_p8 }
  0x18   :  { %4738 = shalt.err (!%p4735_p10)
}
  0x19   :  { %s4739_s29 = scalar_lea.vmem %s42_s20, 3072  ;;  %p4744_p12 = scmp.lt.s32.totalorder %s42_s20, %s42_s20 }
  0x1a   :  { %p4740_p11 = scmp.ne.s32.totalorder %s42_s20, %s4739_s29  ;;  %p4745_p13 = scmp.lt.s32.totalorder %s4739_s29, %s4739_s29 }
  0x1c   :  { %p4746_p0 = por %p4745_p13, %p4744_p12 }
  0x1e   :  { %p4747_p1 = pnand %p4746_p0, %p4740_p11 }
  0x20   :  { %4750 = shalt.err (!%p4747_p1)
}
  0x21   :  { %s4759_s4 = smov 1024   ;;  %s4760_s28 = smov 64  }
  0x22   :  { %47 = dma.hbm_to_vmem [thread:$0]  %s7937_s5, 3072, %s42_s20, [#allocation5], %s4759_s4, %s4759_s4, %s4760_s28  }
  0x23   :  { %4751 = dma.done.wait [#allocation3], 2432  }
  0x24   :  { %4752 = vsyncadd [#allocation3], 4294964864 }
  0x25   :  { %4753 = dma.done.wait [#allocation5], 3072  }
  0x26   :  { %4754 = vsyncadd [#allocation5], 4294964224  ;;  %v7963_v0 = vmov 0.0   ;;  %vm7942_vm0 = vmmov 0   ;;  %vm685_vm1 = vcmask 64512   ;;  %v683_v1 = vld [vmem:[#allocation2 + $0x68] sm:$0xff]  ;;  %v58_v14 = vlaneseq }
  0x27   :  { %4279 = vmatprep.subr.mxu0 %v7963_v0  ;;  %4281 = vmatprep.mubr.msk.f32.mxu0 %vm7942_vm0, %v7963_v0  ;;  %v684_v2 = vld [vmem:[%s7933_s1] sm:$0x3]  ;;  %v762_v3 = vld [vmem:[#allocation2 + $0x70] sm:$0xff]  ;;  %v763_v4 = vld [vmem:[#allocation2 + $0x78] sm:$0xff]  ;;  %v7954_v6 = vmov 0.0|0.0   ;;  %vm7941_vm2 = vcmask 130048  }
  0x28   :  { %4288 = vmatprep.mubr.msk.f32.mxu1 %vm7942_vm0, %v7963_v0  ;;  %4280 = vmatpush3.msra.mxu0 %v683_v1  ;;  %v4326_v5 = vpack.c.bf16 %v763_v4, %v762_v3  ;;  %v4860_v15 = vand.u32 127, %v58_v14  ;;  %v4862_v16 = vshrl.u32 %v58_v14, 7  ;;  %vm880_vm3 = vcmask 1041408   ;;  %v4067_v28 = vld [vmem:[#allocation2 + $0x90] ss:$0 sm:$0xff]  ;;  %v54_v34 = vld [vmem:[%s7932_s0] sm:$0xff] }
  0x29   :  { %4282 = vmatmul.mubr.msk.f32.vlgmr.msra.gmra.mrb[0].mxu0 %vm685_vm1, %v684_v2  ;;  %4325 = vmatprep.subr.bf16.mxu1 %v7954_v6  ;;  %vm876_vm8 = vcmask 15360   ;;  %v56_v36 = vld [vmem:[%s7932_s0 + $0x10] sm:$0xff]  ;;  %v55_v39 = vld [vmem:[%s7932_s0 + $0x8] sm:$0xff]  ;;  %v57_v47 = vld [vmem:[%s7932_s0 + $0x18] sm:$0xff]  ;;  %s4764_s18 = smov 17   ;;  %s4765_s19 = smov 16  }
  0x2a   :  { %957 = vmatprep.mubr.f32.mxu0 %v7963_v0  ;;  %4327 = vmatpush3.bf16.msra.mxu1 %v4326_v5  ;;  %8111 = vst [vmem:[#allocation9_spill] sm:$0xff] %v4862_v16  ;;  %v4865_v17 = vadd.s32 384, %v4860_v15  ;;  %v4868_v18 = vadd.s32 256, %v4860_v15  ;;  %v4871_v19 = vadd.s32 128, %v4860_v15  ;;  %v279_v20 = vshra.s32 %v4860_v15, 8  ;;  %s4766_s20 = smov 1  }
  0x2b   :  { %vm680_vm9 = vcmp.lt.s32.totalorder %v4862_v16, 4  ;;  %s4767_s21 = smov 15   ;;  %s4768_s22 = smov 127   ;;  %v1183_v51 = vld [vmem:[%s7935_s3 + $0x10] sm:$0xff]  ;;  %v4772_v52 = vmov 32   ;;  %v1184_v53 = vld [vmem:[%s7935_s3 + $0x28] sm:$0xff] }
  0x2c   :  { %v282_v21 = vshra.s32 %v4865_v17, 8  ;;  %v281_v22 = vshra.s32 %v4868_v18, 8  ;;  %v280_v23 = vshra.s32 %v4871_v19, 8  ;;  %vm285_vm5 = vcmp.eq.s32.totalorder %v279_v20, %v4862_v16  ;;  %s4769_s23 = smov 113   ;;  %s4770_s24 = smov 112   ;;  %4667 = vset.pattern.permute.xlu1 %v4772_v52  ;;  %v1185_v54 = vld [vmem:[%s7935_s3 + $0x40] sm:$0xff] }
  0x2d   :  { %v3997_v26 = vsel %vm285_vm5, 1.0, %v7963_v0  ;;  %v4065_v35 = vsel %vm680_vm9, 1.0, %v7963_v0  ;;  %s4771_s25 = smov 111   ;;  %v1186_v55 = vld [vmem:[%s7935_s3 + $0x58] sm:$0xff]  ;;  %v68_v63 = vshra.s32 %v4871_v19, 4  ;;  %v67_v2 = vshra.s32 %v4860_v15, 4 }
  0x2e   :  { %vm288_vm4 = vcmp.eq.s32.totalorder %v282_v21, %v4862_v16  ;;  %vm287_vm6 = vcmp.eq.s32.totalorder %v281_v22, %v4862_v16  ;;  %vm286_vm7 = vcmp.eq.s32.totalorder %v280_v23, %v4862_v16  ;;  %v1035_v37 = vmul.f32 %v4065_v35, %v54_v34 }
  0x2f   :  { %v4000_v24 = vsel %vm288_vm4, 1.0, %v7963_v0  ;;  %v3999_v25 = vsel %vm287_vm6, 1.0, %v7963_v0  ;;  %v3998_v27 = vsel %vm286_vm7, 1.0, %v7963_v0  ;;  %v1037_v38 = vmul.f32 %v4065_v35, %v56_v36 }
  0x30   :  { %4072 = vmatprep.subr.msk.mxu1 %vm880_vm3, %v4000_v24  ;;  %4069 = vmatprep.subr.msk.mxu0 %vm880_vm3, %v3998_v27  ;;  %v1036_v45 = vmul.f32 %v4065_v35, %v55_v39  ;;  %v1038_v49 = vmul.f32 %v4065_v35, %v57_v47  ;;  %v69_v3 = vshra.s32 %v4868_v18, 4  ;;  %v70_v5 = vshra.s32 %v4865_v17, 4 }
  0x31   :  { %4070 = vmatpush1.msk.msra.mxu0 %vm880_vm3, %v3997_v26  ;;  %v8131_v47 = vmov 0 }
  0x32   :  { %v5011_v14 = vand.u32 15, %v69_v3  ;;  %v74_v22 = vand.u32 15, %v70_v5 }
  0x34   :  { %vm173_vm14 = vcmp.ge.s32.totalorder %v5011_v14, 0  ;;  %vm177_vm15 = vcmp.lt.s32.totalorder %v5011_v14, 16  ;;  %vm178_vm4 = vcmp.lt.s32.totalorder %v74_v22, 16  ;;  %v218_v34 = vadd.s32 1, %v74_v22 }
  0x35   :  { %vm5054_vm9 = vmand %vm173_vm14, %vm177_vm15 }
  0x36   :  { %vm226_vm0 = vcmp.lt.s32.totalorder %v218_v34, 16 }
  0xfc   :  { %v755_v7 = vpop.f32.mrb[0].mxu0 }
  0xfd   :  { %v756_v8 = vadd.f32 0.5, %v755_v7  ;;  %v4283_v9 = vpop.f32.mrb[1].mxu0  ;;  %v64_v7 = vand.u32 15, %v4871_v19 }
  0xfe   :  { %v65_v9 = vand.u32 15, %v4868_v18 }
  0xff   :  { %v4645_v10 = vtrunc.f32 %v756_v8  ;;  %v72_v8 = vand.u32 15, %v68_v63  ;;  %v5017_v23 = vadd.s32 4294967295, %v64_v7  ;;  %v8142_v63 = vmov 0 }
 0x100   :  { %v5021_v18 = vadd.s32 4294967295, %v65_v9 }
 0x101   :  { %v4646_v11 = vcvt.f32.s32 %v4645_v10  ;;  %v63_v10 = vand.u32 15, %v4860_v15  ;;  %vm172_vm10 = vcmp.ge.s32.totalorder %v72_v8, 0  ;;  %vm176_vm11 = vcmp.lt.s32.totalorder %v72_v8, 16 }
 0x102   :  { %vm5031_vm1 = vmand %vm172_vm10, %vm176_vm11  ;;  %vm7945_vm7 = vcmp.ge.s32.totalorder %v5017_v23, 0 }
 0x103   :  { %v760_v12 = vand.u32 1, %v4646_v11  ;;  %v71_v11 = vand.u32 15, %v67_v2  ;;  %v5019_v19 = vadd.s32 4294967295, %v63_v10  ;;  %vm5080_vm15 = vmand %vm5031_vm1, %vm7945_vm7  ;;  %v77_v2 = vadd.s32 4294967295, %v5011_v14 }
 0x105   :  { %v4855_v13 = vcvt.s32.f32 %v760_v12  ;;  %v66_v12 = vand.u32 15, %v4865_v17  ;;  %vm171_vm12 = vcmp.ge.s32.totalorder %v71_v11, 0  ;;  %vm175_vm13 = vcmp.lt.s32.totalorder %v71_v11, 16 }
 0x106   :  { %v5027_v17 = vadd.s32 1, %v63_v10  ;;  %vm5041_vm5 = vmand %vm171_vm12, %vm175_vm13  ;;  %vm7944_vm6 = vcmp.ge.s32.totalorder %v5019_v19, 0 }
 0x107   :  { %8110 = vst [vmem:[#allocation8_spill] sm:$0xff] %v4855_v13  ;;  %4289 = vmatmul.mubr.msk.f32.vlgmr.msra.gmra.mrb[0].mxu1 %vm7941_vm2, %v4855_v13  ;;  %v5023_v24 = vadd.s32 4294967295, %v66_v12  ;;  %v5035_v27 = vadd.s32 1, %v66_v12  ;;  %vm5072_vm14 = vmand %vm5041_vm5, %vm7944_vm6  ;;  %v5178_v12 = vadd.s32 1, %v5011_v14 }
 0x108   :  { %1028 = vmatprep.mubr.f32.mxu1 %v7963_v0  ;;  %4073 = vmatpush1.msk.msra.mxu1 %vm880_vm3, %v3999_v25  ;;  %8112 = vst [vmem:[#allocation10_spill] sm:$0xff] %v5027_v17  ;;  %vm174_vm3 = vcmp.ge.s32.totalorder %v74_v22, 0  ;;  %vm7948_vm12 = vcmp.lt.s32.totalorder %v5027_v17, 16 }
 0x109   :  { %vm7947_vm10 = vcmp.ge.s32.totalorder %v5023_v24, 0  ;;  %vm5059_vm11 = vmand %vm174_vm3, %vm178_vm4  ;;  %vm7949_vm13 = vcmp.lt.s32.totalorder %v5035_v27, 16  ;;  %vm222_vm4 = vcmp.ge.s32.totalorder %v218_v34, 0 }
 0x10a   :  { %vm5097_vm7 = vmand %vm5059_vm11, %vm7947_vm10 }
 0x10b   :  { %vm5115_vm10 = vmand %vm5059_vm11, %vm7949_vm13 }
 0x10c   :  { %v8132_v47 = vsel %vm5115_vm10, 4294967295, %v8131_v47 }
 0x1da   :  { %v839_v29 = vpop.f32.mrb[0].mxu1 }
 0x1db   :  { %v4290_v30 = vpop.f32.mrb[1].mxu1  ;;  %v840_v31 = vadd.f32 %v4067_v28, %v839_v29  ;;  %v5037_v28 = vadd.s32 1, %v64_v7 }
 0x1dc   :  { %v5188_v30 = vsel %vm5072_vm14, 1.0, %v7963_v0 }
 0x1dd   :  { %v843_v32 = vmax.f32 %v840_v31, 0.0  ;;  %v5045_v31 = vadd.s32 1, %v65_v9  ;;  %8158 = vst [vmem:[#allocation11_spill] sm:$0xff] %v5188_v30 }
 0x1df   :  { %844 = vxpose.xlu0.b32.start.end [1/1] (short) (narrow) %v843_v32, 8  ;;  %v215_v32 = vadd.s32 1, %v71_v11 }
 0x1e1   :  { %vm223_vm6 = vcmp.lt.s32.totalorder %v215_v32, 16  ;;  %vm8139_vm13 = vcmp.ge.s32.totalorder %v215_v32, 0  ;;  %v5193_v32 = vsel %vm5080_vm15, 1.0, %v7963_v0 }
 0x1e2   :  { %vm5138_vm10 = vmand %vm8139_vm13, %vm223_vm6 }
 0x208   :  { %4668 = vset.pattern.permute.xlu0 %v4772_v52  ;;  %v8134_v52 = vmov 0 }
 0x25f   :  { %v860_v33 = vpop.trf.xlu0 }
 0x260   :  { %4071 = vmatmul.mubr.msk.f32.vlgmr.msra.gmra.mrb[2].mxu0 %vm876_vm8, %v860_v33  ;;  %4074 = vmatmul.mubr.msk.f32.vlgmr.msra.gmra.mrb[2].mxu1 %vm876_vm8, %v860_v33  ;;  %vm7946_vm8 = vcmp.ge.s32.totalorder %v5021_v18, 0 }
 0x261   :  { %1373 = vmatprep.mubr.f32.mxu1 %v7963_v0  ;;  %1284 = vmatprep.mubr.f32.mxu0 %v7963_v0  ;;  %vm5088_vm3 = vmand %vm5054_vm9, %vm7946_vm8 }
 0x262   :  { %vm5105_vm8 = vmand %vm5041_vm5, %vm7948_vm12  ;;  %vm8133_vm5 = vcmp.lt.s32.totalorder %v5037_v28, 16 }
 0x263   :  { %vm5125_vm12 = vmand %vm5031_vm1, %vm8133_vm5 }
 0x264   :  { %v8135_v52 = vsel %vm5125_vm12, 4294967295, %v8134_v52 }
 0x333   :  { %v959_v40 = vpop.f32.mrb[2].mxu0  ;;  %v1030_v41 = vpop.f32.mrb[2].mxu1 }
 0x334   :  { %v4898_v42 = vadd.f32 %v1035_v37, %v959_v40  ;;  %v4900_v43 = vadd.f32 %v1037_v38, %v1030_v41  ;;  %v961_v44 = vpop.f32.mrb[3].mxu0  ;;  %v1032_v46 = vpop.f32.mrb[3].mxu1  ;;  %v76_v37 = vadd.s32 4294967295, %v72_v8  ;;  %v8125_v40 = vmov 0 }
 0x335   :  { %v4909_v48 = vadd.f32 %v1036_v45, %v961_v44  ;;  %v4915_v50 = vadd.f32 %v1038_v49, %v1032_v46  ;;  %v8126_v40 = vsel %vm5088_vm3, 4294967295, %v8125_v40  ;;  %v216_v41 = vadd.s32 1, %v72_v8  ;;  %vm5142_vm3 = vmand %vm222_vm4, %vm226_vm0 }
 0x336   :  { %1047 = vrot.lane.b32.xlu1 %v4900_v43, %s4764_s18  ;;  %1043 = vrot.lane.b32.xlu0 %v4898_v42, %s4764_s18  ;;  %v8127_v44 = vmov 0  ;;  %v8129_v45 = vmov 0  ;;  %vm80_vm2 = vcmp.ge.s32.totalorder %v76_v37, 0  ;;  %v8143_v63 = vsel %vm5142_vm3, 4294967295, %v8142_v63 }
 0x337   :  { %v8128_v44 = vsel %vm5097_vm7, 4294967295, %v8127_v44  ;;  %v8130_v45 = vsel %vm5105_vm8, 4294967295, %v8129_v45  ;;  %vm84_vm7 = vcmp.lt.s32.totalorder %v76_v37, 16  ;;  %vm8136_vm8 = vcmp.lt.s32.totalorder %v5045_v31, 16 }
 0x338   :  { %vm5133_vm11 = vmand %vm5054_vm9, %vm8136_vm8  ;;  %vm220_vm1 = vcmp.ge.s32.totalorder %v216_v41, 0  ;;  %vm224_vm5 = vcmp.lt.s32.totalorder %v216_v41, 16  ;;  %vm8146_vm8 = vcmp.ge.s32.totalorder %v5019_v19, 0  ;;  %vm85_vm3 = vcmp.lt.s32.totalorder %v77_v2, 16 }
 0x339   :  { %vm5147_vm12 = vmand %vm80_vm2, %vm84_vm7  ;;  %vm81_vm7 = vcmp.ge.s32.totalorder %v77_v2, 0  ;;  %vm8162_vm14 = vnez %v8128_v44  ;;  %vm8164_vm15 = vnez %v8130_v45 }
 0x33a   :  { %1060 = vrot.lane.b32.xlu1 %v4898_v42, %s4765_s19  ;;  %1096 = vrot.lane.b32.xlu0 %v4909_v48, %s4766_s20  ;;  %vm5155_vm6 = vmand %vm5138_vm10, %vm8146_vm8  ;;  %v5208_v34 = vsel %vm8162_vm14, 1.0, %v7963_v0  ;;  %v5213_v35 = vsel %vm8164_vm15, 1.0, %v7963_v0  ;;  %vm8172_vm14 = vcmp.ge.s32.totalorder %v5023_v24, 0  ;;  %v5249_v41 = vsel %vm5147_vm12, 1.0, %v7963_v0 }
 0x33b   :  { %vm5159_vm13 = vmand %vm220_vm1, %vm224_vm5  ;;  %vm7953_vm1 = vcmp.lt.s32.totalorder %v4860_v15, 17  ;;  %8163 = vst [vmem:[#allocation12_spill] sm:$0xff] %v5208_v34 }
 0x33c   :  { %8165 = vst [vmem:[#allocation13_spill] sm:$0xff] %v5213_v35  ;;  %8175 = vst [vmem:[#allocation16_spill] sm:$0xff] %v5249_v41 }
 0x33e   :  { %1064 = vrot.lane.b32.xlu1 %v4900_v43, %s4765_s19  ;;  %1100 = vrot.lane.b32.xlu0 %v4915_v50, %s4766_s20 }
 0x342   :  { %1077 = vrot.lane.b32.xlu1 %v4898_v42, %s4767_s21  ;;  %1113 = vrot.lane.b32.xlu0 %v4909_v48, %s4768_s22 }
 0x346   :  { %1081 = vrot.lane.b32.xlu1 %v4900_v43, %s4767_s21  ;;  %1117 = vrot.lane.b32.xlu0 %v4915_v50, %s4768_s22 }
 0x34a   :  { %1094 = vrot.lane.b32.xlu1 %v4898_v42, %s4766_s20  ;;  %1130 = vrot.lane.b32.xlu0 %v4909_v48, %s4769_s23 }
 0x34e   :  { %1098 = vrot.lane.b32.xlu1 %v4900_v43, %s4766_s20  ;;  %1134 = vrot.lane.b32.xlu0 %v4915_v50, %s4769_s23 }
 0x352   :  { %1111 = vrot.lane.b32.xlu1 %v4898_v42, %s4768_s22  ;;  %1147 = vrot.lane.b32.xlu0 %v4909_v48, %s4770_s24 }
 0x356   :  { %1115 = vrot.lane.b32.xlu1 %v4900_v43, %s4768_s22  ;;  %1151 = vrot.lane.b32.xlu0 %v4915_v50, %s4770_s24 }
 0x35a   :  { %1128 = vrot.lane.b32.xlu1 %v4898_v42, %s4769_s23  ;;  %1164 = vrot.lane.b32.xlu0 %v4909_v48, %s4771_s25 }
 0x35e   :  { %1132 = vrot.lane.b32.xlu1 %v4900_v43, %s4769_s23  ;;  %1168 = vrot.lane.b32.xlu0 %v4915_v50, %s4771_s25 }
 0x362   :  { %1045 = vrot.lane.b32.xlu1 %v4909_v48, %s4764_s18  ;;  %1194 = vperm.xlu0 %4668, %v1184_v53   ;;  %v8137_v53 = vmov 0 }
 0x363   :  { %v8138_v53 = vsel %vm5133_vm11, 4294967295, %v8137_v53  ;;  %vm8151_vm11 = vcmp.ge.s32.totalorder %v5017_v23, 0 }
 0x364   :  { %vm5169_vm8 = vmand %vm5147_vm12, %vm8151_vm11  ;;  %vm225_vm11 = vcmp.lt.s32.totalorder %v5178_v12, 16 }
 0x365   :  { %v5233_v39 = vsel %vm5169_vm8, 1.0, %v7963_v0  ;;  %vm8176_vm8 = vnez %v8135_v52 }
 0x366   :  { %1049 = vrot.lane.b32.xlu1 %v4915_v50, %s4764_s18  ;;  %8171 = vst [vmem:[#allocation15_spill] sm:$0xff] %v5233_v39  ;;  %v5256_v45 = vsel %vm8176_vm8, 1.0, %v7963_v0 }
 0x367   :  { %8177 = vst [vmem:[#allocation17_spill] sm:$0xff] %v5256_v45 }
 0x36a   :  { %1062 = vrot.lane.b32.xlu1 %v4909_v48, %s4765_s19 }
 0x36e   :  { %1066 = vrot.lane.b32.xlu1 %v4915_v50, %s4765_s19 }
 0x372   :  { %1079 = vrot.lane.b32.xlu1 %v4909_v48, %s4767_s21 }
 0x376   :  { %1083 = vrot.lane.b32.xlu1 %v4915_v50, %s4767_s21 }
 0x37a   :  { %1145 = vrot.lane.b32.xlu1 %v4898_v42, %s4770_s24 }
 0x37e   :  { %1149 = vrot.lane.b32.xlu1 %v4900_v43, %s4770_s24 }
 0x382   :  { %1162 = vrot.lane.b32.xlu1 %v4898_v42, %s4771_s25 }
 0x386   :  { %1166 = vrot.lane.b32.xlu1 %v4900_v43, %s4771_s25 }
 0x38a   :  { %1189 = vperm.xlu1 %4667, %v1183_v51   ;;  %v75_v51 = vadd.s32 4294967295, %v71_v11 }
 0x38c   :  { %vm79_vm0 = vcmp.ge.s32.totalorder %v75_v51, 0  ;;  %vm83_vm9 = vcmp.lt.s32.totalorder %v75_v51, 16 }
 0x38e   :  { %1199 = vperm.xlu1 %4667, %v1185_v54   ;;  %v8140_v54 = vmov 0 }
 0x38f   :  { %v8141_v54 = vsel %vm5138_vm10, 4294967295, %v8140_v54  ;;  %vm5173_vm10 = vmand %vm79_vm0, %vm83_vm9  ;;  %vm8159_vm0 = vnez %v8126_v40 }
 0x390   :  { %v5199_v14 = vsel %vm8159_vm0, 1.0, %v7963_v0  ;;  %vm5201_vm9 = vmand %vm81_vm7, %vm85_vm3  ;;  %vm1068_vm7 = vcmp.lt.s32.totalorder %v4860_v15, 16  ;;  %vm8169_vm0 = vnez %v8132_v47 }
 0x391   :  { %v5228_v38 = vsel %vm8169_vm0, 1.0, %v7963_v0  ;;  %vm8180_vm0 = vmmov %vm8172_vm14 }
 0x392   :  { %1204 = vperm.xlu1 %4667, %v1186_v55   ;;  %v78_v55 = vadd.s32 4294967295, %v74_v22  ;;  %8170 = vst [vmem:[#allocation14_spill] sm:$0xff] %v5228_v38 }
 0x394   :  { %vm82_vm4 = vcmp.ge.s32.totalorder %v78_v55, 0  ;;  %vm86_vm2 = vcmp.lt.s32.totalorder %v78_v55, 16  ;;  %v5274_v55 = vsel %vm5155_vm6, 1.0, %v7963_v0  ;;  %vm8188_vm6 = vcmp.ge.s32.totalorder %v5017_v23, 0 }
 0x395   :  { %vm5181_vm5 = vmand %vm82_vm4, %vm86_vm2  ;;  %vm8166_vm2 = vcmp.ge.s32.totalorder %v5019_v19, 0  ;;  %8184 = vst [vmem:[#allocation19_spill] sm:$0xff] %v5274_v55 }
 0x396   :  { %vm5220_vm3 = vmand %vm5173_vm10, %vm8166_vm2  ;;  %vm8178_vm2 = vnez %v8138_v53  ;;  %v5290_v53 = vsel %vm5201_vm9, 1.0, %v7963_v0  ;;  %v5327_v40 = vsel %vm5181_vm5, 1.0, %v7963_v0 }
 0x397   :  { %vm5242_vm15 = vmand %vm5181_vm5, %vm8172_vm14  ;;  %v5261_v47 = vsel %vm8178_vm2, 1.0, %v7963_v0  ;;  %vm8181_vm14 = vnez %v8143_v63  ;;  %vm8185_vm2 = vcmp.ge.s32.totalorder %v5021_v18, 0  ;;  %v5285_v24 = vsel %vm5220_vm3, 1.0, %v7963_v0  ;;  %8187 = vst [vmem:[#allocation21_spill] sm:$0xff] %v5290_v53 }
 0x398   :  { %8179 = vst [vmem:[#allocation18_spill] sm:$0xff] %v5261_v47  ;;  %vm5267_vm4 = vmand %vm8181_vm14, %vm8180_vm0  ;;  %v5307_v37 = vsel %vm5242_vm15, 1.0, %v7963_v0  ;;  %vm8192_vm3 = vcmp.lt.s32.totalorder %v4860_v15, 17  ;;  %vm8194_vm15 = vcmp.lt.s32.totalorder %v5037_v28, 16 }
 0x399   :  { %8186 = vst [vmem:[#allocation20_spill] sm:$0xff] %v5285_v24  ;;  %vm5299_vm0 = vmand %vm5159_vm13, %vm8188_vm6 }
 0x39a   :  { %8191 = vst [vmem:[#allocation22_spill] sm:$0xff] %v5307_v37  ;;  %vm5333_vm6 = vmand %vm5147_vm12, %vm8194_vm15  ;;  %vm1085_vm12 = vcmp.lt.s32.totalorder %v4860_v15, 15 }
 0x3a8   :  { %v4985_v56 = vpop.permute.xlu1 %1047  ;;  %v4993_v60 = vpop.permute.xlu0 %1043 }
 0x3ac   :  { %v4987_v57 = vpop.permute.xlu1 %1060  ;;  %v5000_v1 = vpop.permute.xlu0 %1096 }
 0x3b0   :  { %v4989_v58 = vpop.permute.xlu1 %1064  ;;  %v5013_v20 = vpop.permute.xlu0 %1100 }
 0x3b4   :  { %v4991_v59 = vpop.permute.xlu1 %1077  ;;  %v5039_v29 = vpop.permute.xlu0 %1113 }
 0x3b8   :  { %v4995_v61 = vpop.permute.xlu1 %1081  ;;  %v5109_v46 = vpop.permute.xlu0 %1117 }
 0x3bc   :  { %v4997_v62 = vpop.permute.xlu1 %1094  ;;  %v5163_v9 = vpop.permute.xlu0 %1130 }
 0x3c0   :  { %v5004_v4 = vpop.permute.xlu1 %1098  ;;  %v5251_v44 = vpop.permute.xlu0 %1134 }
 0x3c4   :  { %v5015_v21 = vpop.permute.xlu1 %1111  ;;  %v5371_v33 = vpop.permute.xlu0 %1147 }
 0x3c8   :  { %v5029_v25 = vpop.permute.xlu1 %1115 }
 0x3cc   :  { %v5064_v36 = vpop.permute.xlu1 %1128 }
 0x3d0   :  { %v5119_v49 = vpop.permute.xlu1 %1132 }
 0x3d4   :  { %v1046_v7 = vpop.permute.xlu1 %1045 }
 0x3d5   :  { %v1054_v19 = vsel %vm7953_vm1, %v4993_v60, %v1046_v7  ;;  %vm101_vm1 = vmand %vm5201_vm9, %vm8185_vm2 }
 0x3d6   :  { %v1057_v10 = vmul.f32 %v5233_v39, %v1054_v19  ;;  %vm8193_vm2 = vmmov %vm8192_vm3  ;;  %v5322_v19 = vsel %vm5173_vm10, 1.0, %v7963_v0 }
 0x3d8   :  { %v1050_v26 = vpop.permute.xlu1 %1049 }
 0x3d9   :  { %v1052_v23 = vsel %vm8192_vm3, %v4985_v56, %v1050_v26  ;;  %v1055_v16 = vsel %vm8193_vm2, %v1050_v26, %v4993_v60  ;;  %v5338_v60 = vsel %vm101_vm1, 1.0, %v7963_v0  ;;  %vm8198_vm3 = vmmov %vm8193_vm2  ;;  %vm8199_vm2 = vcmp.lt.s32.totalorder %v5045_v31, 16 }
 0x3da   :  { %8197 = vst [vmem:[#allocation23_spill] sm:$0xff] %v5338_v60  ;;  %v1053_v26 = vsel %vm8198_vm3, %v1046_v7, %v4985_v56  ;;  %vm5347_vm8 = vmand %vm5201_vm9, %vm8199_vm2  ;;  %vm8202_vm1 = vcmp.lt.s32.totalorder %v4860_v15, 1  ;;  %vm8203_vm9 = vcmp.lt.s32.totalorder %v5027_v17, 16  ;;  %vm1136_vm3 = vcmp.lt.s32.totalorder %v4860_v15, 113 }
 0x3db   :  { %v1105_v3 = vsel %vm8202_vm1, %v4997_v62, %v5000_v1  ;;  %vm5367_vm15 = vmand %vm5173_vm10, %vm8203_vm9  ;;  %v1058_v17 = vmul.f32 %v5338_v60, %v1053_v26  ;;  %vm8209_vm10 = vcmp.lt.s32.totalorder %v5035_v27, 16  ;;  %vm1153_vm9 = vcmp.lt.s32.totalorder %v4860_v15, 112 }
 0x3dc   :  { %v1063_v52 = vpop.permute.xlu1 %1062  ;;  %vm5398_vm2 = vmand %vm5181_vm5, %vm8209_vm10  ;;  %vm8213_vm5 = vcmp.lt.s32.totalorder %v4860_v15, 127 }
 0x3dd   :  { %v1071_v2 = vsel %vm1068_vm7, %v4987_v57, %v1063_v52  ;;  %v1070_v6 = vsel %vm1068_vm7, %v1063_v52, %v4989_v58  ;;  %v1123_v22 = vsel %vm8213_vm5, %v5109_v46, %v5015_v21 }
 0x3de   :  { %v1074_v13 = vmul.f32 %v5249_v41, %v1071_v2  ;;  %v1075_v0 = vmul.f32 %v5290_v53, %v1070_v6  ;;  %v1056_v6 = vmul.f32 %v5285_v24, %v1055_v16 }
 0x3e0   :  { %v1067_v2 = vpop.permute.xlu1 %1066  ;;  %v4328_v41 = vpack.c.bf16 %v1074_v13, %v1057_v10 }
 0x3e1   :  { %v1069_v13 = vsel %vm1068_vm7, %v4989_v58, %v1067_v2  ;;  %v1072_v56 = vsel %vm1068_vm7, %v1067_v2, %v4987_v57  ;;  %v1059_v58 = vmul.f32 %v5307_v37, %v1052_v23  ;;  %v8206_v2 = vmov 0.0  }
 0x3e2   :  { %v1073_v10 = vmul.f32 %v5322_v19, %v1072_v56  ;;  %v1076_v57 = vmul.f32 %v5327_v40, %v1069_v13  ;;  %4329 = vmatprep.subr.bf16.mxu0 %v4328_v41  ;;  %v5381_v11 = vsel %vm5267_vm4, 1.0, %v8206_v2  ;;  %v5386_v53 = vsel %vm5299_vm0, 1.0, %v8206_v2  ;;  %vm8217_vm0 = vmmov %vm8213_vm5  ;;  %v1152_v41 = vpop.permute.xlu0 %1151 }
 0x3e3   :  { %8207 = vst [vmem:[#allocation24_spill] sm:$0xff] %v5381_v11  ;;  %8208 = vst [vmem:[#allocation25_spill] sm:$0xff] %v5386_v53  ;;  %v5392_v16 = vsel %vm5333_vm6, 1.0, %v8206_v2  ;;  %v5405_v5 = vsel %vm5347_vm8, 1.0, %v8206_v2  ;;  %v5410_v52 = vsel %vm5367_vm15, 1.0, %v8206_v2  ;;  %v1108_v13 = vmul.f32 %v5193_v32, %v1105_v3 }
 0x3e4   :  { %v4330_v51 = vpack.c.bf16 %v1073_v10, %v1056_v6  ;;  %v1080_v23 = vpop.permute.xlu1 %1079  ;;  %v4344_v26 = vpack.c.bf16 %v1076_v57, %v1059_v58  ;;  %8212 = vst [vmem:[#allocation26_spill] sm:$0xff] %v5410_v52  ;;  %vm8214_vm4 = vcmp.ge.s32.totalorder %v5178_v12, 0  ;;  %v4346_v56 = vpack.c.bf16 %v1075_v0, %v1058_v17  ;;  %vm8220_vm6 = vmmov %vm8202_vm1 }
 0x3e5   :  { %vm5421_vm8 = vmand %vm8214_vm4, %vm225_vm11  ;;  %v1088_v7 = vsel %vm1085_vm12, %v4991_v59, %v1080_v23  ;;  %v1121_v3 = vsel %vm8217_vm0, %v5039_v29, %v5029_v25  ;;  %v1087_v6 = vsel %vm1085_vm12, %v1080_v23, %v4995_v61  ;;  %v5439_v0 = vsel %vm5398_vm2, 1.0, %v8206_v2 }
 0x3e6   :  { %v1091_v12 = vmul.f32 %v5392_v16, %v1088_v7  ;;  %4331 = vmatpush1.bf16.msra.mxu0 %v4330_v51  ;;  %4345 = vmatprep.subr.bf16.mxu1 %v4344_v26  ;;  %8218 = vst [vmem:[#allocation27_spill] sm:$0xff] %v5439_v0  ;;  %vm8219_vm11 = vmmov %vm8202_vm1  ;;  %v1103_v58 = vsel %vm8220_vm6, %v5004_v4, %v5013_v20  ;;  %vm8223_vm2 = vcmp.ge.s32.totalorder %v5021_v18, 0  ;;  %vm8226_vm4 = vnez %v8141_v54 }
 0x3e7   :  { %v1106_v17 = vsel %vm8219_vm11, %v5013_v20, %v4997_v62  ;;  %v1104_v10 = vsel %vm8202_vm1, %v5000_v1, %v5004_v4  ;;  %4347 = vmatpush1.bf16.msra.mxu1 %v4346_v56  ;;  %vm8221_vm15 = vmmov %vm8217_vm0  ;;  %v1127_v62 = vmul.f32 %v5228_v38, %v1123_v22  ;;  %v1125_v51 = vmul.f32 %v5256_v45, %v1121_v3 }
 0x3e8   :  { %v1122_v57 = vsel %vm8221_vm15, %v5015_v21, %v5039_v29  ;;  %vm8222_vm10 = vmmov %vm8217_vm0  ;;  %v1084_v1 = vpop.permute.xlu1 %1083  ;;  %v4332_v4 = vpack.c.bf16 %v1108_v13, %v1091_v12  ;;  %v1092_v23 = vmul.f32 %v5405_v5, %v1087_v6  ;;  %v1107_v29 = vmul.f32 %v5188_v30, %v1106_v17 }
 0x3e9   :  { %v1120_v20 = vsel %vm8222_vm10, %v5029_v25, %v5109_v46  ;;  %vm233_vm5 = vmand %vm5421_vm8, %vm8223_vm2  ;;  %v1086_v21 = vsel %vm1085_vm12, %v4995_v61, %v1084_v1  ;;  %v1089_v25 = vsel %vm1085_vm12, %v1084_v1, %v4991_v59  ;;  %v1110_v18 = vmul.f32 %v5208_v34, %v1103_v58  ;;  %v1165_v1 = vpop.permute.xlu0 %1164 }
 0x3ea   :  { %v1090_v46 = vmul.f32 %v5410_v52, %v1089_v25  ;;  %v1093_v26 = vmul.f32 %v5439_v0, %v1086_v21  ;;  %4333 = vmatprep.subr.bf16.mxu0 %v4332_v4  ;;  %v1109_v13 = vmul.f32 %v5199_v14, %v1104_v10  ;;  %v1124_v22 = vmul.f32 %v5213_v35, %v1122_v57 }
 0x3eb   :  { %v5482_v56 = vsel %vm233_vm5, 1.0, %v8206_v2  ;;  %v5487_v59 = vsel %vm8181_vm14, 1.0, %v8206_v2  ;;  %v1126_v61 = vmul.f32 %v5261_v47, %v1120_v20  ;;  %v4352_v12 = vpack.c.bf16 %v1127_v62, %v4915_v50 }
 0x3ec   :  { %8224 = vst [vmem:[#allocation28_spill] sm:$0xff] %v5482_v56  ;;  %8225 = vst [vmem:[#allocation29_spill] sm:$0xff] %v5487_v59  ;;  %v4334_v7 = vpack.c.bf16 %v1107_v29, %v1090_v46  ;;  %v1146_v3 = vpop.permute.xlu1 %1145  ;;  %v4348_v6 = vpack.c.bf16 %v1110_v18, %v1093_v26  ;;  %v1140_v17 = vsel %vm1136_vm3, %v5251_v44, %v5064_v36  ;;  %v5505_v50 = vsel %vm8226_vm4, 1.0, %v8206_v2 }
 0x3ed   :  { %v4350_v58 = vpack.c.bf16 %v1109_v13, %v1092_v23  ;;  %v1157_v10 = vsel %vm1153_vm9, %v1152_v41, %v1146_v3  ;;  %v4336_v57 = vpack.c.bf16 %v1125_v51, %v4909_v48  ;;  %v1138_v20 = vsel %vm1136_vm3, %v5163_v9, %v5119_v49  ;;  %8227 = vst [vmem:[#allocation30_spill] sm:$0xff] %v5505_v50 }
 0x3ee   :  { %v1156_v62 = vsel %vm1153_vm9, %v1146_v3, %v5371_v33  ;;  %v1161_v4 = vmul.f32 %v5487_v59, %v1157_v10  ;;  %4335 = vmatpush1.bf16.msra.mxu0 %v4334_v7  ;;  %4349 = vmatprep.subr.bf16.mxu1 %v4348_v6  ;;  %v1137_v48 = vsel %vm1136_vm3, %v5119_v49, %v5251_v44  ;;  %v5518_v51 = vsel %vm5159_vm13, 1.0, %v8206_v2  ;;  %v8234_v3 = vld [vmem:[#allocation10_spill] sm:$0xff] }
 0x3ef   :  { %4337 = vmatprep.subr.bf16.mxu0 %v4336_v57  ;;  %4351 = vmatpush1.bf16.msra.mxu1 %v4350_v58  ;;  %8228 = vst [vmem:[#allocation31_spill] sm:$0xff] %v5518_v51  ;;  %v5523_v23 = vsel %vm5421_vm8, 1.0, %v8206_v2  ;;  %vm1170_vm0 = vcmp.lt.s32.totalorder %v4860_v15, 111  ;;  %v4338_v21 = vpack.c.bf16 %v1124_v22, %v4898_v42  ;;  %v4354_v25 = vpack.c.bf16 %v1126_v61, %v4900_v43 }
 0x3f0   :  { %8229 = vst [vmem:[#allocation32_spill] sm:$0xff] %v5523_v23  ;;  %v1139_v49 = vsel %vm1136_vm3, %v5064_v36, %v5163_v9  ;;  %v1144_v44 = vmul.f32 %v5381_v11, %v1140_v17  ;;  %v1150_v29 = vpop.permute.xlu1 %1149  ;;  %4353 = vmatprep.subr.bf16.mxu1 %v4352_v12  ;;  %vm8230_vm11 = vcmp.lt.s32.totalorder %v5035_v27, 16  ;;  %v1142_v18 = vmul.f32 %v5386_v53, %v1138_v20  ;;  %v1179_v20 = vld [vmem:[%s7935_s3] sm:$0xff] }
 0x3f1   :  { %vm270_vm6 = vmand %vm8181_vm14, %vm8230_vm11  ;;  %v1158_v42 = vmul.f32 %v5505_v50, %v1156_v62  ;;  %v1154_v43 = vsel %vm1153_vm9, %v1150_v29, %v1152_v41  ;;  %v1155_v36 = vsel %vm1153_vm9, %v5371_v33, %v1150_v29  ;;  %v1143_v9 = vmul.f32 %v5482_v56, %v1137_v48  ;;  %v1169_v33 = vpop.permute.xlu0 %1168  ;;  %v1182_v48 = vld [vmem:[%s7935_s3 + $0x48] sm:$0xff] }
 0x3f2   :  { %v1159_v46 = vmul.f32 %v5518_v51, %v1155_v36  ;;  %v1160_v27 = vmul.f32 %v5523_v23, %v1154_v43  ;;  %4339 = vmatpush1.bf16.msra.mxu0 %v4338_v21  ;;  %v4356_v63 = vpack.c.bf16 %v1161_v4, %v1144_v44  ;;  %v1141_v26 = vmul.f32 %v5274_v55, %v1139_v49  ;;  %v1181_v4 = vld [vmem:[%s7935_s3 + $0x30] sm:$0xff] }
 0x3f3   :  { %4355 = vmatpush1.bf16.msra.mxu1 %v4354_v25  ;;  %vm8231_vm14 = vcmp.lt.s32.totalorder %v5045_v31, 16  ;;  %v5553_v41 = vsel %vm270_vm6, 1.0, %v8206_v2  ;;  %vm8233_vm15 = vcmp.lt.s32.totalorder %v5037_v28, 16  ;;  %vm8235_vm2 = vcmp.lt.s32.totalorder %v8234_v3, 16 }
 0x3f4   :  { %vm269_vm1 = vmand %vm5421_vm8, %vm8231_vm14  ;;  %8232 = vst [vmem:[#allocation33_spill] sm:$0xff] %v5553_v41  ;;  %v4358_v13 = vpack.c.bf16 %v1160_v27, %v1143_v9  ;;  %v1163_v22 = vpop.permute.xlu1 %1162  ;;  %4357 = vmatprep.subr.bf16.mxu1 %v4356_v63  ;;  %v4340_v61 = vpack.c.bf16 %v1159_v46, %v1142_v18  ;;  %v4342_v7 = vpack.c.bf16 %v1158_v42, %v1141_v26  ;;  %vm8263_vm8 = vcmp.lt.s32.totalorder %v4860_v15, 17 }
 0x3f5   :  { %vm268_vm10 = vmand %vm5159_vm13, %vm8233_vm15  ;;  %v1174_v31 = vsel %vm1170_vm0, %v1169_v33, %v1163_v22  ;;  %v5567_v6 = vsel %vm269_vm1, 1.0, %v8206_v2  ;;  %v1173_v54 = vsel %vm1170_vm0, %v1163_v22, %v1165_v1  ;;  %vm1207_vm13 = vcmask 588800   ;;  %v1195_v43 = vpop.permute.xlu0 %1194 }
 0x3f6   :  { %vm267_vm5 = vmand %vm8226_vm4, %vm8235_vm2  ;;  %4341 = vmatprep.subr.bf16.mxu0 %v4340_v61  ;;  %v1178_v39 = vmul.f32 %v5553_v41, %v1174_v31  ;;  %8236 = vst [vmem:[#allocation10_spill] sm:$0xff] %v5567_v6  ;;  %v5570_v28 = vsel %vm268_vm10, 1.0, %v8206_v2  ;;  %vm8317_vm2 = vcmp.lt.s32.totalorder %v4860_v15, 1 }
 0x3f7   :  { %4343 = vmatpush1.bf16.msra.mxu0 %v4342_v7  ;;  %4359 = vmatpush1.bf16.msra.mxu1 %v4358_v13  ;;  %8237 = vst [vmem:[#allocation34_spill] sm:$0xff] %v5570_v28  ;;  %v5573_v8 = vsel %vm267_vm5, 1.0, %v8206_v2  ;;  %vm8265_vm4 = vmmov %vm8263_vm8 }
 0x3f8   :  { %8238 = vst [vmem:[#allocation35_spill] sm:$0xff] %v5573_v8  ;;  %v1167_v12 = vpop.permute.xlu1 %1166  ;;  %1325 = vmatprep.subr.mxu1 %v1178_v39  ;;  %v1175_v62 = vmul.f32 %v5573_v8, %v1173_v54  ;;  %vm8267_vm11 = vmmov %vm8265_vm4 }
 0x3f9   :  { %v1171_v17 = vsel %vm1170_vm0, %v1167_v12, %v1169_v33  ;;  %v1172_v58 = vsel %vm1170_vm0, %v1165_v1, %v1167_v12  ;;  %v1180_v1 = vld [vmem:[%s7935_s3 + $0x18] sm:$0xff]  ;;  %vm8268_vm6 = vmmov %vm8265_vm4 }
 0x3fa   :  { %v1177_v10 = vmul.f32 %v5567_v6, %v1171_v17  ;;  %v1176_v57 = vmul.f32 %v5570_v28, %v1172_v58  ;;  %vm8270_vm14 = vmmov %vm8265_vm4 }
 0x3fb   :  { %vm8271_vm1 = vmmov %vm8265_vm4 }
 0x3fc   :  { %1236 = vmatprep.subr.mxu0 %v1176_v57  ;;  %1326 = vmatpush1.msra.mxu1 %v1177_v10  ;;  %vm8272_vm15 = vmmov %vm8271_vm1 }
 0x3fd   :  { %1237 = vmatpush1.msra.mxu0 %v1175_v62  ;;  %4079 = vmatmul.mubr.msk.f32.vlgmr.msra.gmra.mrb[4].mxu1 %vm1207_vm13, %v1179_v20  ;;  %vm8273_vm10 = vmmov %vm8271_vm1 }
 0x3fe   :  { %4075 = vmatmul.mubr.msk.f32.vlgmr.msra.gmra.mrb[4].mxu0 %vm1207_vm13, %v1179_v20  ;;  %1379 = vmatprep.mubr.f32.mxu1 %v8206_v2  ;;  %vm8318_vm5 = vmmov %vm8317_vm2 }
 0x3ff   :  { %1290 = vmatprep.mubr.f32.mxu0 %v8206_v2 }
 0x401   :  { %4080 = vmatmul.mubr.msk.f32.gmra.mrb[6].mxu1 %vm1207_vm13, %v1180_v1 }
 0x402   :  { %4076 = vmatmul.mubr.msk.f32.gmra.mrb[6].mxu0 %vm1207_vm13, %v1180_v1  ;;  %1385 = vmatprep.mubr.f32.mxu1 %v8206_v2 }
 0x403   :  { %1296 = vmatprep.mubr.f32.mxu0 %v8206_v2 }
 0x405   :  { %4081 = vmatmul.mubr.msk.f32.gmra.mrb[8].mxu1 %vm1207_vm13, %v1181_v4 }
 0x406   :  { %4077 = vmatmul.mubr.msk.f32.gmra.mrb[8].mxu0 %vm1207_vm13, %v1181_v4  ;;  %1391 = vmatprep.mubr.f32.mxu1 %v8206_v2 }
 0x407   :  { %1302 = vmatprep.mubr.f32.mxu0 %v8206_v2 }
 0x409   :  { %4082 = vmatmul.mubr.msk.f32.gmra.mrb[10].mxu1 %vm1207_vm13, %v1182_v48  ;;  %v1190_v21 = vpop.permute.xlu1 %1189 }
 0x40a   :  { %4078 = vmatmul.mubr.msk.f32.gmra.mrb[10].mxu0 %vm1207_vm13, %v1182_v48 }
 0x4d0   :  { %v1375_v25 = vpop.f32.mrb[4].mxu1 }
 0x4d1   :  { %v1286_v49 = vpop.f32.mrb[4].mxu0  ;;  %v1376_v44 = vadd.f32 %v1375_v25, %v1190_v21  ;;  %v1377_v29 = vpop.f32.mrb[5].mxu1 }
 0x4d2   :  { %v1287_v18 = vadd.f32 %v1286_v49, %v1190_v21  ;;  %v1288_v42 = vpop.f32.mrb[5].mxu0  ;;  %v1378_v1 = vadd.f32 %v1377_v29, %v1190_v21 }
 0x4d3   :  { %v5612_v46 = vmax.f32 %v1376_v44, 0.0  ;;  %v1289_v20 = vadd.f32 %v1288_v42, %v1190_v21  ;;  %v5752_v21 = vpop.permute.xlu1 %1199 }
 0x4d4   :  { %v5610_v36 = vmax.f32 %v1287_v18, 0.0  ;;  %v1381_v9 = vpop.f32.mrb[6].mxu1  ;;  %v5706_v48 = vmax.f32 %v1378_v1, 0.0 }
 0x4d5   :  { %8240 = vst [vmem:[#allocation37_spill] sm:$0xff] %v5612_v46  ;;  %v1292_v27 = vpop.f32.mrb[6].mxu0  ;;  %v1383_v63 = vpop.f32.mrb[7].mxu1  ;;  %v1382_v26 = vadd.f32 %v1381_v9, %v1195_v43  ;;  %v5700_v62 = vmax.f32 %v1289_v20, 0.0 }
 0x4d6   :  { %8239 = vst [vmem:[#allocation36_spill] sm:$0xff] %v5610_v36  ;;  %v1293_v33 = vadd.f32 %v1292_v27, %v1195_v43  ;;  %v1294_v13 = vpop.f32.mrb[7].mxu0  ;;  %1414 = vrot.lane.b32.xlu0 %v5610_v36, %s4764_s18  ;;  %v1384_v25 = vadd.f32 %v1383_v63, %v1195_v43 }
 0x4d7   :  { %v5616_v22 = vmax.f32 %v1382_v26, 0.0  ;;  %v1295_v4 = vadd.f32 %v1294_v13, %v1195_v43  ;;  %v5762_v29 = vpop.permute.xlu1 %1204 }
 0x4d8   :  { %v5618_v61 = vmax.f32 %v1293_v33, 0.0  ;;  %v5620_v7 = vpop.f32.mrb[8].mxu1  ;;  %v5714_v44 = vmax.f32 %v1384_v25, 0.0 }
 0x4d9   :  { %8241 = vst [vmem:[#allocation38_spill] sm:$0xff] %v5616_v22  ;;  %v5622_v3 = vpop.f32.mrb[8].mxu0  ;;  %v5624_v31 = vpop.f32.mrb[9].mxu1  ;;  %v5708_v49 = vmax.f32 %v1295_v4, 0.0  ;;  %v1388_v26 = vadd.f32 %v5620_v7, %v5752_v21 }
 0x4da   :  { %8242 = vst [vmem:[#allocation39_spill] sm:$0xff] %v5618_v61  ;;  %v5628_v54 = vpop.f32.mrb[9].mxu0  ;;  %1430 = vrot.lane.b32.xlu0 %v5612_v46, %s4764_s18  ;;  %1416 = vrot.lane.b32.xlu1 %v5618_v61, %s4764_s18  ;;  %v1299_v9 = vadd.f32 %v5622_v3, %v5752_v21 }
 0x4db   :  { %v5802_v1 = vmax.f32 %v1388_v26, 0.0 }
 0x4dc   :  { %v5636_v17 = vpop.f32.mrb[10].mxu1  ;;  %v5790_v33 = vmax.f32 %v1299_v9, 0.0 }
 0x4dd   :  { %v5638_v58 = vpop.f32.mrb[10].mxu0  ;;  %v5640_v10 = vpop.f32.mrb[11].mxu1  ;;  %8244 = vst [vmem:[#allocation41_spill] sm:$0xff] %v5802_v1  ;;  %v1394_v7 = vadd.f32 %v5636_v17, %v5762_v29 }
 0x4de   :  { %v5642_v57 = vpop.f32.mrb[11].mxu0  ;;  %1478 = vrot.lane.b32.xlu0 %v5610_v36, %s4765_s19  ;;  %1432 = vrot.lane.b32.xlu1 %v5616_v22, %s4764_s18  ;;  %8243 = vst [vmem:[#allocation40_spill] sm:$0xff] %v5790_v33  ;;  %v1305_v13 = vadd.f32 %v5638_v58, %v5762_v29 }
 0x4df   :  { %v5816_v9 = vmax.f32 %v1394_v7, 0.0 }
 0x4e0   :  { %v5806_v4 = vmax.f32 %v1305_v13, 0.0 }
 0x4e1   :  { %8246 = vst [vmem:[#allocation43_spill] sm:$0xff] %v5816_v9 }
 0x4e2   :  { %1494 = vrot.lane.b32.xlu0 %v5612_v46, %s4765_s19  ;;  %1480 = vrot.lane.b32.xlu1 %v5618_v61, %s4765_s19  ;;  %8245 = vst [vmem:[#allocation42_spill] sm:$0xff] %v5806_v4 }
 0x4e6   :  { %1542 = vrot.lane.b32.xlu0 %v5610_v36, %s4767_s21  ;;  %1496 = vrot.lane.b32.xlu1 %v5616_v22, %s4765_s19 }
 0x4ea   :  { %1558 = vrot.lane.b32.xlu0 %v5612_v46, %s4767_s21  ;;  %1544 = vrot.lane.b32.xlu1 %v5618_v61, %s4767_s21 }
 0x4ee   :  { %1606 = vrot.lane.b32.xlu0 %v5610_v36, %s4766_s20  ;;  %1560 = vrot.lane.b32.xlu1 %v5616_v22, %s4767_s21 }
 0x4f2   :  { %1622 = vrot.lane.b32.xlu0 %v5612_v46, %s4766_s20  ;;  %1608 = vrot.lane.b32.xlu1 %v5618_v61, %s4766_s20 }
 0x4f6   :  { %1670 = vrot.lane.b32.xlu0 %v5610_v36, %s4768_s22  ;;  %1624 = vrot.lane.b32.xlu1 %v5616_v22, %s4766_s20 }
 0x4fa   :  { %1686 = vrot.lane.b32.xlu0 %v5612_v46, %s4768_s22  ;;  %1672 = vrot.lane.b32.xlu1 %v5618_v61, %s4768_s22 }
 0x4fe   :  { %1734 = vrot.lane.b32.xlu0 %v5610_v36, %s4769_s23  ;;  %1688 = vrot.lane.b32.xlu1 %v5616_v22, %s4768_s22 }
 0x502   :  { %1750 = vrot.lane.b32.xlu0 %v5612_v46, %s4769_s23  ;;  %1736 = vrot.lane.b32.xlu1 %v5618_v61, %s4769_s23 }
 0x506   :  { %1798 = vrot.lane.b32.xlu0 %v5610_v36, %s4770_s24  ;;  %1752 = vrot.lane.b32.xlu1 %v5616_v22, %s4769_s23 }
 0x50a   :  { %1814 = vrot.lane.b32.xlu0 %v5612_v46, %s4770_s24  ;;  %1800 = vrot.lane.b32.xlu1 %v5618_v61, %s4770_s24 }
 0x50e   :  { %1862 = vrot.lane.b32.xlu0 %v5610_v36, %s4771_s25  ;;  %1816 = vrot.lane.b32.xlu1 %v5616_v22, %s4770_s24 }
 0x512   :  { %1878 = vrot.lane.b32.xlu0 %v5612_v46, %s4771_s25  ;;  %1864 = vrot.lane.b32.xlu1 %v5618_v61, %s4771_s25 }
 0x516   :  { %1422 = vrot.lane.b32.xlu0 %v5700_v62, %s4764_s18  ;;  %1880 = vrot.lane.b32.xlu1 %v5616_v22, %s4771_s25 }
 0x51a   :  { %1438 = vrot.lane.b32.xlu0 %v5706_v48, %s4764_s18  ;;  %1424 = vrot.lane.b32.xlu1 %v5708_v49, %s4764_s18 }
 0x51e   :  { %1486 = vrot.lane.b32.xlu0 %v5700_v62, %s4765_s19  ;;  %1440 = vrot.lane.b32.xlu1 %v5714_v44, %s4764_s18 }
 0x522   :  { %1502 = vrot.lane.b32.xlu0 %v5706_v48, %s4765_s19  ;;  %1488 = vrot.lane.b32.xlu1 %v5708_v49, %s4765_s19 }
 0x526   :  { %1550 = vrot.lane.b32.xlu0 %v5700_v62, %s4767_s21  ;;  %1504 = vrot.lane.b32.xlu1 %v5714_v44, %s4765_s19 }
 0x52a   :  { %1566 = vrot.lane.b32.xlu0 %v5706_v48, %s4767_s21  ;;  %1552 = vrot.lane.b32.xlu1 %v5708_v49, %s4767_s21 }
 0x52e   :  { %1614 = vrot.lane.b32.xlu0 %v5700_v62, %s4766_s20  ;;  %1568 = vrot.lane.b32.xlu1 %v5714_v44, %s4767_s21 }
 0x532   :  { %1630 = vrot.lane.b32.xlu0 %v5706_v48, %s4766_s20  ;;  %1616 = vrot.lane.b32.xlu1 %v5708_v49, %s4766_s20 }
 0x536   :  { %1678 = vrot.lane.b32.xlu0 %v5700_v62, %s4768_s22  ;;  %1632 = vrot.lane.b32.xlu1 %v5714_v44, %s4766_s20 }
 0x53a   :  { %1694 = vrot.lane.b32.xlu0 %v5706_v48, %s4768_s22  ;;  %1680 = vrot.lane.b32.xlu1 %v5708_v49, %s4768_s22 }
 0x53e   :  { %1742 = vrot.lane.b32.xlu0 %v5700_v62, %s4769_s23  ;;  %1696 = vrot.lane.b32.xlu1 %v5714_v44, %s4768_s22 }
 0x542   :  { %1758 = vrot.lane.b32.xlu0 %v5706_v48, %s4769_s23  ;;  %1744 = vrot.lane.b32.xlu1 %v5708_v49, %s4769_s23 }
 0x546   :  { %1806 = vrot.lane.b32.xlu0 %v5700_v62, %s4770_s24  ;;  %1760 = vrot.lane.b32.xlu1 %v5714_v44, %s4769_s23 }
 0x548   :  { %v5764_v18 = vpop.permute.xlu0 %1414 }
 0x54a   :  { %1822 = vrot.lane.b32.xlu0 %v5706_v48, %s4770_s24  ;;  %1808 = vrot.lane.b32.xlu1 %v5708_v49, %s4770_s24 }
 0x54c   :  { %v5770_v42 = vpop.permute.xlu1 %1416  ;;  %v5772_v43 = vpop.permute.xlu0 %1430 }
 0x54e   :  { %1870 = vrot.lane.b32.xlu0 %v5700_v62, %s4771_s25  ;;  %1824 = vrot.lane.b32.xlu1 %v5714_v44, %s4770_s24 }
 0x550   :  { %v5780_v27 = vpop.permute.xlu1 %1432  ;;  %v5782_v63 = vpop.permute.xlu0 %1478 }
 0x552   :  { %1886 = vrot.lane.b32.xlu0 %v5706_v48, %s4771_s25  ;;  %1872 = vrot.lane.b32.xlu1 %v5708_v49, %s4771_s25 }
 0x554   :  { %v5794_v20 = vpop.permute.xlu1 %1480  ;;  %v5796_v3 = vpop.permute.xlu0 %1494 }
 0x556   :  { %1418 = vrot.lane.b32.xlu0 %v5790_v33, %s4764_s18  ;;  %1888 = vrot.lane.b32.xlu1 %v5714_v44, %s4771_s25 }
 0x558   :  { %v5808_v25 = vpop.permute.xlu1 %1496  ;;  %v5810_v58 = vpop.permute.xlu0 %1542 }
 0x55a   :  { %1434 = vrot.lane.b32.xlu0 %v5802_v1, %s4764_s18  ;;  %1420 = vrot.lane.b32.xlu1 %v5806_v4, %s4764_s18 }
 0x55c   :  { %v5818_v39 = vpop.permute.xlu1 %1544  ;;  %v5820_v26 = vpop.permute.xlu0 %1558 }
 0x55e   :  { %1482 = vrot.lane.b32.xlu0 %v5790_v33, %s4765_s19  ;;  %1436 = vrot.lane.b32.xlu1 %v5816_v9, %s4764_s18 }
 0x560   :  { %v5826_v17 = vpop.permute.xlu1 %1560  ;;  %v5828_v13 = vpop.permute.xlu0 %1606 }
 0x562   :  { %1498 = vrot.lane.b32.xlu0 %v5802_v1, %s4765_s19  ;;  %1484 = vrot.lane.b32.xlu1 %v5806_v4, %s4765_s19 }
 0x564   :  { %v5834_v7 = vpop.permute.xlu1 %1608  ;;  %v5836_v12 = vpop.permute.xlu0 %1622 }
 0x566   :  { %1546 = vrot.lane.b32.xlu0 %v5790_v33, %s4767_s21  ;;  %1500 = vrot.lane.b32.xlu1 %v5816_v9, %s4765_s19 }
 0x568   :  { %v5842_v2 = vpop.permute.xlu1 %1624  ;;  %v5844_v41 = vpop.permute.xlu0 %1670 }
 0x569   :  { %8247 = vst [vmem:[#allocation44_spill] sm:$0xff] %v5844_v41 }
 0x56a   :  { %1562 = vrot.lane.b32.xlu0 %v5802_v1, %s4767_s21  ;;  %1548 = vrot.lane.b32.xlu1 %v5806_v4, %s4767_s21 }
 0x56c   :  { %v5850_v6 = vpop.permute.xlu1 %1672  ;;  %v5852_v28 = vpop.permute.xlu0 %1686 }
 0x56d   :  { %8248 = vst [vmem:[#allocation45_spill] sm:$0xff] %v5850_v6  ;;  %8249 = vst [vmem:[#allocation46_spill] sm:$0xff] %v5852_v28 }
 0x56e   :  { %1610 = vrot.lane.b32.xlu0 %v5790_v33, %s4766_s20  ;;  %1564 = vrot.lane.b32.xlu1 %v5816_v9, %s4767_s21 }
 0x570   :  { %v5858_v8 = vpop.permute.xlu1 %1688  ;;  %v5860_v59 = vpop.permute.xlu0 %1734 }
 0x571   :  { %8250 = vst [vmem:[#allocation47_spill] sm:$0xff] %v5858_v8  ;;  %8251 = vst [vmem:[#allocation48_spill] sm:$0xff] %v5860_v59  ;;  %v8266_v59 = vld [vmem:[#allocation15_spill] sm:$0xff] }
 0x572   :  { %1626 = vrot.lane.b32.xlu0 %v5802_v1, %s4766_s20  ;;  %1612 = vrot.lane.b32.xlu1 %v5806_v4, %s4766_s20 }
 0x574   :  { %v5866_v23 = vpop.permute.xlu1 %1736  ;;  %v5868_v51 = vpop.permute.xlu0 %1750 }
 0x575   :  { %8252 = vst [vmem:[#allocation49_spill] sm:$0xff] %v5866_v23  ;;  %8253 = vst [vmem:[#allocation50_spill] sm:$0xff] %v5868_v51 }
 0x576   :  { %1674 = vrot.lane.b32.xlu0 %v5790_v33, %s4768_s22  ;;  %1628 = vrot.lane.b32.xlu1 %v5816_v9, %s4766_s20 }
 0x578   :  { %v5874_v46 = vpop.permute.xlu1 %1752  ;;  %v5876_v22 = vpop.permute.xlu0 %1798 }
 0x579   :  { %8254 = vst [vmem:[#allocation51_spill] sm:$0xff] %v5874_v46  ;;  %8255 = vst [vmem:[#allocation52_spill] sm:$0xff] %v5876_v22 }
 0x57a   :  { %1690 = vrot.lane.b32.xlu0 %v5802_v1, %s4768_s22  ;;  %1676 = vrot.lane.b32.xlu1 %v5806_v4, %s4768_s22 }
 0x57c   :  { %v5882_v50 = vpop.permute.xlu1 %1800  ;;  %v5884_v36 = vpop.permute.xlu0 %1814 }
 0x57d   :  { %8256 = vst [vmem:[#allocation53_spill] sm:$0xff] %v5882_v50  ;;  %8257 = vst [vmem:[#allocation54_spill] sm:$0xff] %v5884_v36 }
 0x57e   :  { %1738 = vrot.lane.b32.xlu0 %v5790_v33, %s4769_s23  ;;  %1692 = vrot.lane.b32.xlu1 %v5816_v9, %s4768_s22 }
 0x580   :  { %v5890_v61 = vpop.permute.xlu1 %1816  ;;  %v5892_v11 = vpop.permute.xlu0 %1862 }
 0x581   :  { %8258 = vst [vmem:[#allocation55_spill] sm:$0xff] %v5890_v61  ;;  %8259 = vst [vmem:[#allocation56_spill] sm:$0xff] %v5892_v11  ;;  %v1301_v61 = vadd.f32 %v5628_v54, %v5752_v21 }
 0x582   :  { %1754 = vrot.lane.b32.xlu0 %v5802_v1, %s4769_s23  ;;  %1740 = vrot.lane.b32.xlu1 %v5806_v4, %s4769_s23 }
 0x583   :  { %v5919_v56 = vmax.f32 %v1301_v61, 0.0 }
 0x584   :  { %v5898_v22 = vpop.permute.xlu1 %1864  ;;  %v5900_v50 = vpop.permute.xlu0 %1878 }
 0x585   :  { %8260 = vst [vmem:[#allocation57_spill] sm:$0xff] %v5898_v22  ;;  %8261 = vst [vmem:[#allocation58_spill] sm:$0xff] %v5900_v50  ;;  %v1390_v50 = vadd.f32 %v5624_v31, %v5752_v21 }
 0x586   :  { %1802 = vrot.lane.b32.xlu0 %v5790_v33, %s4770_s24  ;;  %1756 = vrot.lane.b32.xlu1 %v5816_v9, %s4769_s23  ;;  %8264 = vst [vmem:[#allocation60_spill] sm:$0xff] %v5919_v56 }
 0x588   :  { %v5908_v11 = vpop.permute.xlu1 %1880  ;;  %v1423_v36 = vpop.permute.xlu0 %1422 }
 0x589   :  { %8262 = vst [vmem:[#allocation59_spill] sm:$0xff] %v5908_v11  ;;  %v1454_v22 = vsel %vm8263_vm8, %v5764_v18, %v1423_v36  ;;  %v1307_v11 = vadd.f32 %v5642_v57, %v5762_v29  ;;  %v5938_v57 = vmax.f32 %v1390_v50, 0.0  ;;  %vm8319_vm8 = vmmov %vm8271_vm1 }
 0x58a   :  { %1818 = vrot.lane.b32.xlu0 %v5802_v1, %s4770_s24  ;;  %1804 = vrot.lane.b32.xlu1 %v5806_v4, %s4770_s24  ;;  %v1463_v23 = vmul.f32 %v8266_v59, %v1454_v22  ;;  %v1396_v22 = vadd.f32 %v5640_v10, %v5762_v29 }
 0x58b   :  { %8269 = vst [vmem:[#allocation61_spill] sm:$0xff] %v5938_v57  ;;  %v5947_v47 = vmax.f32 %v1307_v11, 0.0 }
 0x58c   :  { %v1425_v53 = vpop.permute.xlu1 %1424  ;;  %v1439_v54 = vpop.permute.xlu0 %1438 }
 0x58d   :  { %v1455_v55 = vsel %vm8265_vm4, %v5770_v42, %v1425_v53  ;;  %v1446_v61 = vsel %vm8267_vm11, %v5772_v43, %v1439_v54  ;;  %v1458_v31 = vsel %vm8268_vm6, %v1439_v54, %v5764_v18  ;;  %v1450_v18 = vsel %vm8271_vm1, %v1423_v36, %v5772_v43  ;;  %vm8320_vm4 = vmmov %vm8317_vm2 }
 0x58e   :  { %v1467_v46 = vmul.f32 %v8266_v59, %v1455_v55  ;;  %1426 = vrot.lane.b32.xlu0 %v5919_v56, %s4764_s18  ;;  %1820 = vrot.lane.b32.xlu1 %v5816_v9, %s4770_s24  ;;  %v1451_v55 = vsel %vm8270_vm14, %v1425_v53, %v5780_v27  ;;  %v1462_v53 = vmul.f32 %v5285_v24, %v1458_v31  ;;  %v5971_v54 = vmax.f32 %v1396_v22, 0.0  ;;  %vm8321_vm11 = vmmov %vm8317_vm2 }
 0x58f   :  { %v1465_v29 = vmul.f32 %v5307_v37, %v1446_v61  ;;  %v1468_v36 = vmul.f32 %v5338_v60, %v1451_v55  ;;  %v1464_v61 = vmul.f32 %v5338_v60, %v1450_v18  ;;  %vm8322_vm6 = vmmov %vm8271_vm1 }
 0x590   :  { %v1441_v21 = vpop.permute.xlu1 %1440  ;;  %v5945_v51 = vpop.permute.xlu0 %1486  ;;  %v4360_v38 = vpack.c.bf16 %v1467_v46, %v1463_v23  ;;  %8274 = vst [vmem:[#allocation62_spill] sm:$0xff] %v5971_v54  ;;  %vm8323_vm14 = vmmov %vm8271_vm1 }
 0x591   :  { %v1447_v50 = vsel %vm8272_vm15, %v5780_v27, %v1441_v21  ;;  %v1459_v10 = vsel %vm8273_vm10, %v1441_v21, %v5770_v42  ;;  %v4434_v31 = vpack.c.bf16 %v1468_v36, %v1464_v61  ;;  %vm8324_vm1 = vmmov %vm8317_vm2 }
 0x592   :  { %v1466_v23 = vmul.f32 %v5285_v24, %v1459_v10  ;;  %v1469_v11 = vmul.f32 %v5307_v37, %v1447_v50  ;;  %1442 = vrot.lane.b32.xlu0 %v5938_v57, %s4764_s18  ;;  %1428 = vrot.lane.b32.xlu1 %v5947_v47, %s4764_s18  ;;  %vm8325_vm15 = vmmov %vm8324_vm1 }
 0x593   :  { %4361 = vmatprep.subr.bf16.mxu0 %v4360_v38  ;;  %vm8326_vm10 = vmmov %vm8322_vm6 }
 0x594   :  { %v4362_v46 = vpack.c.bf16 %v1466_v23, %v1462_v53  ;;  %v5967_v43 = vpop.permute.xlu1 %1488  ;;  %v5969_v42 = vpop.permute.xlu0 %1502  ;;  %v4432_v27 = vpack.c.bf16 %v1469_v11, %v1465_v29 }
 0x596   :  { %1490 = vrot.lane.b32.xlu0 %v5919_v56, %s4765_s19  ;;  %1444 = vrot.lane.b32.xlu1 %v5971_v54, %s4764_s18 }
 0x597   :  { %4363 = vmatpush1.bf16.msra.mxu0 %v4362_v46  ;;  %4433 = vmatprep.subr.bf16.mxu1 %v4432_v27 }
 0x598   :  { %v5978_v38 = vpop.permute.xlu1 %1504  ;;  %v5980_v55 = vpop.permute.xlu0 %1550  ;;  %4435 = vmatpush1.bf16.msra.mxu1 %v4434_v31 }
 0x59a   :  { %1506 = vrot.lane.b32.xlu0 %v5938_v57, %s4765_s19  ;;  %1492 = vrot.lane.b32.xlu1 %v5947_v47, %s4765_s19 }
 0x59c   :  { %v5986_v22 = vpop.permute.xlu1 %1552  ;;  %v5988_v21 = vpop.permute.xlu0 %1566 }
 0x59e   :  { %1554 = vrot.lane.b32.xlu0 %v5919_v56, %s4767_s21  ;;  %1508 = vrot.lane.b32.xlu1 %v5971_v54, %s4765_s19 }
 0x5a0   :  { %v5994_v18 = vpop.permute.xlu1 %1568  ;;  %v5996_v50 = vpop.permute.xlu0 %1614 }
 0x5a2   :  { %1570 = vrot.lane.b32.xlu0 %v5938_v57, %s4767_s21  ;;  %1556 = vrot.lane.b32.xlu1 %v5947_v47, %s4767_s21 }
 0x5a4   :  { %v6002_v10 = vpop.permute.xlu1 %1616  ;;  %v6004_v53 = vpop.permute.xlu0 %1630 }
 0x5a6   :  { %1618 = vrot.lane.b32.xlu0 %v5919_v56, %s4766_s20  ;;  %1572 = vrot.lane.b32.xlu1 %v5971_v54, %s4767_s21 }
 0x5a8   :  { %v6010_v29 = vpop.permute.xlu1 %1632  ;;  %v6012_v23 = vpop.permute.xlu0 %1678 }
 0x5a9   :  { %8275 = vst [vmem:[#allocation63_spill] sm:$0xff] %v6010_v29  ;;  %8276 = vst [vmem:[#allocation64_spill] sm:$0xff] %v6012_v23 }
 0x5aa   :  { %1634 = vrot.lane.b32.xlu0 %v5938_v57, %s4766_s20  ;;  %1620 = vrot.lane.b32.xlu1 %v5947_v47, %s4766_s20 }
 0x5ac   :  { %v6018_v11 = vpop.permute.xlu1 %1680  ;;  %v6020_v36 = vpop.permute.xlu0 %1694 }
 0x5ad   :  { %8277 = vst [vmem:[#allocation65_spill] sm:$0xff] %v6018_v11  ;;  %8278 = vst [vmem:[#allocation66_spill] sm:$0xff] %v6020_v36 }
 0x5ae   :  { %1866 = vrot.lane.b32.xlu0 %v5790_v33, %s4771_s25  ;;  %1636 = vrot.lane.b32.xlu1 %v5971_v54, %s4766_s20 }
 0x5b0   :  { %v6026_v46 = vpop.permute.xlu1 %1696  ;;  %v6028_v27 = vpop.permute.xlu0 %1742 }
 0x5b1   :  { %8279 = vst [vmem:[#allocation67_spill] sm:$0xff] %v6026_v46  ;;  %8280 = vst [vmem:[#allocation68_spill] sm:$0xff] %v6028_v27 }
 0x5b2   :  { %1682 = vrot.lane.b32.xlu0 %v5919_v56, %s4768_s22  ;;  %1868 = vrot.lane.b32.xlu1 %v5806_v4, %s4771_s25 }
 0x5b4   :  { %v6034_v61 = vpop.permute.xlu1 %1744  ;;  %v6036_v31 = vpop.permute.xlu0 %1758 }
 0x5b5   :  { %8281 = vst [vmem:[#allocation69_spill] sm:$0xff] %v6034_v61  ;;  %8282 = vst [vmem:[#allocation70_spill] sm:$0xff] %v6036_v31 }
 0x5b6   :  { %1698 = vrot.lane.b32.xlu0 %v5938_v57, %s4768_s22  ;;  %1884 = vrot.lane.b32.xlu1 %v5816_v9, %s4771_s25 }
 0x5b8   :  { %v6042_v36 = vpop.permute.xlu1 %1760  ;;  %v6044_v46 = vpop.permute.xlu0 %1806 }
 0x5b9   :  { %8283 = vst [vmem:[#allocation71_spill] sm:$0xff] %v6042_v36  ;;  %8284 = vst [vmem:[#allocation72_spill] sm:$0xff] %v6044_v46 }
 0x5ba   :  { %1746 = vrot.lane.b32.xlu0 %v5919_v56, %s4769_s23  ;;  %1684 = vrot.lane.b32.xlu1 %v5947_v47, %s4768_s22 }
 0x5bc   :  { %v6050_v27 = vpop.permute.xlu1 %1808  ;;  %v6052_v61 = vpop.permute.xlu0 %1822 }
 0x5bd   :  { %8285 = vst [vmem:[#allocation73_spill] sm:$0xff] %v6050_v27  ;;  %8286 = vst [vmem:[#allocation74_spill] sm:$0xff] %v6052_v61 }
 0x5be   :  { %1762 = vrot.lane.b32.xlu0 %v5938_v57, %s4769_s23  ;;  %1700 = vrot.lane.b32.xlu1 %v5971_v54, %s4768_s22 }
 0x5c0   :  { %v6058_v31 = vpop.permute.xlu1 %1824  ;;  %v6060_v36 = vpop.permute.xlu0 %1870 }
 0x5c1   :  { %8287 = vst [vmem:[#allocation75_spill] sm:$0xff] %v6058_v31  ;;  %8288 = vst [vmem:[#allocation76_spill] sm:$0xff] %v6060_v36  ;;  %v1927_v36 = vld [vmem:[%s7935_s3 + $0x188] sm:$0xff] }
 0x5c2   :  { %1810 = vrot.lane.b32.xlu0 %v5919_v56, %s4770_s24  ;;  %1748 = vrot.lane.b32.xlu1 %v5947_v47, %s4769_s23 }
 0x5c3   :  { %2001 = vmatprep.mubr.f32.mxu0 %v1927_v36  ;;  %2143 = vmatprep.mubr.f32.mxu1 %v1927_v36  ;;  %v6104_v36 = vld [vmem:[%s7935_s3 + $0x190] sm:$0xff] }
 0x5c4   :  { %v6066_v46 = vpop.permute.xlu1 %1872  ;;  %v6068_v27 = vpop.permute.xlu0 %1886  ;;  %8293 = vst [vmem:[#allocation81_spill] sm:$0xff] %v6104_v36 }
 0x5c5   :  { %8289 = vst [vmem:[#allocation77_spill] sm:$0xff] %v6066_v46  ;;  %8290 = vst [vmem:[#allocation78_spill] sm:$0xff] %v6068_v27 }
 0x5c6   :  { %1826 = vrot.lane.b32.xlu0 %v5938_v57, %s4770_s24  ;;  %1764 = vrot.lane.b32.xlu1 %v5971_v54, %s4769_s23 }
 0x5c8   :  { %v6074_v61 = vpop.permute.xlu1 %1888  ;;  %v6076_v31 = vpop.permute.xlu0 %1418 }
 0x5c9   :  { %8291 = vst [vmem:[#allocation79_spill] sm:$0xff] %v6074_v61 }
 0x5ca   :  { %1874 = vrot.lane.b32.xlu0 %v5919_v56, %s4771_s25  ;;  %1812 = vrot.lane.b32.xlu1 %v5947_v47, %s4770_s24 }
 0x5cc   :  { %v6085_v27 = vpop.permute.xlu1 %1420  ;;  %v6087_v46 = vpop.permute.xlu0 %1434 }
 0x5ce   :  { %1882 = vrot.lane.b32.xlu0 %v5802_v1, %s4771_s25  ;;  %1828 = vrot.lane.b32.xlu1 %v5971_v54, %s4770_s24 }
 0x5d0   :  { %v6093_v61 = vpop.permute.xlu1 %1436  ;;  %v6095_v8 = vpop.permute.xlu0 %1482 }
 0x5d1   :  { %8292 = vst [vmem:[#allocation80_spill] sm:$0xff] %v6095_v8 }
 0x5d2   :  { %1890 = vrot.lane.b32.xlu0 %v5938_v57, %s4771_s25  ;;  %1876 = vrot.lane.b32.xlu1 %v5947_v47, %s4771_s25  ;;  %v1650_v57 = vsel %vm8325_vm15, %v6004_v53, %v5828_v13 }
 0x5d4   :  { %v6106_v6 = vpop.permute.xlu1 %1484  ;;  %v6108_v11 = vpop.permute.xlu0 %1498 }
 0x5d5   :  { %8294 = vst [vmem:[#allocation82_spill] sm:$0xff] %v6106_v6  ;;  %8295 = vst [vmem:[#allocation83_spill] sm:$0xff] %v6108_v11 }
 0x5d6   :  { %1931 = vperm.xlu0 %4668, %v6104_v36   ;;  %1892 = vrot.lane.b32.xlu1 %v5971_v54, %s4771_s25 }
 0x5d8   :  { %v6113_v45 = vpop.permute.xlu1 %1500  ;;  %v6115_v35 = vpop.permute.xlu0 %1546 }
 0x5d9   :  { %8296 = vst [vmem:[#allocation84_spill] sm:$0xff] %v6113_v45  ;;  %8297 = vst [vmem:[#allocation85_spill] sm:$0xff] %v6115_v35 }
 0x5dc   :  { %v6117_v41 = vpop.permute.xlu1 %1548  ;;  %v6119_v23 = vpop.permute.xlu0 %1562 }
 0x5dd   :  { %8298 = vst [vmem:[#allocation86_spill] sm:$0xff] %v6117_v41  ;;  %8299 = vst [vmem:[#allocation87_spill] sm:$0xff] %v6119_v23 }
 0x5e0   :  { %v6121_v28 = vpop.permute.xlu1 %1564  ;;  %v6123_v29 = vpop.permute.xlu0 %1610 }
 0x5e1   :  { %8300 = vst [vmem:[#allocation88_spill] sm:$0xff] %v6121_v28  ;;  %8301 = vst [vmem:[#allocation89_spill] sm:$0xff] %v6123_v29 }
 0x5e4   :  { %v6125_v6 = vpop.permute.xlu1 %1612  ;;  %v6127_v11 = vpop.permute.xlu0 %1626 }
 0x5e5   :  { %8302 = vst [vmem:[#allocation90_spill] sm:$0xff] %v6125_v6 }
 0x5e8   :  { %v6129_v36 = vpop.permute.xlu1 %1628  ;;  %v6131_v8 = vpop.permute.xlu0 %1674 }
 0x5e9   :  { %8303 = vst [vmem:[#allocation91_spill] sm:$0xff] %v6131_v8  ;;  %v1515_v8 = vsel %vm1068_vm7, %v5967_v43, %v5808_v25 }
 0x5ec   :  { %v6133_v34 = vpop.permute.xlu1 %1676  ;;  %v6135_v45 = vpop.permute.xlu0 %1690 }
 0x5ed   :  { %8304 = vst [vmem:[#allocation92_spill] sm:$0xff] %v6133_v34  ;;  %8305 = vst [vmem:[#allocation93_spill] sm:$0xff] %v6135_v45  ;;  %v1518_v34 = vsel %vm1068_vm7, %v5782_v63, %v5945_v51 }
 0x5f0   :  { %v6137_v35 = vpop.permute.xlu1 %1692  ;;  %v6139_v41 = vpop.permute.xlu0 %1738 }
 0x5f1   :  { %8306 = vst [vmem:[#allocation94_spill] sm:$0xff] %v6137_v35  ;;  %8307 = vst [vmem:[#allocation95_spill] sm:$0xff] %v6139_v41  ;;  %v8312_v41 = vld [vmem:[#allocation21_spill] sm:$0xff] }
 0x5f2   :  { %v6174_v45 = vmul.f32 %v8312_v41, %v1515_v8  ;;  %v8315_v8 = vld [vmem:[#allocation16_spill] sm:$0xff] }
 0x5f3   :  { %v6193_v1 = vmul.f32 %v8315_v8, %v1518_v34  ;;  %v1579_v34 = vsel %vm1085_vm12, %v5986_v22, %v5826_v17 }
 0x5f4   :  { %v6141_v23 = vpop.permute.xlu1 %1740  ;;  %v6143_v28 = vpop.permute.xlu0 %1754  ;;  %v6247_v9 = vmul.f32 %v5405_v5, %v1579_v34  ;;  %v1575_v34 = vsel %vm1085_vm12, %v5826_v17, %v5994_v18  ;;  %v1642_v17 = vsel %vm8318_vm5, %v5996_v50, %v5836_v12 }
 0x5f5   :  { %8308 = vst [vmem:[#allocation96_spill] sm:$0xff] %v6141_v23  ;;  %8309 = vst [vmem:[#allocation97_spill] sm:$0xff] %v6143_v28  ;;  %v1510_v23 = vsel %vm1068_vm7, %v5796_v3, %v5969_v42  ;;  %v6298_v33 = vmul.f32 %v5439_v0, %v1575_v34  ;;  %v6306_v4 = vmul.f32 %v5199_v14, %v1642_v17 }
 0x5f8   :  { %v6145_v29 = vpop.permute.xlu1 %1756  ;;  %v6147_v6 = vpop.permute.xlu0 %1802 }
 0x5f9   :  { %8310 = vst [vmem:[#allocation98_spill] sm:$0xff] %v6145_v29  ;;  %8311 = vst [vmem:[#allocation99_spill] sm:$0xff] %v6147_v6  ;;  %v1514_v6 = vsel %vm1068_vm7, %v5945_v51, %v5796_v3  ;;  %v1519_v29 = vsel %vm1068_vm7, %v5794_v20, %v5967_v43  ;;  %v1522_v51 = vsel %vm1068_vm7, %v5969_v42, %v5782_v63 }
 0x5fa   :  { %v1523_v43 = vsel %vm1068_vm7, %v5978_v38, %v5794_v20  ;;  %v1511_v3 = vsel %vm1068_vm7, %v5808_v25, %v5978_v38  ;;  %v6204_v20 = vmul.f32 %v8312_v41, %v1514_v6  ;;  %v1583_v25 = vsel %vm1085_vm12, %v5818_v39, %v5986_v22 }
 0x5fb   :  { %v6218_v38 = vmul.f32 %v5322_v19, %v1522_v51  ;;  %v6221_v42 = vmul.f32 %v5327_v40, %v1510_v23  ;;  %v6224_v6 = vmul.f32 %v5322_v19, %v1523_v43  ;;  %v1578_v22 = vsel %vm1085_vm12, %v5980_v55, %v5820_v26 }
 0x5fc   :  { %v6188_v28 = vpop.permute.xlu1 %1804  ;;  %v6190_v35 = vpop.permute.xlu0 %1818  ;;  %v1587_v23 = vsel %vm1085_vm12, %v5994_v18, %v5818_v39  ;;  %v6244_v43 = vmul.f32 %v5392_v16, %v1583_v25 }
 0x5fd   :  { %8313 = vst [vmem:[#allocation21_spill] sm:$0xff] %v6188_v28  ;;  %8314 = vst [vmem:[#allocation100_spill] sm:$0xff] %v6190_v35  ;;  %v6207_v28 = vmul.f32 %v8315_v8, %v1519_v29  ;;  %v1582_v29 = vsel %vm1085_vm12, %v5810_v58, %v5980_v55  ;;  %v6233_v35 = vmul.f32 %v5327_v40, %v1511_v3 }
 0x5fe   :  { %v1574_v3 = vsel %vm1085_vm12, %v5820_v26, %v5988_v21  ;;  %v1586_v55 = vsel %vm1085_vm12, %v5988_v21, %v5810_v58  ;;  %v6260_v39 = vmul.f32 %v5392_v16, %v1582_v29  ;;  %v1646_v26 = vsel %vm8317_vm2, %v5828_v13, %v5996_v50  ;;  %vm8327_vm2 = vmmov %vm8322_vm6 }
 0x5ff   :  { %v6275_v21 = vmul.f32 %v5405_v5, %v1578_v22  ;;  %v6278_v29 = vmul.f32 %v5410_v52, %v1587_v23  ;;  %v6285_v18 = vmul.f32 %v5410_v52, %v1586_v55  ;;  %v4440_v23 = vpack.c.bf16 %v6233_v35, %v6221_v42  ;;  %vm8328_vm5 = vmmov %vm8327_vm2 }
 0x600   :  { %v1427_v51 = vpop.permute.xlu0 %1426  ;;  %v6257_v63 = vpop.permute.xlu1 %1820  ;;  %v6301_v50 = vmul.f32 %v5193_v32, %v1646_v26  ;;  %v1643_v35 = vsel %vm8320_vm4, %v6002_v10, %v5842_v2  ;;  %v1647_v42 = vsel %vm8321_vm11, %v5834_v7, %v6002_v10  ;;  %v1638_v10 = vsel %vm8324_vm1, %v5836_v12, %v6004_v53  ;;  %vm8330_vm4 = vmmov %vm8327_vm2 }
 0x601   :  { %8316 = vst [vmem:[#allocation101_spill] sm:$0xff] %v6257_v63  ;;  %v6288_v63 = vmul.f32 %v5439_v0, %v1574_v3  ;;  %v1456_v58 = vsel %vm8319_vm8, %v6076_v31, %v1427_v51  ;;  %v1452_v12 = vsel %vm8328_vm5, %v1427_v51, %v6087_v46  ;;  %vm8329_vm8 = vmmov %vm8327_vm2 }
 0x602   :  { %v1471_v17 = vmul.f32 %v8266_v59, %v1456_v58  ;;  %vm8334_vm11 = vmmov %vm8324_vm1 }
 0x604   :  { %v1443_v22 = vpop.permute.xlu0 %1442  ;;  %v1429_v55 = vpop.permute.xlu1 %1428 }
 0x605   :  { %v1457_v34 = vsel %vm8322_vm6, %v6085_v27, %v1429_v55  ;;  %v1453_v25 = vsel %vm8323_vm14, %v1429_v55, %v6093_v61  ;;  %v1448_v58 = vsel %vm8326_vm10, %v6087_v46, %v1443_v22  ;;  %v1460_v55 = vsel %vm8327_vm2, %v1443_v22, %v6076_v31  ;;  %vm8335_vm6 = vmmov %vm8324_vm1 }
 0x606   :  { %v1475_v3 = vmul.f32 %v8266_v59, %v1457_v34  ;;  %v6341_v34 = vmul.f32 %v5193_v32, %v1647_v42  ;;  %v6344_v59 = vmul.f32 %v5199_v14, %v1643_v35  ;;  %v1476_v54 = vmul.f32 %v5338_v60, %v1453_v25 }
 0x607   :  { %v1470_v35 = vmul.f32 %v5285_v24, %v1460_v55  ;;  %v1473_v42 = vmul.f32 %v5307_v37, %v1448_v58  ;;  %v6363_v25 = vmul.f32 %v5188_v30, %v1650_v57  ;;  %v8339_v57 = vld [vmem:[#allocation64_spill] sm:$0xff]  ;;  %vm8340_vm14 = vcmp.lt.s32.totalorder %v4860_v15, 127 }
 0x608   :  { %v1491_v26 = vpop.permute.xlu0 %1490  ;;  %v1445_v13 = vpop.permute.xlu1 %1444  ;;  %v4364_v53 = vpack.c.bf16 %v1475_v3, %v1471_v17  ;;  %v8332_v17 = vld [vmem:[#allocation80_spill] sm:$0xff]  ;;  %vm8344_vm1 = vmmov %vm8340_vm14 }
 0x609   :  { %v1449_v56 = vsel %vm8329_vm8, %v6093_v61, %v1445_v13  ;;  %v1461_v31 = vsel %vm8330_vm4, %v1445_v13, %v6085_v27  ;;  %v8331_v61 = vld [vmem:[#allocation12_spill] sm:$0xff]  ;;  %v1472_v27 = vmul.f32 %v5338_v60, %v1452_v12  ;;  %v1520_v13 = vsel %vm1068_vm7, %v8332_v17, %v1491_v26  ;;  %vm8352_vm15 = vmmov %vm8344_vm1 }
 0x60a   :  { %v1474_v46 = vmul.f32 %v5285_v24, %v1461_v31  ;;  %v1477_v51 = vmul.f32 %v5307_v37, %v1449_v56  ;;  %4365 = vmatprep.subr.bf16.mxu0 %v4364_v53  ;;  %v6366_v3 = vmul.f32 %v8331_v61, %v1638_v10  ;;  %v8333_v53 = vld [vmem:[#allocation63_spill] sm:$0xff]  ;;  %v8336_v37 = vld [vmem:[#allocation82_spill] sm:$0xff]  ;;  %vm8356_vm10 = vmmov %vm8344_vm1 }
 0x60b   :  { %v1639_v10 = vsel %vm8334_vm11, %v5842_v2, %v8333_v53  ;;  %v1651_v12 = vsel %vm8335_vm6, %v8333_v53, %v5834_v7  ;;  %v4438_v60 = vpack.c.bf16 %v1476_v54, %v1472_v27  ;;  %v8338_v2 = vld [vmem:[#allocation46_spill] sm:$0xff]  ;;  %v8341_v54 = vld [vmem:[#allocation83_spill] sm:$0xff]  ;;  %v8343_v53 = vld [vmem:[#allocation44_spill] sm:$0xff] }
 0x60c   :  { %v1507_v55 = vpop.permute.xlu0 %1506  ;;  %v4366_v31 = vpack.c.bf16 %v1474_v46, %v1470_v35  ;;  %v1493_v22 = vpop.permute.xlu1 %1492  ;;  %v4436_v56 = vpack.c.bf16 %v1477_v51, %v1473_v42  ;;  %v1535_v42 = vmul.f32 %v8315_v8, %v1520_v13  ;;  %v8337_v46 = vld [vmem:[#allocation84_spill] sm:$0xff]  ;;  %v1706_v7 = vsel %vm8340_vm14, %v8339_v57, %v8338_v2  ;;  %vm8360_vm2 = vmmov %vm8344_vm1 }
 0x60d   :  { %v1521_v35 = vsel %vm1068_vm7, %v8336_v37, %v1493_v22  ;;  %v1517_v51 = vsel %vm1068_vm7, %v1493_v22, %v8337_v46  ;;  %v1512_v27 = vsel %vm1068_vm7, %v8341_v54, %v1507_v55  ;;  %v1524_v13 = vsel %vm1068_vm7, %v1507_v55, %v8332_v17  ;;  %vm8361_vm5 = vmmov %vm8344_vm1 }
 0x60e   :  { %v1539_v58 = vmul.f32 %v8315_v8, %v1521_v35  ;;  %4367 = vmatpush1.bf16.msra.mxu0 %v4366_v31  ;;  %4437 = vmatprep.subr.bf16.mxu1 %v4436_v56  ;;  %v8342_v22 = vpack.c.bf16 %v6207_v28, %v6193_v1  ;;  %v6406_v56 = vmul.f32 %v5188_v30, %v1651_v12  ;;  %v8346_v12 = vld [vmem:[#allocation13_spill] sm:$0xff]  ;;  %vm8365_vm8 = vmmov %vm8335_vm6 }
 0x60f   :  { %4439 = vmatpush1.bf16.msra.mxu1 %v4438_v60  ;;  %v1710_v35 = vsel %vm8344_vm1, %v8343_v53, %v8339_v57  ;;  %v1516_v24 = vsel %vm1068_vm7, %v1491_v26, %v8341_v54  ;;  %v6416_v28 = vmul.f32 %v8331_v61, %v1639_v10  ;;  %v1540_v60 = vmul.f32 %v8312_v41, %v1517_v51  ;;  %v8347_v51 = vld [vmem:[#allocation85_spill] sm:$0xff]  ;;  %vm8370_vm4 = vmmov %vm8344_vm1 }
 0x610   :  { %4369 = vmatprep.subr.bf16.mxu0 %v8342_v22  ;;  %v1555_v31 = vpop.permute.xlu0 %1554  ;;  %v1509_v8 = vpop.permute.xlu1 %1508  ;;  %4441 = vmatprep.subr.bf16.mxu1 %v4440_v23  ;;  %v4372_v17 = vpack.c.bf16 %v1539_v58, %v1535_v42  ;;  %v1534_v57 = vmul.f32 %v5322_v19, %v1524_v13  ;;  %v1537_v26 = vmul.f32 %v5327_v40, %v1512_v27  ;;  %vm8372_vm11 = vmmov %vm8335_vm6 }
 0x611   :  { %v1513_v1 = vsel %vm1068_vm7, %v8337_v46, %v1509_v8  ;;  %v1525_v55 = vsel %vm1068_vm7, %v1509_v8, %v8336_v37  ;;  %v8345_v10 = vpack.c.bf16 %v6224_v6, %v6218_v38  ;;  %v6433_v42 = vmul.f32 %v8346_v12, %v1710_v35  ;;  %v8349_v38 = vld [vmem:[#allocation17_spill] sm:$0xff]  ;;  %vm8373_vm14 = vmmov %vm8335_vm6 }
 0x612   :  { %v1538_v23 = vmul.f32 %v5322_v19, %v1525_v55  ;;  %v1541_v58 = vmul.f32 %v5327_v40, %v1513_v1  ;;  %v1536_v46 = vmul.f32 %v8312_v41, %v1516_v24  ;;  %v1584_v37 = vsel %vm1085_vm12, %v8347_v51, %v1555_v31  ;;  %v8350_v24 = vld [vmem:[#allocation65_spill] sm:$0xff]  ;;  %vm8374_vm1 = vmmov %vm8335_vm6 }
 0x613   :  { %4371 = vmatpush1.bf16.msra.mxu0 %v8345_v10  ;;  %v8348_v8 = vpack.c.bf16 %v6174_v45, %v6204_v20  ;;  %v4386_v27 = vpack.c.bf16 %v6406_v56, %v6363_v25  ;;  %v6445_v6 = vmul.f32 %v8349_v38, %v1706_v7  ;;  %v8351_v1 = vld [vmem:[#allocation45_spill] sm:$0xff]  ;;  %v8353_v10 = vld [vmem:[#allocation86_spill] sm:$0xff]  ;;  %v4456_v20 = vpack.c.bf16 %v6416_v28, %v6366_v3  ;;  %v8354_v7 = vld [vmem:[#allocation88_spill] sm:$0xff] }
 0x614   :  { %4373 = vmatprep.subr.bf16.mxu0 %v4372_v17  ;;  %v1571_v54 = vpop.permute.xlu0 %1570  ;;  %v4374_v13 = vpack.c.bf16 %v1538_v23, %v1534_v57  ;;  %v1557_v22 = vpop.permute.xlu1 %1556  ;;  %v4444_v35 = vpack.c.bf16 %v1541_v58, %v1537_v26  ;;  %v1711_v55 = vsel %vm8352_vm15, %v8351_v1, %v8350_v24  ;;  %v4446_v17 = vpack.c.bf16 %v1540_v60, %v1536_v46  ;;  %v8355_v23 = vld [vmem:[#allocation47_spill] sm:$0xff]  ;;  %vm8376_vm15 = vmmov %vm8360_vm2  ;;  %v8386_v56 = vld [vmem:[#allocation48_spill] sm:$0xff] }
 0x615   :  { %4443 = vmatpush1.bf16.msra.mxu1 %v8348_v8  ;;  %v1585_v45 = vsel %vm1085_vm12, %v8353_v10, %v1557_v22  ;;  %v1599_v8 = vmul.f32 %v5392_v16, %v1584_v37  ;;  %v1581_v57 = vsel %vm1085_vm12, %v1557_v22, %v8354_v7  ;;  %v1707_v60 = vsel %vm8356_vm10, %v8350_v24, %v8355_v23  ;;  %v8357_v58 = vld [vmem:[#allocation87_spill] sm:$0xff]  ;;  %vm8379_vm10 = vmmov %vm8374_vm1 }
 0x616   :  { %v1603_v26 = vmul.f32 %v5392_v16, %v1585_v45  ;;  %4445 = vmatprep.subr.bf16.mxu1 %v4444_v35  ;;  %v1576_v46 = vsel %vm1085_vm12, %v8357_v58, %v1571_v54  ;;  %v1588_v3 = vsel %vm1085_vm12, %v1571_v54, %v8347_v51  ;;  %v8358_v28 = vpack.c.bf16 %v6244_v43, %v6260_v39 }
 0x617   :  { %4375 = vmatpush1.bf16.msra.mxu0 %v4374_v13  ;;  %v8359_v13 = vld [vmem:[#allocation66_spill] sm:$0xff]  ;;  %v1580_v51 = vsel %vm1085_vm12, %v1555_v31, %v8357_v58  ;;  %v8362_v43 = vpack.c.bf16 %v6298_v33, %v6288_v63  ;;  %v6489_v24 = vmul.f32 %v8346_v12, %v1711_v55  ;;  %v1598_v31 = vmul.f32 %v5410_v52, %v1588_v3 }
 0x618   :  { %4377 = vmatprep.subr.bf16.mxu0 %v8358_v28  ;;  %v1619_v37 = vpop.permute.xlu0 %1618  ;;  %v1702_v22 = vsel %vm8360_vm2, %v8338_v2, %v8359_v13  ;;  %v1714_v35 = vsel %vm8361_vm5, %v8359_v13, %v8343_v53  ;;  %v1573_v54 = vpop.permute.xlu1 %1572  ;;  %v4380_v39 = vpack.c.bf16 %v1603_v26, %v1599_v8  ;;  %v1604_v2 = vmul.f32 %v5405_v5, %v1581_v57  ;;  %v8364_v57 = vld [vmem:[#allocation89_spill] sm:$0xff]  ;;  %vm8380_vm2 = vmmov %vm8374_vm1 }
 0x619   :  { %4447 = vmatpush1.bf16.msra.mxu1 %v4446_v17  ;;  %v1577_v17 = vsel %vm1085_vm12, %v8354_v7, %v1573_v54  ;;  %v1589_v53 = vsel %vm1085_vm12, %v1573_v54, %v8353_v10  ;;  %v1601_v45 = vmul.f32 %v5439_v0, %v1576_v46  ;;  %v8363_v55 = vpack.c.bf16 %v6278_v29, %v6285_v18  ;;  %v8367_v46 = vld [vmem:[#allocation18_spill] sm:$0xff]  ;;  %v8369_v54 = vld [vmem:[#allocation67_spill] sm:$0xff]  ;;  %vm8381_vm5 = vmmov %vm8374_vm1 }
 0x61a   :  { %4449 = vmatprep.subr.bf16.mxu1 %v8362_v43  ;;  %v1602_v33 = vmul.f32 %v5410_v52, %v1589_v53  ;;  %v1605_v63 = vmul.f32 %v5439_v0, %v1577_v17  ;;  %v6506_v8 = vmul.f32 %v8349_v38, %v1707_v60  ;;  %v1600_v7 = vmul.f32 %v5405_v5, %v1580_v51  ;;  %v8368_v29 = vld [vmem:[#allocation14_spill] sm:$0xff] }
 0x61b   :  { %4379 = vmatpush1.bf16.msra.mxu0 %v8363_v55  ;;  %v1648_v10 = vsel %vm8365_vm8, %v8364_v57, %v1619_v37  ;;  %v8366_v26 = vpack.c.bf16 %v6247_v9, %v6275_v21  ;;  %v6516_v3 = vmul.f32 %v8367_v46, %v1702_v22  ;;  %v6519_v18 = vmul.f32 %v8368_v29, %v1714_v35  ;;  %v8371_v21 = vld [vmem:[#allocation90_spill] sm:$0xff]  ;;  %v8378_v55 = vld [vmem:[#allocation68_spill] sm:$0xff]  ;;  %vm8407_vm8 = vmmov %vm8370_vm4 }
 0x61c   :  { %4381 = vmatprep.subr.bf16.mxu0 %v4380_v39  ;;  %v1635_v58 = vpop.permute.xlu0 %1634  ;;  %v4382_v60 = vpack.c.bf16 %v1602_v33, %v1598_v31  ;;  %v1621_v28 = vpop.permute.xlu1 %1620  ;;  %v4452_v13 = vpack.c.bf16 %v1605_v63, %v1601_v45  ;;  %v1703_v43 = vsel %vm8370_vm4, %v8355_v23, %v8369_v54  ;;  %v4454_v9 = vpack.c.bf16 %v1604_v2, %v1600_v7  ;;  %v8377_v63 = vld [vmem:[#allocation50_spill] sm:$0xff] }
 0x61d   :  { %4451 = vmatpush1.bf16.msra.mxu1 %v8366_v26  ;;  %v1649_v22 = vsel %vm8372_vm11, %v8371_v21, %v1621_v28  ;;  %v1663_v39 = vmul.f32 %v5193_v32, %v1648_v10  ;;  %v1645_v35 = vsel %vm8335_vm6, %v1621_v28, %v6129_v36  ;;  %v1640_v53 = vsel %vm8373_vm14, %v6127_v11, %v1635_v58  ;;  %v8382_v28 = vld [vmem:[#allocation51_spill] sm:$0xff]  ;;  %v8414_v45 = vld [vmem:[#allocation62_spill] sm:$0xff]  ;;  %vm8420_vm11 = vmmov %vm8370_vm4 }
 0x61e   :  { %v1667_v17 = vmul.f32 %v5193_v32, %v1649_v22  ;;  %4453 = vmatprep.subr.bf16.mxu1 %v4452_v13  ;;  %v1652_v23 = vsel %vm8374_vm1, %v1635_v58, %v8364_v57  ;;  %v8375_v2 = vpack.c.bf16 %v6341_v34, %v6301_v50  ;;  %v1715_v33 = vsel %vm8376_vm15, %v8369_v54, %v8351_v1  ;;  %v8383_v13 = vld [vmem:[#allocation69_spill] sm:$0xff]  ;;  %vm8423_vm6 = vmmov %vm8370_vm4 }
 0x61f   :  { %4383 = vmatpush1.bf16.msra.mxu0 %v4382_v60  ;;  %v1770_v7 = vsel %vm1136_vm3, %v8378_v55, %v8377_v63  ;;  %v1644_v50 = vsel %vm8379_vm10, %v1619_v37, %v6127_v11  ;;  %v6560_v10 = vmul.f32 %v8367_v46, %v1703_v43  ;;  %v1668_v26 = vmul.f32 %v5199_v14, %v1645_v35  ;;  %v8384_v54 = vld [vmem:[#allocation49_spill] sm:$0xff]  ;;  %vm8427_vm14 = vmmov %vm8370_vm4 }
 0x620   :  { %4385 = vmatprep.subr.bf16.mxu0 %v8375_v2  ;;  %v6544_v31 = vpop.permute.xlu0 %1866  ;;  %v1637_v34 = vpop.permute.xlu1 %1636  ;;  %v4388_v57 = vpack.c.bf16 %v1667_v17, %v1663_v39  ;;  %v1662_v60 = vmul.f32 %v5188_v30, %v1652_v23  ;;  %v1665_v11 = vmul.f32 %v8331_v61, %v1640_v53  ;;  %v1775_v43 = vsel %vm1136_vm3, %v8384_v54, %v8383_v13  ;;  %v8387_v53 = vld [vmem:[#allocation70_spill] sm:$0xff]  ;;  %vm8428_vm1 = vmmov %vm8370_vm4 }
 0x621   :  { %4455 = vmatpush1.bf16.msra.mxu1 %v4454_v9  ;;  %v1641_v1 = vsel %vm8380_vm2, %v6129_v36, %v1637_v34  ;;  %v1653_v58 = vsel %vm8381_vm5, %v1637_v34, %v8371_v21  ;;  %v1771_v36 = vsel %vm1136_vm3, %v8383_v13, %v8382_v28  ;;  %v1664_v9 = vmul.f32 %v5199_v14, %v1644_v50  ;;  %v8390_v34 = vld [vmem:[#allocation25_spill] sm:$0xff]  ;;  %vm8436_vm15 = vmmov %vm8428_vm1 }
 0x622   :  { %4457 = vmatprep.subr.bf16.mxu1 %v4456_v20  ;;  %v1666_v20 = vmul.f32 %v5188_v30, %v1653_v58  ;;  %v1669_v37 = vmul.f32 %v8331_v61, %v1641_v1  ;;  %v8385_v21 = vpack.c.bf16 %v6344_v59, %v6306_v4  ;;  %v6589_v25 = vmul.f32 %v8368_v29, %v1715_v33  ;;  %v8388_v59 = vld [vmem:[#allocation71_spill] sm:$0xff]  ;;  %v8415_v61 = vld [vmem:[#allocation61_spill] sm:$0xff]  ;;  %vm8437_vm10 = vmmov %vm8428_vm1 }
 0x623   :  { %4387 = vmatpush1.bf16.msra.mxu0 %v4386_v27  ;;  %v1774_v27 = vsel %vm1136_vm3, %v8386_v56, %v8378_v55  ;;  %v1766_v23 = vsel %vm1136_vm3, %v8377_v63, %v8387_v53  ;;  %v1767_v4 = vsel %vm1136_vm3, %v8382_v28, %v8388_v59  ;;  %v1779_v2 = vsel %vm1136_vm3, %v8388_v59, %v8384_v54  ;;  %v8389_v55 = vld [vmem:[#allocation19_spill] sm:$0xff]  ;;  %v8393_v28 = vld [vmem:[#allocation24_spill] sm:$0xff]  ;;  %v8395_v54 = vld [vmem:[#allocation53_spill] sm:$0xff] }
 0x624   :  { %4389 = vmatprep.subr.bf16.mxu0 %v4388_v57  ;;  %v1683_v22 = vpop.permute.xlu0 %1682  ;;  %v4390_v39 = vpack.c.bf16 %v1666_v20, %v1662_v60  ;;  %v6595_v35 = vpop.permute.xlu1 %1868  ;;  %v4460_v17 = vpack.c.bf16 %v1669_v37, %v1665_v11  ;;  %v4462_v33 = vpack.c.bf16 %v1668_v26, %v1664_v9  ;;  %v6610_v50 = vmul.f32 %v8389_v55, %v1775_v43  ;;  %v8392_v20 = vld [vmem:[#allocation28_spill] sm:$0xff]  ;;  %v8402_v59 = vld [vmem:[#allocation39_spill] sm:$0xff] }
 0x625   :  { %4459 = vmatpush1.bf16.msra.mxu1 %v8385_v21  ;;  %v6613_v57 = vmul.f32 %v8390_v34, %v1771_v36  ;;  %v1778_v63 = vsel %vm1136_vm3, %v8387_v53, %v8386_v56  ;;  %v6622_v58 = vmul.f32 %v8389_v55, %v1774_v27  ;;  %v6625_v26 = vmul.f32 %v8390_v34, %v1770_v7  ;;  %v8394_v36 = vld [vmem:[#allocation73_spill] sm:$0xff]  ;;  %v8397_v56 = vld [vmem:[#allocation54_spill] sm:$0xff]  ;;  %v8398_v27 = vld [vmem:[#allocation72_spill] sm:$0xff] }
 0x626   :  { %4461 = vmatprep.subr.bf16.mxu1 %v4460_v17  ;;  %v8391_v60 = vpack.c.bf16 %v5708_v49, %v5700_v62  ;;  %v6631_v37 = vmul.f32 %v8392_v20, %v1767_v4  ;;  %v6634_v13 = vmul.f32 %v8393_v28, %v1779_v2  ;;  %v1839_v43 = vsel %vm1153_vm9, %v8395_v54, %v8394_v36  ;;  %v8399_v17 = vld [vmem:[#allocation52_spill] sm:$0xff]  ;;  %v8401_v53 = vld [vmem:[#allocation74_spill] sm:$0xff] }
 0x627   :  { %4391 = vmatpush1.bf16.msra.mxu0 %v4390_v39  ;;  %v8396_v7 = vpack.c.bf16 %v5714_v44, %v5706_v48  ;;  %v4472_v62 = vpack.c.bf16 %v6589_v25, %v6519_v18  ;;  %v6648_v49 = vmul.f32 %v8392_v20, %v1766_v23  ;;  %v6651_v21 = vmul.f32 %v8393_v28, %v1778_v63  ;;  %v8400_v18 = vld [vmem:[#allocation55_spill] sm:$0xff]  ;;  %v8403_v4 = vld [vmem:[#allocation36_spill] sm:$0xff]  ;;  %v8405_v63 = vld [vmem:[#allocation30_spill] sm:$0xff] }
 0x628   :  { %4393 = vmatprep.subr.bf16.mxu0 %v8391_v60  ;;  %v1699_v11 = vpop.permute.xlu0 %1698  ;;  %v6640_v9 = vpop.permute.xlu1 %1884  ;;  %v1834_v39 = vsel %vm1153_vm9, %v8398_v27, %v8397_v56  ;;  %v1838_v48 = vsel %vm1153_vm9, %v8399_v17, %v8398_v27  ;;  %v1835_v25 = vsel %vm1153_vm9, %v8394_v36, %v8400_v18  ;;  %v1830_v23 = vsel %vm1153_vm9, %v8397_v56, %v8401_v53  ;;  %v8408_v56 = vld [vmem:[#allocation60_spill] sm:$0xff] }
 0x629   :  { %4463 = vmatpush1.bf16.msra.mxu1 %v4462_v33  ;;  %v8404_v2 = vpack.c.bf16 %v8402_v59, %v8403_v4  ;;  %v6677_v60 = vmul.f32 %v8405_v63, %v1839_v43  ;;  %v1842_v36 = vsel %vm1153_vm9, %v8401_v53, %v8399_v17  ;;  %v8409_v44 = vpack.c.bf16 %v5947_v47, %v8408_v56  ;;  %v8410_v59 = vld [vmem:[#allocation38_spill] sm:$0xff]  ;;  %v8411_v4 = vld [vmem:[#allocation37_spill] sm:$0xff]  ;;  %v8413_v17 = vld [vmem:[#allocation31_spill] sm:$0xff] }
 0x62a   :  { %4465 = vmatprep.subr.bf16.mxu1 %v8396_v7  ;;  %v8406_v7 = vld [vmem:[#allocation93_spill] sm:$0xff]  ;;  %v6695_v1 = vmul.f32 %v8405_v63, %v1838_v48  ;;  %v6698_v53 = vmul.f32 %v8413_v17, %v1834_v39  ;;  %v8416_v30 = vpack.c.bf16 %v8414_v45, %v8415_v61  ;;  %v4480_v47 = vpack.c.bf16 %v6634_v13, %v6651_v21  ;;  %v8417_v56 = vld [vmem:[#allocation32_spill] sm:$0xff] }
 0x62b   :  { %4395 = vmatpush1.bf16.msra.mxu0 %v8404_v2  ;;  %v1708_v27 = vsel %vm8407_vm8, %v1683_v22, %v8406_v7  ;;  %v8412_v2 = vpack.c.bf16 %v8410_v59, %v8411_v4  ;;  %v6709_v59 = vmul.f32 %v8417_v56, %v1830_v23  ;;  %v8418_v4 = vld [vmem:[#allocation94_spill] sm:$0xff]  ;;  %v8419_v39 = vld [vmem:[#allocation92_spill] sm:$0xff]  ;;  %v8421_v43 = vld [vmem:[#allocation29_spill] sm:$0xff]  ;;  %vm1934_vm2 = vcmask 261120  }
 0x62c   :  { %4397 = vmatprep.subr.bf16.mxu0 %v8409_v44  ;;  %v1747_v33 = vpop.permute.xlu0 %1746  ;;  %v1685_v51 = vpop.permute.xlu1 %1684  ;;  %v6706_v44 = vmul.f32 %v8413_v17, %v1835_v25  ;;  %v6718_v61 = vmul.f32 %v8421_v43, %v1842_v36  ;;  %v1727_v13 = vmul.f32 %v8349_v38, %v1708_v27  ;;  %v8424_v25 = vld [vmem:[#allocation42_spill] sm:$0xff]  ;;  %v8425_v23 = vld [vmem:[#allocation40_spill] sm:$0xff]  ;;  %v8430_v27 = vld [vmem:[#allocation43_spill] sm:$0xff] }
 0x62d   :  { %4467 = vmatpush1.bf16.msra.mxu1 %v8412_v2  ;;  %v1709_v48 = vsel %vm8370_vm4, %v1685_v51, %v8418_v4  ;;  %v1713_v2 = vsel %vm8420_vm11, %v8419_v39, %v1685_v51  ;;  %v8426_v0 = vpack.c.bf16 %v8424_v25, %v8425_v23  ;;  %v1704_v51 = vsel %vm8427_vm14, %v8406_v7, %v1699_v11  ;;  %v8433_v25 = vld [vmem:[#allocation75_spill] sm:$0xff] }
 0x62e   :  { %4469 = vmatprep.subr.bf16.mxu1 %v8416_v30  ;;  %v8422_v30 = vld [vmem:[#allocation91_spill] sm:$0xff]  ;;  %v1731_v21 = vmul.f32 %v8349_v38, %v1709_v48  ;;  %v8431_v48 = vld [vmem:[#allocation41_spill] sm:$0xff]  ;;  %v1831_v23 = vsel %vm1153_vm9, %v8400_v18, %v8433_v25  ;;  %v1843_v7 = vsel %vm1153_vm9, %v8433_v25, %v8395_v54 }
 0x62f   :  { %v1712_v45 = vsel %vm8423_vm6, %v8422_v30, %v1683_v22  ;;  %4399 = vmatpush1.bf16.msra.mxu0 %v8426_v0  ;;  %v1716_v36 = vsel %vm8428_vm1, %v1699_v11, %v8422_v30  ;;  %v8429_v22 = vpack.c.bf16 %v6506_v8, %v6445_v6  ;;  %v8432_v38 = vpack.c.bf16 %v8430_v27, %v8431_v48  ;;  %v8434_v8 = vld [vmem:[#allocation76_spill] sm:$0xff]  ;;  %v8440_v25 = vld [vmem:[#allocation97_spill] sm:$0xff] }
 0x630   :  { %v1763_v0 = vpop.permute.xlu0 %1762  ;;  %v1730_v11 = vmul.f32 %v8346_v12, %v1713_v2  ;;  %v1701_v30 = vpop.permute.xlu1 %1700  ;;  %v4404_v6 = vpack.c.bf16 %v1731_v21, %v1727_v13  ;;  %v1726_v27 = vmul.f32 %v8346_v12, %v1712_v45  ;;  %v1728_v2 = vmul.f32 %v8367_v46, %v1704_v51 }
 0x631   :  { %4401 = vmatprep.subr.bf16.mxu0 %v8429_v22  ;;  %4471 = vmatpush1.bf16.msra.mxu1 %v8432_v38  ;;  %v8435_v22 = vld [vmem:[#allocation56_spill] sm:$0xff]  ;;  %v1705_v18 = vsel %vm8436_vm15, %v8418_v4, %v1701_v30  ;;  %v1717_v54 = vsel %vm8437_vm10, %v1701_v30, %v8419_v39  ;;  %v8438_v48 = vpack.c.bf16 %v6489_v24, %v6433_v42  ;;  %v8439_v4 = vld [vmem:[#allocation58_spill] sm:$0xff] }
 0x632   :  { %4473 = vmatprep.subr.bf16.mxu1 %v4472_v62  ;;  %v1902_v38 = vsel %vm1170_vm0, %v8435_v22, %v8434_v8  ;;  %v1729_v62 = vmul.f32 %v8368_v29, %v1716_v36  ;;  %v1732_v13 = vmul.f32 %v8367_v46, %v1705_v18  ;;  %v1733_v21 = vmul.f32 %v8368_v29, %v1717_v54 }
 0x633   :  { %4403 = vmatpush1.bf16.msra.mxu0 %v8438_v48  ;;  %v6770_v45 = vmul.f32 %v8417_v56, %v1831_v23  ;;  %v1898_v39 = vsel %vm1170_vm0, %v8434_v8, %v8439_v4  ;;  %v1772_v51 = vsel %vm1136_vm3, %v1747_v33, %v8440_v25  ;;  %v8441_v36 = vpack.c.bf16 %v6560_v10, %v6516_v3  ;;  %v8442_v48 = vld [vmem:[#allocation35_spill] sm:$0xff]  ;;  %v8443_v8 = vld [vmem:[#allocation98_spill] sm:$0xff] }
 0x634   :  { %4405 = vmatprep.subr.bf16.mxu0 %v4404_v6  ;;  %v1811_v30 = vpop.permute.xlu0 %1810  ;;  %v6783_v42 = vmul.f32 %v8421_v43, %v1843_v7  ;;  %v4406_v24 = vpack.c.bf16 %v1730_v11, %v1726_v27  ;;  %v4478_v23 = vpack.c.bf16 %v1732_v13, %v1728_v2  ;;  %v1749_v18 = vpop.permute.xlu1 %1748  ;;  %v4476_v54 = vpack.c.bf16 %v1733_v21, %v1729_v62  ;;  %v8444_v6 = vld [vmem:[#allocation96_spill] sm:$0xff]  ;;  %v8445_v7 = vld [vmem:[#allocation95_spill] sm:$0xff]  ;;  %v8446_v2 = vld [vmem:[#allocation34_spill] sm:$0xff] }
 0x635   :  { %4475 = vmatpush1.bf16.msra.mxu1 %v8441_v36  ;;  %v6786_v52 = vmul.f32 %v8442_v48, %v1902_v38  ;;  %v1773_v29 = vsel %vm1136_vm3, %v1749_v18, %v8443_v8  ;;  %v1777_v3 = vsel %vm1136_vm3, %v8444_v6, %v1749_v18  ;;  %v4416_v10 = vpack.c.bf16 %v6706_v44, %v6698_v53  ;;  %v8448_v36 = vld [vmem:[#allocation77_spill] sm:$0xff]  ;;  %v8451_v18 = vld [vmem:[#allocation59_spill] sm:$0xff] }
 0x636   :  { %v1776_v11 = vsel %vm1136_vm3, %v8445_v7, %v1747_v33  ;;  %v1791_v27 = vmul.f32 %v8390_v34, %v1772_v51  ;;  %v1795_v38 = vmul.f32 %v8390_v34, %v1773_v29  ;;  %4477 = vmatprep.subr.bf16.mxu1 %v4476_v54  ;;  %v6802_v62 = vmul.f32 %v8446_v2, %v1898_v39 }
 0x637   :  { %4407 = vmatpush1.bf16.msra.mxu0 %v4406_v24  ;;  %v1768_v13 = vsel %vm1136_vm3, %v8440_v25, %v1763_v0  ;;  %v1780_v53 = vsel %vm1136_vm3, %v1763_v0, %v8445_v7  ;;  %v8447_v33 = vpack.c.bf16 %v6613_v57, %v6625_v26  ;;  %v4490_v29 = vpack.c.bf16 %v6770_v45, %v6709_v59  ;;  %v8449_v24 = vld [vmem:[#allocation57_spill] sm:$0xff] }
 0x638   :  { %v1827_v44 = vpop.permute.xlu0 %1826  ;;  %v1794_v21 = vmul.f32 %v8389_v55, %v1777_v3  ;;  %v1765_v39 = vpop.permute.xlu1 %1764  ;;  %v4412_v51 = vpack.c.bf16 %v1795_v38, %v1791_v27  ;;  %v4488_v25 = vpack.c.bf16 %v6783_v42, %v6718_v61  ;;  %v1903_v0 = vsel %vm1170_vm0, %v8449_v24, %v8448_v36  ;;  %v8453_v3 = vld [vmem:[#allocation100_spill] sm:$0xff] }
 0x639   :  { %4409 = vmatprep.subr.bf16.mxu0 %v8447_v33  ;;  %4479 = vmatpush1.bf16.msra.mxu1 %v4478_v23  ;;  %v1790_v57 = vmul.f32 %v8389_v55, %v1776_v11  ;;  %v1769_v26 = vsel %vm1136_vm3, %v8443_v8, %v1765_v39  ;;  %v1781_v59 = vsel %vm1136_vm3, %v1765_v39, %v8444_v6  ;;  %v8452_v8 = vld [vmem:[#allocation78_spill] sm:$0xff]  ;;  %v8455_v33 = vld [vmem:[#allocation79_spill] sm:$0xff] }
 0x63a   :  { %4481 = vmatprep.subr.bf16.mxu1 %v4480_v47  ;;  %v1792_v47 = vmul.f32 %v8392_v20, %v1768_v13  ;;  %v1793_v45 = vmul.f32 %v8393_v28, %v1780_v53  ;;  %v1796_v61 = vmul.f32 %v8392_v20, %v1769_v26  ;;  %v1797_v42 = vmul.f32 %v8393_v28, %v1781_v59 }
 0x63b   :  { %v8450_v23 = vpack.c.bf16 %v6610_v50, %v6622_v58  ;;  %v1899_v54 = vsel %vm1170_vm0, %v8448_v36, %v8451_v18  ;;  %v1894_v6 = vsel %vm1170_vm0, %v8439_v4, %v8452_v8  ;;  %v1836_v7 = vsel %vm1153_vm9, %v1811_v30, %v8453_v3 }
 0x63c   :  { %v8454_v11 = vpack.c.bf16 %v6631_v37, %v6648_v49  ;;  %v1875_v50 = vpop.permute.xlu0 %1874  ;;  %v1906_v58 = vsel %vm1170_vm0, %v8452_v8, %v8435_v22  ;;  %v4414_v27 = vpack.c.bf16 %v1794_v21, %v1790_v57  ;;  %v4486_v38 = vpack.c.bf16 %v1796_v61, %v1792_v47  ;;  %v1813_v13 = vpop.permute.xlu1 %1812  ;;  %v8456_v37 = vld [vmem:[#allocation101_spill] sm:$0xff]  ;;  %v8458_v21 = vld [vmem:[#allocation99_spill] sm:$0xff] }
 0x63d   :  { %4411 = vmatpush1.bf16.msra.mxu0 %v8450_v23  ;;  %v4484_v53 = vpack.c.bf16 %v1797_v42, %v1793_v45  ;;  %v6855_v4 = vmul.f32 %v8442_v48, %v1903_v0  ;;  %v1907_v39 = vsel %vm1170_vm0, %v8455_v33, %v8449_v24  ;;  %v1837_v49 = vsel %vm1153_vm9, %v1813_v13, %v8456_v37  ;;  %v8460_v8 = vld [vmem:[#allocation33_spill] sm:$0xff] }
 0x63e   :  { %4413 = vmatprep.subr.bf16.mxu0 %v4412_v51  ;;  %4483 = vmatpush1.bf16.msra.mxu1 %v8454_v11  ;;  %v8457_v51 = vld [vmem:[#allocation21_spill] sm:$0xff]  ;;  %v1840_v36 = vsel %vm1153_vm9, %v8458_v21, %v1811_v30  ;;  %v1855_v0 = vmul.f32 %v8413_v17, %v1836_v7  ;;  %v1859_v57 = vmul.f32 %v8413_v17, %v1837_v49  ;;  %v8459_v30 = vld [vmem:[#allocation10_spill] sm:$0xff] }
 0x63f   :  { %v1841_v22 = vsel %vm1153_vm9, %v8457_v51, %v1813_v13  ;;  %4485 = vmatprep.subr.bf16.mxu1 %v4484_v53  ;;  %v1915_v24 = vmul.f32 %v8446_v2, %v1899_v54  ;;  %v1832_v26 = vsel %vm1153_vm9, %v8453_v3, %v1827_v44  ;;  %v1844_v59 = vsel %vm1153_vm9, %v1827_v44, %v8458_v21 }
 0x640   :  { %v1883_v47 = vpop.permute.xlu0 %1882  ;;  %v1912_v45 = vmul.f32 %v8459_v30, %v1894_v6  ;;  %v1895_v61 = vsel %vm1170_vm0, %v8451_v18, %v8455_v33  ;;  %v1858_v42 = vmul.f32 %v8405_v63, %v1841_v22  ;;  %v1829_v23 = vpop.permute.xlu1 %1828  ;;  %v4420_v54 = vpack.c.bf16 %v1859_v57, %v1855_v0 }
 0x641   :  { %4415 = vmatpush1.bf16.msra.mxu0 %v4414_v27  ;;  %v1917_v3 = vmul.f32 %v8460_v8, %v1907_v39  ;;  %v1854_v7 = vmul.f32 %v8405_v63, %v1840_v36  ;;  %v1845_v44 = vsel %vm1153_vm9, %v1829_v23, %v8457_v51  ;;  %v1856_v6 = vmul.f32 %v8417_v56, %v1832_v26 }
 0x642   :  { %4417 = vmatprep.subr.bf16.mxu0 %v4416_v10  ;;  %4487 = vmatpush1.bf16.msra.mxu1 %v4486_v38  ;;  %v1833_v10 = vsel %vm1153_vm9, %v8456_v37, %v1829_v23  ;;  %v1857_v18 = vmul.f32 %v8421_v43, %v1844_v59  ;;  %v8461_v27 = vpack.c.bf16 %v6677_v60, %v6695_v1 }
 0x643   :  { %4489 = vmatprep.subr.bf16.mxu1 %v4488_v25  ;;  %v1860_v11 = vmul.f32 %v8417_v56, %v1833_v10  ;;  %v1861_v25 = vmul.f32 %v8421_v43, %v1845_v44  ;;  %v1913_v38 = vmul.f32 %v8460_v8, %v1906_v58  ;;  %v1900_v13 = vsel %vm1170_vm0, %v1875_v50, %v1883_v47 }
 0x644   :  { %v1891_v53 = vpop.permute.xlu0 %1890  ;;  %v4424_v33 = vpack.c.bf16 %v1915_v24, %v6802_v62  ;;  %v1916_v39 = vmul.f32 %v8459_v30, %v1895_v61  ;;  %v4422_v37 = vpack.c.bf16 %v1858_v42, %v1854_v7  ;;  %v1877_v51 = vpop.permute.xlu1 %1876  ;;  %v1904_v1 = vsel %vm1170_vm0, %v6544_v31, %v1875_v50  ;;  %v1926_v50 = vld [vmem:[%s7935_s3 + $0x180] sm:$0xff] }
 0x645   :  { %4419 = vmatpush1.bf16.msra.mxu0 %v8461_v27  ;;  %v4494_v49 = vpack.c.bf16 %v1860_v11, %v1856_v6  ;;  %v4492_v22 = vpack.c.bf16 %v1861_v25, %v1857_v18  ;;  %v1901_v60 = vsel %vm1170_vm0, %v1877_v51, %v6640_v9  ;;  %v4496_v58 = vpack.c.bf16 %v1917_v3, %v1913_v38 }
 0x646   :  { %4421 = vmatprep.subr.bf16.mxu0 %v4420_v54  ;;  %4491 = vmatpush1.bf16.msra.mxu1 %v4490_v29  ;;  %v1905_v29 = vsel %vm1170_vm0, %v6595_v35, %v1877_v51  ;;  %v1919_v62 = vmul.f32 %v8446_v2, %v1900_v13  ;;  %v1923_v21 = vmul.f32 %v8446_v2, %v1901_v60  ;;  %v8462_v10 = vmov 0.0  }
 0x647   :  { %v1896_v36 = vsel %vm1170_vm0, %v1883_v47, %v1891_v53  ;;  %4493 = vmatprep.subr.bf16.mxu1 %v4492_v22  ;;  %v1908_v0 = vsel %vm1170_vm0, %v1891_v53, %v6544_v31  ;;  %v4426_v57 = vpack.c.bf16 %v6855_v4, %v6786_v52  ;;  %v4498_v24 = vpack.c.bf16 %v1916_v39, %v1912_v45 }
 0x648   :  { %v1922_v26 = vmul.f32 %v8442_v48, %v1905_v29  ;;  %v1893_v59 = vpop.permute.xlu1 %1892  ;;  %v4428_v47 = vpack.c.bf16 %v1923_v21, %v1919_v62  ;;  %v1918_v61 = vmul.f32 %v8442_v48, %v1904_v1  ;;  %v1920_v42 = vmul.f32 %v8459_v30, %v1896_v36  ;;  %v4703_v29 = vld [vmem:[%s7932_s0] sm:$0xff]  ;;  %v4704_v21 = vld [vmem:[%s7932_s0 + $0x8] sm:$0xff] }
 0x649   :  { %4423 = vmatpush1.bf16.msra.mxu0 %v4422_v37  ;;  %v1897_v23 = vsel %vm1170_vm0, %v6640_v9, %v1893_v59  ;;  %v1909_v31 = vsel %vm1170_vm0, %v1893_v59, %v6595_v35  ;;  %v1921_v52 = vmul.f32 %v8460_v8, %v1908_v0  ;;  %v8463_v35 = vld [vmem:[#allocation81_spill] sm:$0xff]  ;;  %v4773_v53 = vmov 1966171168  }
 0x64a   :  { %4425 = vmatprep.subr.bf16.mxu0 %v4424_v33  ;;  %4495 = vmatpush1.bf16.msra.mxu1 %v4494_v49  ;;  %v1924_v4 = vmul.f32 %v8459_v30, %v1897_v23  ;;  %v1925_v45 = vmul.f32 %v8460_v8, %v1909_v31  ;;  %v4430_v54 = vpack.c.bf16 %v1922_v26, %v1918_v61  ;;  %v3672_v33 = vunpack.c.l.s4 %v4773_v53  ;;  %v8466_v0 = vld [vmem:[#allocation9_spill] sm:$0xff] }
 0x64b   :  { %4497 = vmatprep.subr.bf16.mxu1 %v4496_v58 }
 0x64c   :  { %2002 = vmatmul.mubr.f32.vlgmr.msra.gmra.mrb[12].mxu0 %v1926_v50  ;;  %v4502_v3 = vpack.c.bf16 %v1924_v4, %v1920_v42  ;;  %v4500_v7 = vpack.c.bf16 %v1925_v45, %v1921_v52  ;;  %v3673_v37 = vunpack.c.0.s8 %v3672_v33  ;;  %v4706_v42 = vld [vmem:[%s7932_s0 + $0x18] sm:$0xff] }
 0x64d   :  { %4427 = vmatpush1.bf16.msra.mxu0 %v4426_v57  ;;  %2144 = vmatmul.mubr.f32.vlgmr.msra.gmra.mrb[12].mxu1 %v1926_v50 }
 0x64e   :  { %4429 = vmatprep.subr.bf16.mxu0 %v4428_v47  ;;  %4499 = vmatpush1.bf16.msra.mxu1 %v4498_v24  ;;  %v6955_v57 = vsub.s32 %v3673_v37, %v8466_v0  ;;  %v4705_v24 = vld [vmem:[%s7932_s0 + $0x10] sm:$0xff] }
 0x64f   :  { %2072 = vmatprep.mubr.f32.mxu0 %v8462_v10  ;;  %2214 = vmatprep.mubr.f32.mxu1 %v8462_v10 }
 0x650   :  { %4501 = vmatprep.subr.bf16.mxu1 %v4500_v7  ;;  %8467 = vst [vmem:[#allocation82_spill] sm:$0xff] %v6955_v57 }
 0x651   :  { %4431 = vmatpush1.bf16.msra.mxu0 %v4430_v54 }
 0x652   :  { %4503 = vmatpush1.bf16.msra.mxu1 %v4502_v3 }
 0x654   :  { %4083 = vmatmul.mubr.msk.f32.vlgmr.msra.gmra.mrb[12].mxu0 %vm1934_vm2, %v8463_v35 }
 0x655   :  { %4084 = vmatmul.mubr.msk.f32.vlgmr.msra.gmra.mrb[12].mxu1 %vm1934_vm2, %v8463_v35  ;;  %2545 = vmatprep.mubr.f32.mxu0 %v8462_v10  ;;  %v1932_v9 = vpop.permute.xlu0 %1931 }
 0x656   :  { %2682 = vmatprep.mubr.f32.mxu1 %v8462_v10 }
 0x727   :  { %v2074_v44 = vpop.f32.mrb[12].mxu0 }
 0x728   :  { %v4637_v6 = vadd.f32 %v2074_v44, %v1932_v9  ;;  %v2076_v18 = vpop.f32.mrb[13].mxu0  ;;  %v2216_v11 = vpop.f32.mrb[12].mxu1 }
 0x729   :  { %v4638_v25 = vadd.f32 %v2076_v18, %v1932_v9  ;;  %v4639_v27 = vadd.f32 %v2216_v11, %v1932_v9  ;;  %v2218_v38 = vpop.f32.mrb[13].mxu1 }
 0x72a   :  { %4669 = vtanh.f32 %v4637_v6  ;;  %v4640_v13 = vadd.f32 %v2218_v38, %v1932_v9 }
 0x72b   :  { %4671 = vtanh.f32 %v4638_v25 }
 0x72c   :  { %4673 = vtanh.f32 %v4639_v27 }
 0x72d   :  { %4675 = vtanh.f32 %v4640_v13 }
 0x734   :  { %v4670_v39 = vpop.eup %4669 }
 0x735   :  { %v4672_v49 = vpop.eup %4671  ;;  %v2225_v51 = vmul.f32 0.1, %v4670_v39 }
 0x736   :  { %v4674_v22 = vpop.eup %4673  ;;  %v2226_v1 = vmul.f32 0.1, %v4672_v49 }
 0x737   :  { %v4676_v60 = vpop.eup %4675  ;;  %v6947_v58 = vadd.f32 %v4703_v29, %v2225_v51  ;;  %v2227_v62 = vmul.f32 0.1, %v4674_v22 }
 0x738   :  { %v6952_v36 = vadd.f32 %v4704_v21, %v2226_v1  ;;  %v2228_v50 = vmul.f32 0.1, %v4676_v60 }
 0x739   :  { %8464 = vst [vmem:[#allocation80_spill] sm:$0xff] %v6947_v58  ;;  %v6960_v26 = vadd.f32 %v4705_v24, %v2227_v62  ;;  %2233 = vrot.lane.b32.xlu1 %v6947_v58, %s4764_s18  ;;  %v8093_v59 = vrot.slane %v6947_v58, 1  ;;  %v8089_v47 = vrot.slane %v6947_v58, 2  ;;  %v8088_v61 = vrot.slane %v6947_v58, 3 }
 0x73a   :  { %8465 = vst [vmem:[#allocation63_spill] sm:$0xff] %v6952_v36  ;;  %v6970_v23 = vadd.f32 %v4706_v42, %v2228_v50  ;;  %2235 = vrot.lane.b32.xlu0 %v6952_v36, %s4764_s18  ;;  %v8091_v31 = vrot.slane %v6952_v36, 1  ;;  %v3667_v52 = vcombine.low %v6947_v58, %v6952_v36  ;;  %v8085_v4 = vrot.slane %v6952_v36, 2 }
 0x73b   :  { %8468 = vst [vmem:[#allocation84_spill] sm:$0xff] %v6960_v26  ;;  %v8092_v45 = vrot.slane %v6960_v26, 1  ;;  %v8087_v54 = vrot.slane %v6960_v26, 2  ;;  %v8086_v3 = vrot.slane %v6960_v26, 3  ;;  %v8084_v7 = vrot.slane %v6952_v36, 3 }
 0x73c   :  { %8469 = vst [vmem:[#allocation46_spill] sm:$0xff] %v6970_v23  ;;  %v3668_v35 = vcombine.low %v8093_v59, %v8091_v31  ;;  %v8090_v9 = vrot.slane %v6970_v23, 1  ;;  %v3807_v44 = vcombine.low %v6960_v26, %v6970_v23  ;;  %v3669_v6 = vcombine.low %v8089_v47, %v8085_v4  ;;  %v8479_v59 = vld [vmem:[#allocation15_spill] sm:$0xff] }
 0x73d   :  { %2237 = vrot.lane.b32.xlu1 %v6960_v26, %s4764_s18  ;;  %v8083_v18 = vrot.slane %v6970_v23, 2  ;;  %v3670_v11 = vcombine.low %v8088_v61, %v8084_v7  ;;  %v8082_v25 = vrot.slane %v6970_v23, 3  ;;  %v3677_v27 = vrot.slane %v3667_v52, %v6955_v57 }
 0x73e   :  { %2239 = vrot.lane.b32.xlu0 %v6970_v23, %s4764_s18  ;;  %v3684_v38 = vrot.slane %v3668_v35, %v6955_v57  ;;  %v3808_v13 = vcombine.low %v8092_v45, %v8090_v9  ;;  %v3691_v53 = vrot.slane %v3669_v6, %v6955_v57  ;;  %v3817_v51 = vrot.slane %v3807_v44, %v6955_v57  ;;  %v2373_v6 = vld [vmem:[%s7935_s3 + $0x70] sm:$0xff] }
 0x73f   :  { %v3809_v33 = vcombine.low %v8087_v54, %v8083_v18  ;;  %v3698_v39 = vrot.slane %v3670_v11, %v6955_v57  ;;  %v3810_v37 = vcombine.low %v8086_v3, %v8082_v25  ;;  %v2374_v11 = vld [vmem:[%s7935_s3 + $0x88] sm:$0xff]  ;;  %v331_v18 = vadd.s32 280, %v8466_v0 }
 0x740   :  { %v3699_v49 = vcombine.low %v3677_v27, %v3684_v38  ;;  %v3824_v22 = vrot.slane %v3808_v13, %v6955_v57  ;;  %v2375_v27 = vld [vmem:[%s7935_s3 + $0xa0] sm:$0xff]  ;;  %v2376_v38 = vld [vmem:[%s7935_s3 + $0xb8] sm:$0xff]  ;;  %v2377_v13 = vld [vmem:[%s7935_s3 + $0xd0] sm:$0xff] }
 0x741   :  { %2249 = vrot.lane.b32.xlu1 %v6947_v58, %s4765_s19  ;;  %v3831_v1 = vrot.slane %v3809_v33, %v6955_v57  ;;  %v3700_v60 = vcombine.low %v3691_v53, %v3698_v39  ;;  %v3838_v29 = vrot.slane %v3810_v37, %v6955_v57  ;;  %v2378_v53 = vld [vmem:[%s7935_s3 + $0xe8] sm:$0xff]  ;;  %v2379_v33 = vld [vmem:[%s7935_s3 + $0x100] sm:$0xff]  ;;  %v2380_v39 = vld [vmem:[%s7935_s3 + $0x118] sm:$0xff]  ;;  %v395_v45 = vshra.s32 %v331_v18, 8 }
 0x742   :  { %2251 = vrot.lane.b32.xlu0 %v6952_v36, %s4765_s19  ;;  %v3707_v62 = vrot.slane %v3699_v49, %v6955_v57  ;;  %v3839_v21 = vcombine.low %v3817_v51, %v3824_v22  ;;  %v2381_v37 = vld [vmem:[%s7935_s3 + $0x130] sm:$0xff]  ;;  %v2382_v49 = vld [vmem:[%s7935_s3 + $0x148] sm:$0xff]  ;;  %v2383_v51 = vld [vmem:[%s7935_s3 + $0x160] sm:$0xff] }
 0x743   :  { %v3714_v50 = vrot.slane %v3700_v60, %v6955_v57  ;;  %v3840_v24 = vcombine.low %v3831_v1, %v3838_v29  ;;  %v2384_v22 = vld [vmem:[%s7935_s3 + $0x178] sm:$0xff]  ;;  %v312_v1 = vadd.s32 128, %v8466_v0  ;;  %v313_v60 = vadd.s32 136, %v8466_v0 }
 0x744   :  { %v3847_v42 = vrot.slane %v3839_v21, %v6955_v57  ;;  %v344_v29 = vadd.s32 384, %v8466_v0  ;;  %v297_v21 = vadd.s32 8, %v8466_v0 }
 0x745   :  { %2253 = vrot.lane.b32.xlu1 %v6960_v26, %s4765_s19  ;;  %v3715_v52 = vcombine.low %v3707_v62, %v3714_v50  ;;  %v3854_v35 = vrot.slane %v3840_v24, %v6955_v57  ;;  %v345_v62 = vadd.s32 392, %v8466_v0  ;;  %v376_v50 = vshra.s32 %v312_v1, 8  ;;  %v8484_v57 = vld [vmem:[#allocation20_spill] sm:$0xff] }
 0x746   :  { %2255 = vrot.lane.b32.xlu0 %v6970_v23, %s4765_s19  ;;  %v377_v24 = vshra.s32 %v313_v60, 8 }
 0x747   :  { %3717 = vst [vmem:[%s7938_s6] ss:$2 sm:$0xff] %v3715_v52  ;;  %v3855_v44 = vcombine.low %v3847_v42, %v3854_v35  ;;  %v408_v42 = vshra.s32 %v344_v29, 8  ;;  %v409_v52 = vshra.s32 %v345_v62, 8  ;;  %v360_v35 = vshra.s32 %v8466_v0, 8 }
 0x748   :  { %vm440_vm5 = vcmp.eq.s32.totalorder %v376_v50, %v4860_v15  ;;  %vm441_vm8 = vcmp.eq.s32.totalorder %v377_v24, %v4860_v15 }
 0x749   :  { %2265 = vrot.lane.b32.xlu1 %v6947_v58, %s4767_s21  ;;  %4120 = vst [vmem:[%s7938_s6 + $0x1] ss:$2 sm:$0xff] %v3855_v44  ;;  %v328_v44 = vadd.s32 256, %v8466_v0  ;;  %vm472_vm4 = vcmp.eq.s32.totalorder %v408_v42, %v4860_v15  ;;  %vm473_vm11 = vcmp.eq.s32.totalorder %v409_v52, %v4860_v15  ;;  %vm424_vm6 = vcmp.eq.s32.totalorder %v360_v35, %v4860_v15 }
 0x74a   :  { %2267 = vrot.lane.b32.xlu0 %v6952_v36, %s4767_s21  ;;  %v4050_v60 = vsel %vm473_vm11, 1.0, %v8462_v10  ;;  %v4001_v29 = vsel %vm424_vm6, 1.0, %v8462_v10  ;;  %v299_v42 = vadd.s32 24, %v8466_v0  ;;  %vm8475_vm6 = vcmp.lt.s32.totalorder %v4860_v15, 17 }
 0x74d   :  { %2269 = vrot.lane.b32.xlu1 %v6960_v26, %s4767_s21 }
 0x74e   :  { %2271 = vrot.lane.b32.xlu0 %v6970_v23, %s4767_s21 }
 0x751   :  { %2281 = vrot.lane.b32.xlu1 %v6947_v58, %s4766_s20 }
 0x752   :  { %2283 = vrot.lane.b32.xlu0 %v6952_v36, %s4766_s20 }
 0x755   :  { %2285 = vrot.lane.b32.xlu1 %v6960_v26, %s4766_s20 }
 0x756   :  { %2287 = vrot.lane.b32.xlu0 %v6970_v23, %s4766_s20 }
 0x759   :  { %2297 = vrot.lane.b32.xlu1 %v6947_v58, %s4768_s22 }
 0x75a   :  { %2299 = vrot.lane.b32.xlu0 %v6952_v36, %s4768_s22 }
 0x75d   :  { %2301 = vrot.lane.b32.xlu1 %v6960_v26, %s4768_s22 }
 0x75e   :  { %2303 = vrot.lane.b32.xlu0 %v6970_v23, %s4768_s22 }
 0x761   :  { %2313 = vrot.lane.b32.xlu1 %v6947_v58, %s4769_s23 }
 0x762   :  { %2315 = vrot.lane.b32.xlu0 %v6952_v36, %s4769_s23 }
 0x765   :  { %2317 = vrot.lane.b32.xlu1 %v6960_v26, %s4769_s23 }
 0x766   :  { %2319 = vrot.lane.b32.xlu0 %v6970_v23, %s4769_s23 }
 0x769   :  { %2329 = vrot.lane.b32.xlu1 %v6947_v58, %s4770_s24 }
 0x76a   :  { %2331 = vrot.lane.b32.xlu0 %v6952_v36, %s4770_s24 }
 0x76d   :  { %2333 = vrot.lane.b32.xlu1 %v6960_v26, %s4770_s24 }
 0x76e   :  { %2335 = vrot.lane.b32.xlu0 %v6970_v23, %s4770_s24 }
 0x771   :  { %2345 = vrot.lane.b32.xlu1 %v6947_v58, %s4771_s25 }
 0x772   :  { %2347 = vrot.lane.b32.xlu0 %v6952_v36, %s4771_s25 }
 0x775   :  { %2349 = vrot.lane.b32.xlu1 %v6960_v26, %s4771_s25 }
 0x776   :  { %2351 = vrot.lane.b32.xlu0 %v6970_v23, %s4771_s25 }
 0x779   :  { %2387 = vperm.xlu1 %4667, %v2373_v6   ;;  %v361_v6 = vshra.s32 %v297_v21, 8 }
 0x77a   :  { %2392 = vperm.xlu0 %4668, %v2374_v11   ;;  %v329_v11 = vadd.s32 264, %v8466_v0 }
 0x77b   :  { %vm425_vm14 = vcmp.eq.s32.totalorder %v361_v6, %v4860_v15 }
 0x77c   :  { %v4002_v50 = vsel %vm425_vm14, 1.0, %v8462_v10  ;;  %vm8476_vm14 = vmmov %vm8475_vm6 }
 0x77d   :  { %2397 = vperm.xlu1 %4667, %v2375_v27   ;;  %v314_v27 = vadd.s32 144, %v8466_v0 }
 0x77e   :  { %2402 = vperm.xlu0 %4668, %v2376_v38   ;;  %v315_v38 = vadd.s32 152, %v8466_v0 }
 0x77f   :  { %v378_v1 = vshra.s32 %v314_v27, 8 }
 0x780   :  { %v379_v62 = vshra.s32 %v315_v38, 8  ;;  %v7159_v38 = vmul.f32 0.00390625, %v4050_v60 }
 0x781   :  { %2407 = vperm.xlu1 %4667, %v2377_v13   ;;  %v346_v13 = vadd.s32 400, %v8466_v0  ;;  %vm442_vm10 = vcmp.eq.s32.totalorder %v378_v1, %v4860_v15 }
 0x782   :  { %2412 = vperm.xlu0 %4668, %v2378_v53   ;;  %v392_v53 = vshra.s32 %v328_v44, 8  ;;  %8472 = vst [vmem:[#allocation44_spill] sm:$0xff] %v7159_v38  ;;  %vm443_vm2 = vcmp.eq.s32.totalorder %v379_v62, %v4860_v15  ;;  %v4019_v1 = vsel %vm442_vm10, 1.0, %v8462_v10 }
 0x783   :  { %v410_v21 = vshra.s32 %v346_v13, 8  ;;  %v7161_v13 = vmul.f32 0.00390625, %v4001_v29  ;;  %v8480_v29 = vld [vmem:[#allocation16_spill] sm:$0xff] }
 0x784   :  { %vm456_vm1 = vcmp.eq.s32.totalorder %v392_v53, %v4860_v15  ;;  %v7164_v53 = vmul.f32 0.00390625, %v4002_v50 }
 0x785   :  { %2417 = vperm.xlu1 %4667, %v2379_v33   ;;  %v347_v33 = vadd.s32 408, %v8466_v0  ;;  %8473 = vst [vmem:[#allocation13_spill] sm:$0xff] %v7161_v13 }
 0x786   :  { %2422 = vperm.xlu0 %4668, %v2380_v39   ;;  %v393_v39 = vshra.s32 %v329_v11, 8  ;;  %8474 = vst [vmem:[#allocation85_spill] sm:$0xff] %v7164_v53  ;;  %v8485_v53 = vld [vmem:[#allocation22_spill] sm:$0xff] }
 0x787   :  { %v411_v24 = vshra.s32 %v347_v33, 8  ;;  %v4033_v33 = vsel %vm456_vm1, 1.0, %v8462_v10  ;;  %vm8477_vm1 = vmmov %vm8475_vm6 }
 0x788   :  { %vm457_vm15 = vcmp.eq.s32.totalorder %v393_v39, %v4860_v15  ;;  %v7178_v62 = vmul.f32 0.00390625, %v4033_v33  ;;  %vm8483_vm10 = vmmov %vm8477_vm1 }
 0x789   :  { %2427 = vperm.xlu1 %4667, %v2381_v37   ;;  %v298_v37 = vadd.s32 16, %v8466_v0  ;;  %v4034_v39 = vsel %vm457_vm15, 1.0, %v8462_v10 }
 0x78a   :  { %2432 = vperm.xlu0 %4668, %v2382_v49   ;;  %v4017_v49 = vsel %vm440_vm5, 1.0, %v8462_v10  ;;  %vm474_vm5 = vcmp.eq.s32.totalorder %v410_v21, %v4860_v15  ;;  %v4020_v21 = vsel %vm443_vm2, 1.0, %v8462_v10  ;;  %vm7239_vm2 = vcmp.eq.s32.totalorder %v395_v45, %v4860_v15 }
 0x78b   :  { %v7152_v35 = vmul.f32 0.00390625, %v4017_v49  ;;  %v362_v6 = vshra.s32 %v298_v37, 8  ;;  %v363_v37 = vshra.s32 %v299_v42, 8  ;;  %v330_v49 = vadd.s32 272, %v8466_v0 }
 0x78c   :  { %v4051_v50 = vsel %vm474_vm5, 1.0, %v8462_v10  ;;  %v7184_v42 = vmul.f32 0.00390625, %v4034_v39  ;;  %v7194_v54 = vmul.f32 0.00390625, %v4020_v21  ;;  %v316_v39 = vadd.s32 160, %v8466_v0 }
 0x78d   :  { %2437 = vperm.xlu1 %4667, %v2383_v51   ;;  %v4018_v51 = vsel %vm441_vm8, 1.0, %v8462_v10  ;;  %8470 = vst [vmem:[#allocation64_spill] sm:$0xff] %v7152_v35  ;;  %vm475_vm8 = vcmp.eq.s32.totalorder %v411_v24, %v4860_v15  ;;  %vm427_vm11 = vcmp.eq.s32.totalorder %v363_v37, %v4860_v15  ;;  %v394_v7 = vshra.s32 %v330_v49, 8 }
 0x78e   :  { %2442 = vperm.xlu0 %4668, %v2384_v22   ;;  %v4049_v22 = vsel %vm472_vm4, 1.0, %v8462_v10  ;;  %v7154_v44 = vmul.f32 0.00390625, %v4018_v51  ;;  %vm426_vm4 = vcmp.eq.s32.totalorder %v362_v6, %v4860_v15  ;;  %v4052_v25 = vsel %vm475_vm8, 1.0, %v8462_v10 }
 0x78f   :  { %v7157_v27 = vmul.f32 0.00390625, %v4049_v22  ;;  %v7188_v6 = vmul.f32 0.00390625, %v4019_v1  ;;  %v4003_v33 = vsel %vm426_vm4, 1.0, %v8462_v10  ;;  %v7196_v61 = vmul.f32 0.00390625, %v4051_v50 }
 0x790   :  { %v7203_v9 = vmul.f32 0.00390625, %v4052_v25  ;;  %v317_v49 = vadd.s32 168, %v8466_v0  ;;  %v4004_v21 = vsel %vm427_vm11, 1.0, %v8462_v10  ;;  %v7209_v50 = vmul.f32 0.00390625, %v4003_v33 }
 0x791   :  { %8471 = vst [vmem:[#allocation83_spill] sm:$0xff] %v7157_v27  ;;  %vm7214_vm15 = vcmp.eq.s32.totalorder %v394_v7, %v4860_v15  ;;  %v348_v25 = vadd.s32 416, %v8466_v0  ;;  %v380_v18 = vshra.s32 %v316_v39, 8 }
 0x792   :  { %8478 = vst [vmem:[#allocation65_spill] sm:$0xff] %v7209_v50  ;;  %v381_v7 = vshra.s32 %v317_v49, 8 }
 0x794   :  { %vm445_vm5 = vcmp.eq.s32.totalorder %v381_v7, %v4860_v15 }
 0x7ab   :  { %v2234_v52 = vpop.permute.xlu1 %2233 }
 0x7ac   :  { %v2236_v11 = vpop.permute.xlu0 %2235 }
 0x7ad   :  { %v2243_v4 = vsel %vm8475_vm6, %v2234_v52, %v2236_v11 }
 0x7ae   :  { %v2246_v24 = vmul.f32 %v8479_v59, %v2243_v4 }
 0x7af   :  { %v2238_v51 = vpop.permute.xlu1 %2237 }
 0x7b0   :  { %v2240_v60 = vpop.permute.xlu0 %2239 }
 0x7b1   :  { %v2241_v47 = vsel %vm8476_vm14, %v2238_v51, %v2240_v60  ;;  %v2244_v1 = vsel %vm8477_vm1, %v2240_v60, %v2234_v52  ;;  %v2242_v60 = vsel %vm8483_vm10, %v2236_v11, %v2238_v51  ;;  %v412_v51 = vshra.s32 %v348_v25, 8 }
 0x7b2   :  { %v2245_v13 = vmul.f32 %v8484_v57, %v2244_v1  ;;  %v2248_v33 = vmul.f32 %v8485_v53, %v2241_v47  ;;  %v300_v47 = vadd.s32 32, %v8466_v0  ;;  %vm8489_vm1 = vcmp.lt.s32.totalorder %v4860_v15, 1 }
 0x7b3   :  { %v2250_v3 = vpop.permute.xlu1 %2249  ;;  %vm476_vm8 = vcmp.eq.s32.totalorder %v412_v51, %v4860_v15 }
 0x7b4   :  { %v2252_v37 = vpop.permute.xlu0 %2251  ;;  %v364_v25 = vshra.s32 %v300_v47, 8  ;;  %v4053_v47 = vsel %vm476_vm8, 1.0, %v8462_v10  ;;  %vm8499_vm8 = vcmp.lt.s32.totalorder %v4860_v15, 127 }
 0x7b5   :  { %v2259_v31 = vsel %vm1068_vm7, %v2250_v3, %v2252_v37 }
 0x7b6   :  { %v2262_v22 = vmul.f32 %v8480_v29, %v2259_v31  ;;  %v349_v29 = vadd.s32 424, %v8466_v0  ;;  %vm428_vm11 = vcmp.eq.s32.totalorder %v364_v25, %v4860_v15 }
 0x7b7   :  { %v2254_v27 = vpop.permute.xlu1 %2253 }
 0x7b8   :  { %v2258_v59 = vsel %vm1068_vm7, %v2252_v37, %v2254_v27  ;;  %v2256_v31 = vpop.permute.xlu0 %2255  ;;  %v4504_v4 = vpack.c.bf16 %v2262_v22, %v2246_v24  ;;  %v301_v22 = vadd.s32 40, %v8466_v0  ;;  %v8486_v24 = vld [vmem:[#allocation23_spill] sm:$0xff] }
 0x7b9   :  { %v2263_v38 = vmul.f32 %v8312_v41, %v2258_v59  ;;  %v2257_v35 = vsel %vm1068_vm7, %v2254_v27, %v2256_v31  ;;  %v2260_v57 = vsel %vm1068_vm7, %v2256_v31, %v2250_v3  ;;  %v2247_v39 = vmul.f32 %v8486_v24, %v2242_v60 }
 0x7ba   :  { %v2261_v11 = vmul.f32 %v5322_v19, %v2260_v57  ;;  %v2264_v53 = vmul.f32 %v5327_v40, %v2257_v35  ;;  %4505 = vmatprep.subr.bf16.mxu0 %v4504_v4  ;;  %v7236_v41 = vmul.f32 0.00390625, %v4004_v21  ;;  %v332_v3 = vadd.s32 288, %v8466_v0 }
 0x7bb   :  { %v2266_v1 = vpop.permute.xlu1 %2265  ;;  %vm444_vm7 = vcmp.eq.s32.totalorder %v380_v18, %v4860_v15  ;;  %v4522_v40 = vpack.c.bf16 %v2263_v38, %v2247_v39  ;;  %v4035_v35 = vsel %vm7214_vm15, 1.0, %v8462_v10  ;;  %v413_v21 = vshra.s32 %v349_v29, 8  ;;  %vm8490_vm15 = vmmov %vm8489_vm1 }
 0x7bc   :  { %v4506_v37 = vpack.c.bf16 %v2261_v11, %v2245_v13  ;;  %v2268_v19 = vpop.permute.xlu0 %2267  ;;  %v4520_v49 = vpack.c.bf16 %v2264_v53, %v2248_v33  ;;  %v365_v60 = vshra.s32 %v301_v22, 8  ;;  %v4036_v38 = vsel %vm7239_vm2, 1.0, %v8462_v10  ;;  %vm8491_vm2 = vmmov %vm8489_vm1 }
 0x7bd   :  { %v4021_v52 = vsel %vm444_vm7, 1.0, %v8462_v10  ;;  %v4022_v18 = vsel %vm445_vm5, 1.0, %v8462_v10  ;;  %v396_v59 = vshra.s32 %v332_v3, 8  ;;  %v7263_v29 = vmul.f32 0.00390625, %v4035_v35  ;;  %vm8492_vm7 = vmmov %vm8489_vm1 }
 0x7be   :  { %4507 = vmatpush1.bf16.msra.mxu0 %v4506_v37  ;;  %4521 = vmatprep.subr.bf16.mxu1 %v4520_v49  ;;  %v333_v57 = vadd.s32 296, %v8466_v0  ;;  %vm477_vm4 = vcmp.eq.s32.totalorder %v413_v21, %v4860_v15  ;;  %v318_v11 = vadd.s32 176, %v8466_v0  ;;  %v7270_v53 = vmul.f32 0.00390625, %v4036_v38 }
 0x7bf   :  { %4523 = vmatpush1.bf16.msra.mxu1 %v4522_v40  ;;  %v2270_v33 = vpop.permute.xlu1 %2269  ;;  %v7272_v51 = vmul.f32 0.00390625, %v4021_v52  ;;  %v7274_v22 = vmul.f32 0.00390625, %v4022_v18  ;;  %vm429_vm6 = vcmp.eq.s32.totalorder %v365_v60, %v4860_v15  ;;  %v2275_v24 = vsel %vm1085_vm12, %v2266_v1, %v2268_v19 }
 0x7c0   :  { %v2272_v31 = vpop.permute.xlu0 %2271  ;;  %vm460_vm14 = vcmp.eq.s32.totalorder %v396_v59, %v4860_v15  ;;  %v319_v27 = vadd.s32 184, %v8466_v0  ;;  %v350_v3 = vadd.s32 432, %v8466_v0  ;;  %v4054_v49 = vsel %vm477_vm4, 1.0, %v8462_v10 }
 0x7c1   :  { %v7283_v40 = vmul.f32 0.00390625, %v4053_v47  ;;  %v4005_v35 = vsel %vm428_vm11, 1.0, %v8462_v10  ;;  %v397_v21 = vshra.s32 %v333_v57, 8  ;;  %v2274_v25 = vsel %vm1085_vm12, %v2268_v19, %v2270_v33  ;;  %vm8502_vm11 = vmmov %vm8499_vm8 }
 0x7c2   :  { %v4006_v38 = vsel %vm429_vm6, 1.0, %v8462_v10  ;;  %v382_v52 = vshra.s32 %v318_v11, 8  ;;  %v2278_v18 = vmul.f32 %v5392_v16, %v2275_v24  ;;  %v4037_v7 = vsel %vm460_vm14, 1.0, %v8462_v10  ;;  %vm8504_vm6 = vmmov %vm8499_vm8 }
 0x7c3   :  { %v2282_v39 = vpop.permute.xlu1 %2281  ;;  %v351_v47 = vadd.s32 440, %v8466_v0  ;;  %v2273_v57 = vsel %vm1085_vm12, %v2270_v33, %v2272_v31  ;;  %v2276_v19 = vsel %vm1085_vm12, %v2272_v31, %v2266_v1  ;;  %v383_v13 = vshra.s32 %v319_v27, 8  ;;  %v8493_v31 = vld [vmem:[#allocation26_spill] sm:$0xff]  ;;  %vm8505_vm14 = vmmov %vm8504_vm6 }
 0x7c4   :  { %v2284_v37 = vpop.permute.xlu0 %2283  ;;  %v414_v45 = vshra.s32 %v350_v3, 8  ;;  %v2279_v50 = vmul.f32 %v5405_v5, %v2274_v25  ;;  %vm461_vm10 = vcmp.eq.s32.totalorder %v397_v21, %v4860_v15  ;;  %vm446_vm12 = vcmp.eq.s32.totalorder %v382_v52, %v4860_v15  ;;  %v8494_v5 = vld [vmem:[#allocation27_spill] sm:$0xff] }
 0x7c5   :  { %v2291_v60 = vsel %vm8489_vm1, %v2282_v39, %v2284_v37  ;;  %v2277_v27 = vmul.f32 %v8493_v31, %v2276_v19  ;;  %v2280_v3 = vmul.f32 %v8494_v5, %v2273_v57  ;;  %v8495_v25 = vld [vmem:[#allocation11_spill] sm:$0xff]  ;;  %vm7315_vm5 = vcmp.eq.s32.totalorder %v383_v13, %v4860_v15 }
 0x7c6   :  { %v2294_v59 = vmul.f32 %v5193_v32, %v2291_v60  ;;  %v8496_v60 = vld [vmem:[#allocation12_spill] sm:$0xff]  ;;  %v303_v52 = vadd.s32 56, %v8466_v0  ;;  %v7328_v13 = vmul.f32 0.00390625, %v4006_v38  ;;  %v7330_v31 = vmul.f32 0.00390625, %v4037_v7 }
 0x7c7   :  { %v2286_v4 = vpop.permute.xlu1 %2285  ;;  %vm7340_vm4 = vcmp.eq.s32.totalorder %v414_v45, %v4860_v15 }
 0x7c8   :  { %v2290_v16 = vsel %vm8490_vm15, %v2284_v37, %v2286_v4  ;;  %v2288_v11 = vpop.permute.xlu0 %2287  ;;  %v4508_v32 = vpack.c.bf16 %v2294_v59, %v2278_v18 }
 0x7c9   :  { %v2295_v24 = vmul.f32 %v5199_v14, %v2290_v16  ;;  %v2289_v33 = vsel %vm8491_vm2, %v2286_v4, %v2288_v11  ;;  %v2292_v1 = vsel %vm8492_vm7, %v2288_v11, %v2282_v39  ;;  %v4038_v14 = vsel %vm461_vm10, 1.0, %v8462_v10 }
 0x7ca   :  { %v2293_v37 = vmul.f32 %v8495_v25, %v2292_v1  ;;  %v2296_v18 = vmul.f32 %v8496_v60, %v2289_v33  ;;  %4509 = vmatprep.subr.bf16.mxu0 %v4508_v32  ;;  %v302_v39 = vadd.s32 48, %v8466_v0  ;;  %v7321_v16 = vmul.f32 0.00390625, %v4054_v49 }
 0x7cb   :  { %v2298_v21 = vpop.permute.xlu1 %2297  ;;  %v4023_v11 = vsel %vm446_vm12, 1.0, %v8462_v10  ;;  %v4526_v32 = vpack.c.bf16 %v2295_v24, %v2279_v50  ;;  %v7326_v1 = vmul.f32 0.00390625, %v4005_v35  ;;  %v7332_v5 = vmul.f32 0.00390625, %v4038_v14 }
 0x7cc   :  { %v4510_v59 = vpack.c.bf16 %v2293_v37, %v2277_v27  ;;  %v2300_v19 = vpop.permute.xlu0 %2299  ;;  %v4524_v57 = vpack.c.bf16 %v2296_v18, %v2280_v3  ;;  %v4024_v49 = vsel %vm7315_vm5, 1.0, %v8462_v10  ;;  %v415_v27 = vshra.s32 %v351_v47, 8  ;;  %v8503_v18 = vld [vmem:[#allocation17_spill] sm:$0xff] }
 0x7cd   :  { %v2307_v33 = vsel %vm8499_vm8, %v2298_v21, %v2300_v19  ;;  %v7337_v24 = vmul.f32 0.00390625, %v4023_v11  ;;  %v366_v38 = vshra.s32 %v302_v39, 8  ;;  %v367_v3 = vshra.s32 %v303_v52, 8  ;;  %v8506_v52 = vld [vmem:[#allocation14_spill] sm:$0xff] }
 0x7ce   :  { %4511 = vmatpush1.bf16.msra.mxu0 %v4510_v59  ;;  %4525 = vmatprep.subr.bf16.mxu1 %v4524_v57  ;;  %v2309_v7 = vmul.f32 %v8346_v12, %v2307_v33  ;;  %v334_v60 = vadd.s32 304, %v8466_v0  ;;  %v335_v47 = vadd.s32 312, %v8466_v0  ;;  %v320_v39 = vadd.s32 192, %v8466_v0 }
 0x7cf   :  { %4527 = vmatpush1.bf16.msra.mxu1 %v4526_v32  ;;  %v2302_v50 = vpop.permute.xlu1 %2301  ;;  %v321_v57 = vadd.s32 200, %v8466_v0  ;;  %vm7362_vm1 = vcmp.eq.s32.totalorder %v415_v27, %v4860_v15  ;;  %vm7370_vm15 = vcmp.eq.s32.totalorder %v366_v38, %v4860_v15  ;;  %vm7378_vm10 = vcmp.eq.s32.totalorder %v367_v3, %v4860_v15 }
 0x7d0   :  { %v2306_v25 = vsel %vm8502_vm11, %v2300_v19, %v2302_v50  ;;  %v2304_v37 = vpop.permute.xlu0 %2303  ;;  %v7357_v19 = vmul.f32 0.00390625, %v4024_v49  ;;  %v4514_v49 = vpack.c.bf16 %v2309_v7, %v6947_v58  ;;  %v398_v35 = vshra.s32 %v334_v60, 8 }
 0x7d1   :  { %v2310_v14 = vmul.f32 %v8503_v18, %v2306_v25  ;;  %v2305_v45 = vsel %vm8504_vm6, %v2302_v50, %v2304_v37  ;;  %v2308_v4 = vsel %vm8505_vm14, %v2304_v37, %v2298_v21  ;;  %v4055_v21 = vsel %vm7340_vm4, 1.0, %v8462_v10 }
 0x7d2   :  { %v2311_v12 = vmul.f32 %v8367_v46, %v2305_v45  ;;  %v2312_v59 = vmul.f32 %v8506_v52, %v2308_v4  ;;  %v399_v18 = vshra.s32 %v335_v47, 8  ;;  %v352_v38 = vadd.s32 448, %v8466_v0 }
 0x7d3   :  { %v2314_v11 = vpop.permute.xlu1 %2313  ;;  %v4512_v32 = vpack.c.bf16 %v2310_v14, %v6952_v36  ;;  %v384_v14 = vshra.s32 %v320_v39, 8  ;;  %v385_v4 = vshra.s32 %v321_v57, 8  ;;  %v4056_v47 = vsel %vm7362_vm1, 1.0, %v8462_v10 }
 0x7d4   :  { %v4530_v50 = vpack.c.bf16 %v2311_v12, %v6960_v26  ;;  %v2316_v25 = vpop.permute.xlu0 %2315  ;;  %v4528_v37 = vpack.c.bf16 %v2312_v59, %v6970_v23  ;;  %v4007_v39 = vsel %vm7370_vm15, 1.0, %v8462_v10  ;;  %v353_v52 = vadd.s32 456, %v8466_v0 }
 0x7d5   :  { %4513 = vmatprep.subr.bf16.mxu0 %v4512_v32  ;;  %v4008_v33 = vsel %vm7378_vm10, 1.0, %v8462_v10  ;;  %vm462_vm2 = vcmp.eq.s32.totalorder %v398_v35, %v4860_v15  ;;  %vm463_vm7 = vcmp.eq.s32.totalorder %v399_v18, %v4860_v15  ;;  %vm448_vm12 = vcmp.eq.s32.totalorder %v384_v14, %v4860_v15 }
 0x7d6   :  { %4515 = vmatpush1.bf16.msra.mxu0 %v4514_v49  ;;  %4529 = vmatprep.subr.bf16.mxu1 %v4528_v37  ;;  %v7402_v49 = vmul.f32 0.00390625, %v4055_v21  ;;  %v416_v46 = vshra.s32 %v352_v38, 8  ;;  %v7412_v37 = vmul.f32 0.00390625, %v4007_v39  ;;  %vm449_vm5 = vcmp.eq.s32.totalorder %v385_v4, %v4860_v15 }
 0x7d7   :  { %4531 = vmatpush1.bf16.msra.mxu1 %v4530_v50  ;;  %v2318_v12 = vpop.permute.xlu1 %2317  ;;  %v7410_v50 = vmul.f32 0.00390625, %v4056_v47  ;;  %v304_v21 = vadd.s32 64, %v8466_v0  ;;  %v2323_v57 = vsel %vm1136_vm3, %v2314_v11, %v2316_v25  ;;  %v7418_v32 = vmul.f32 0.00390625, %v4008_v33 }
 0x7d8   :  { %v2320_v59 = vpop.permute.xlu0 %2319  ;;  %v417_v35 = vshra.s32 %v353_v52, 8  ;;  %v305_v18 = vadd.s32 72, %v8466_v0  ;;  %v2322_v14 = vsel %vm1136_vm3, %v2316_v25, %v2318_v12  ;;  %v4039_v47 = vsel %vm462_vm2, 1.0, %v8462_v10 }
 0x7d9   :  { %v4040_v39 = vsel %vm463_vm7, 1.0, %v8462_v10  ;;  %v4025_v4 = vsel %vm448_vm12, 1.0, %v8462_v10  ;;  %v2321_v60 = vsel %vm1136_vm3, %v2318_v12, %v2320_v59  ;;  %v4026_v52 = vsel %vm449_vm5, 1.0, %v8462_v10 }
 0x7da   :  { %vm480_vm8 = vcmp.eq.s32.totalorder %v416_v46, %v4860_v15  ;;  %v2325_v3 = vmul.f32 %v8389_v55, %v2323_v57  ;;  %v2324_v25 = vsel %vm1136_vm3, %v2320_v59, %v2314_v11  ;;  %v368_v45 = vshra.s32 %v304_v21, 8 }
 0x7db   :  { %v2330_v27 = vpop.permute.xlu1 %2329  ;;  %v336_v7 = vadd.s32 320, %v8466_v0  ;;  %v2326_v23 = vmul.f32 %v8390_v34, %v2322_v14  ;;  %vm481_vm4 = vcmp.eq.s32.totalorder %v417_v35, %v4860_v15  ;;  %v369_v12 = vshra.s32 %v305_v18, 8 }
 0x7dc   :  { %v2332_v38 = vpop.permute.xlu0 %2331  ;;  %v337_v26 = vadd.s32 328, %v8466_v0  ;;  %v2327_v58 = vmul.f32 %v8392_v20, %v2321_v60  ;;  %v4057_v11 = vsel %vm480_vm8, 1.0, %v8462_v10  ;;  %v2328_v59 = vmul.f32 %v8393_v28, %v2324_v25  ;;  %v2361_v28 = vld [vmem:[%s7935_s3 + $0x60] sm:$0xff] }
 0x7dd   :  { %v2339_v33 = vsel %vm1153_vm9, %v2330_v27, %v2332_v38  ;;  %v4058_v60 = vsel %vm481_vm4, 1.0, %v8462_v10  ;;  %vm432_vm3 = vcmp.eq.s32.totalorder %v368_v45, %v4860_v15  ;;  %vm7455_vm11 = vcmp.eq.s32.totalorder %v369_v12, %v4860_v15 }
 0x7de   :  { %v2341_v46 = vmul.f32 %v8405_v63, %v2339_v33  ;;  %v401_v25 = vshra.s32 %v337_v26, 8  ;;  %v7464_v45 = vmul.f32 0.00390625, %v4025_v4  ;;  %v7467_v12 = vmul.f32 0.00390625, %v4026_v52 }
 0x7df   :  { %v2334_v36 = vpop.permute.xlu1 %2333  ;;  %v323_v4 = vadd.s32 216, %v8466_v0 }
 0x7e0   :  { %v2338_v55 = vsel %vm1153_vm9, %v2332_v38, %v2334_v36  ;;  %v2336_v57 = vpop.permute.xlu0 %2335  ;;  %v4518_v38 = vpack.c.bf16 %v2341_v46, %v2325_v3  ;;  %v7471_v3 = vmul.f32 0.00390625, %v4058_v60  ;;  %vm465_vm6 = vcmp.eq.s32.totalorder %v401_v25, %v4860_v15 }
 0x7e1   :  { %v2342_v34 = vmul.f32 %v8413_v17, %v2338_v55  ;;  %v2337_v21 = vsel %vm1153_vm9, %v2334_v36, %v2336_v57  ;;  %v2340_v35 = vsel %vm1153_vm9, %v2336_v57, %v2330_v27  ;;  %v400_v17 = vshra.s32 %v336_v7, 8 }
 0x7e2   :  { %v2343_v20 = vmul.f32 %v8417_v56, %v2337_v21  ;;  %v2344_v63 = vmul.f32 %v8421_v43, %v2340_v35  ;;  %v322_v36 = vadd.s32 208, %v8466_v0  ;;  %v7460_v43 = vmul.f32 0.00390625, %v4039_v47 }
 0x7e3   :  { %v2346_v18 = vpop.permute.xlu1 %2345  ;;  %v4516_v14 = vpack.c.bf16 %v2342_v34, %v2326_v23  ;;  %v7462_v55 = vmul.f32 0.00390625, %v4040_v39  ;;  %v4009_v23 = vsel %vm432_vm3, 1.0, %v8462_v10  ;;  %v7469_v7 = vmul.f32 0.00390625, %v4057_v11 }
 0x7e4   :  { %v4534_v27 = vpack.c.bf16 %v2343_v20, %v2327_v58  ;;  %v2348_v33 = vpop.permute.xlu0 %2347  ;;  %v4532_v56 = vpack.c.bf16 %v2344_v63, %v2328_v59  ;;  %v4010_v58 = vsel %vm7455_vm11, 1.0, %v8462_v10  ;;  %vm7479_vm9 = vcmp.eq.s32.totalorder %v400_v17, %v4860_v15 }
 0x7e5   :  { %4517 = vmatprep.subr.bf16.mxu0 %v4516_v14  ;;  %v2355_v26 = vsel %vm1170_vm0, %v2346_v18, %v2348_v33  ;;  %v386_v52 = vshra.s32 %v322_v36, 8  ;;  %v7486_v11 = vmul.f32 0.00390625, %v4009_v23  ;;  %v354_v59 = vadd.s32 464, %v8466_v0 }
 0x7e6   :  { %4519 = vmatpush1.bf16.msra.mxu0 %v4518_v38  ;;  %4533 = vmatprep.subr.bf16.mxu1 %v4532_v56  ;;  %v7495_v20 = vmul.f32 0.00390625, %v4010_v58  ;;  %v2357_v63 = vmul.f32 %v8442_v48, %v2355_v26  ;;  %v4042_v17 = vsel %vm465_vm6, 1.0, %v8462_v10  ;;  %v355_v48 = vadd.s32 472, %v8466_v0  ;;  %v2362_v58 = vld [vmem:[%s7935_s3 + $0x78] sm:$0xff] }
 0x7e7   :  { %4535 = vmatpush1.bf16.msra.mxu1 %v4534_v27  ;;  %v2350_v47 = vpop.permute.xlu1 %2349  ;;  %v307_v38 = vadd.s32 88, %v8466_v0  ;;  %v338_v27 = vadd.s32 336, %v8466_v0  ;;  %v4550_v56 = vpack.c.bf16 %v7418_v32, %v7412_v37  ;;  %v4582_v25 = vpack.c.bf16 %v7462_v55, %v7460_v43  ;;  %v2366_v43 = vld [vmem:[%s7935_s3 + $0xd8] sm:$0xff] }
 0x7e8   :  { %v2354_v46 = vsel %vm1170_vm0, %v2348_v33, %v2350_v47  ;;  %v2352_v57 = vpop.permute.xlu0 %2351  ;;  %v4580_v33 = vpack.c.bf16 %v7410_v50, %v7402_v49  ;;  %v339_v23 = vadd.s32 344, %v8466_v0  ;;  %v4552_v26 = vpack.c.bf16 %v7467_v12, %v7464_v45 }
 0x7e9   :  { %v2358_v34 = vmul.f32 %v8446_v2, %v2354_v46  ;;  %v2353_v21 = vsel %vm1170_vm0, %v2350_v47, %v2352_v57  ;;  %v2356_v35 = vsel %vm1170_vm0, %v2352_v57, %v2346_v18  ;;  %v4041_v2 = vsel %vm7479_vm9, 1.0, %v8462_v10 }
 0x7ea   :  { %v2359_v60 = vmul.f32 %v8459_v30, %v2353_v21  ;;  %v2360_v14 = vmul.f32 %v8460_v8, %v2356_v35  ;;  %v387_v18 = vshra.s32 %v323_v4, 8  ;;  %vm7508_vm0 = vcmp.eq.s32.totalorder %v386_v52, %v4860_v15  ;;  %v8519_v52 = vld [vmem:[#allocation64_spill] sm:$0xff] }
 0x7eb   :  { %2497 = vmatprep.subr.mxu0 %v2358_v34  ;;  %v418_v30 = vshra.s32 %v354_v59, 8  ;;  %v306_v8 = vadd.s32 80, %v8466_v0  ;;  %v4584_v47 = vpack.c.bf16 %v7471_v3, %v7469_v7  ;;  %v7533_v39 = vmul.f32 0.00390625, %v4041_v2  ;;  %v8523_v35 = vld [vmem:[#allocation44_spill] sm:$0xff]  ;;  %v2367_v7 = vld [vmem:[%s7935_s3 + $0xf0] sm:$0xff] }
 0x7ec   :  { %2498 = vmatpush1.msra.mxu0 %v2357_v63  ;;  %2634 = vmatprep.subr.mxu1 %v2360_v14  ;;  %v7535_v4 = vmul.f32 0.00390625, %v4042_v17  ;;  %v8520_v46 = vpack.c.bf16 %v7154_v44, %v8519_v52  ;;  %v4554_v57 = vpack.c.bf16 %v7495_v20, %v7486_v11  ;;  %vm7544_vm14 = vcmp.eq.s32.totalorder %v387_v18, %v4860_v15  ;;  %v8524_v63 = vld [vmem:[#allocation83_spill] sm:$0xff]  ;;  %v8526_v14 = vld [vmem:[#allocation85_spill] sm:$0xff] }
 0x7ed   :  { %4085 = vmatmul.mubr.msk.f32.vlgmr.msra.gmra.mrb[14].mxu0 %vm1207_vm13, %v2361_v28  ;;  %2635 = vmatpush1.msra.mxu1 %v2359_v60  ;;  %v4027_v34 = vsel %vm7508_vm0, 1.0, %v8462_v10  ;;  %v419_v21 = vshra.s32 %v355_v48, 8  ;;  %v8525_v60 = vpack.c.bf16 %v8523_v35, %v8524_v63  ;;  %v8527_v44 = vld [vmem:[#allocation13_spill] sm:$0xff]  ;;  %vm7558_vm1 = vcmp.eq.s32.totalorder %v418_v30, %v4860_v15  ;;  %v2363_v30 = vld [vmem:[%s7935_s3 + $0x90] sm:$0xff] }
 0x7ee   :  { %4097 = vmatmul.mubr.msk.f32.vlgmr.msra.gmra.mrb[14].mxu1 %vm1207_vm13, %v2361_v28  ;;  %2551 = vmatprep.mubr.f32.mxu0 %v8462_v10  ;;  %v8528_v28 = vpack.c.bf16 %v8526_v14, %v8527_v44  ;;  %v370_v17 = vshra.s32 %v306_v8, 8  ;;  %v371_v18 = vshra.s32 %v307_v38, 8  ;;  %v402_v52 = vshra.s32 %v338_v27, 8 }
 0x7ef   :  { %2688 = vmatprep.mubr.f32.mxu1 %v8462_v10  ;;  %4537 = vmatprep.subr.bf16.mxu0 %v8520_v46  ;;  %v8531_v36 = vpack.c.bf16 %v7184_v42, %v7178_v62  ;;  %v403_v48 = vshra.s32 %v339_v23, 8  ;;  %v324_v46 = vadd.s32 224, %v8466_v0  ;;  %v325_v35 = vadd.s32 232, %v8466_v0 }
 0x7f0   :  { %4569 = vmatprep.subr.bf16.mxu1 %v8525_v60  ;;  %4539 = vmatpush3.bf16.msra.mxu0 %v8528_v28  ;;  %v356_v63 = vadd.s32 480, %v8466_v0  ;;  %v4586_v8 = vpack.c.bf16 %v7535_v4, %v7533_v39  ;;  %v357_v62 = vadd.s32 488, %v8466_v0  ;;  %v308_v42 = vadd.s32 96, %v8466_v0  ;;  %v2368_v39 = vld [vmem:[%s7935_s3 + $0x108] sm:$0xff]  ;;  %v2369_v4 = vld [vmem:[%s7935_s3 + $0x120] sm:$0xff] }
 0x7f1   :  { %4086 = vmatmul.mubr.msk.f32.gmra.mrb[16].mxu0 %vm1207_vm13, %v2362_v58  ;;  %4571 = vmatpush3.bf16.msra.mxu1 %v8531_v36  ;;  %v309_v38 = vadd.s32 104, %v8466_v0  ;;  %v8532_v27 = vpack.c.bf16 %v7194_v54, %v7188_v6  ;;  %v4028_v23 = vsel %vm7544_vm14, 1.0, %v8462_v10  ;;  %vm7589_vm15 = vcmp.eq.s32.totalorder %v419_v21, %v4860_v15  ;;  %v8536_v54 = vld [vmem:[#allocation65_spill] sm:$0xff] }
 0x7f2   :  { %4098 = vmatmul.mubr.msk.f32.gmra.mrb[16].mxu1 %vm1207_vm13, %v2362_v58  ;;  %2557 = vmatprep.mubr.f32.mxu0 %v8462_v10  ;;  %v7586_v58 = vmul.f32 0.00390625, %v4027_v34  ;;  %v340_v14 = vadd.s32 352, %v8466_v0  ;;  %v8535_v44 = vpack.c.bf16 %v7203_v9, %v7196_v61  ;;  %v8537_v6 = vpack.c.bf16 %v7236_v41, %v8536_v54 }
 0x7f3   :  { %2694 = vmatprep.mubr.f32.mxu1 %v8462_v10  ;;  %4541 = vmatprep.subr.bf16.mxu0 %v8532_v27  ;;  %v4059_v59 = vsel %vm7558_vm1, 1.0, %v8462_v10  ;;  %vm7604_vm10 = vcmp.eq.s32.totalorder %v370_v17, %v4860_v15  ;;  %vm7609_vm2 = vcmp.eq.s32.totalorder %v371_v18, %v4860_v15  ;;  %vm7614_vm7 = vcmp.eq.s32.totalorder %v402_v52, %v4860_v15  ;;  %v2364_v18 = vld [vmem:[%s7935_s3 + $0xa8] sm:$0xff] }
 0x7f4   :  { %4573 = vmatprep.subr.bf16.mxu1 %v8535_v44  ;;  %4543 = vmatpush3.bf16.msra.mxu0 %v8537_v6  ;;  %v8544_v9 = vpack.c.bf16 %v7270_v53, %v7263_v29  ;;  %vm7623_vm12 = vcmp.eq.s32.totalorder %v403_v48, %v4860_v15  ;;  %v388_v28 = vshra.s32 %v324_v46, 8  ;;  %v389_v2 = vshra.s32 %v325_v35, 8 }
 0x7f5   :  { %4087 = vmatmul.mubr.msk.f32.gmra.mrb[18].mxu0 %vm1207_vm13, %v2363_v30  ;;  %v420_v17 = vshra.s32 %v356_v63, 8  ;;  %v421_v52 = vshra.s32 %v357_v62, 8  ;;  %v372_v36 = vshra.s32 %v308_v42, 8  ;;  %v373_v29 = vshra.s32 %v309_v38, 8 }
 0x7f6   :  { %4575 = vmatpush3.bf16.msra.mxu1 %v8544_v9  ;;  %2563 = vmatprep.mubr.f32.mxu0 %v8462_v10  ;;  %v341_v53 = vadd.s32 360, %v8466_v0  ;;  %v8547_v48 = vpack.c.bf16 %v7274_v22, %v7272_v51  ;;  %v7637_v46 = vmul.f32 0.00390625, %v4028_v23  ;;  %v4060_v35 = vsel %vm7589_vm15, 1.0, %v8462_v10 }
 0x7f7   :  { %4099 = vmatmul.mubr.msk.f32.gmra.mrb[18].mxu1 %vm1207_vm13, %v2363_v30  ;;  %v7642_v63 = vmul.f32 0.00390625, %v4059_v59  ;;  %v404_v30 = vshra.s32 %v340_v14, 8  ;;  %v8548_v62 = vpack.c.bf16 %v7321_v16, %v7283_v40  ;;  %v8549_v42 = vpack.c.bf16 %v7328_v13, %v7326_v1 }
 0x7f8   :  { %2700 = vmatprep.mubr.f32.mxu1 %v8462_v10  ;;  %4545 = vmatprep.subr.bf16.mxu0 %v8547_v48  ;;  %v4011_v51 = vsel %vm7604_vm10, 1.0, %v8462_v10  ;;  %v4012_v22 = vsel %vm7609_vm2, 1.0, %v8462_v10  ;;  %v4043_v38 = vsel %vm7614_vm7, 1.0, %v8462_v10  ;;  %v405_v27 = vshra.s32 %v341_v53, 8 }
 0x7f9   :  { %4577 = vmatprep.subr.bf16.mxu1 %v8548_v62  ;;  %4547 = vmatpush3.bf16.msra.mxu0 %v8549_v42  ;;  %v8550_v40 = vpack.c.bf16 %v7332_v5, %v7330_v31  ;;  %v4044_v16 = vsel %vm7623_vm12, 1.0, %v8462_v10  ;;  %vm7667_vm5 = vcmp.eq.s32.totalorder %v388_v28, %v4860_v15  ;;  %vm7672_vm8 = vcmp.eq.s32.totalorder %v389_v2, %v4860_v15  ;;  %v2365_v31 = vld [vmem:[%s7935_s3 + $0xc0] sm:$0xff] }
 0x7fa   :  { %4088 = vmatmul.mubr.msk.f32.gmra.mrb[20].mxu0 %vm1207_vm13, %v2364_v18  ;;  %vm7677_vm4 = vcmp.eq.s32.totalorder %v420_v17, %v4860_v15  ;;  %v675_v5 = vmul.f32 0.00390625, %v4060_v35  ;;  %vm7687_vm3 = vcmp.eq.s32.totalorder %v421_v52, %v4860_v15  ;;  %vm7692_vm11 = vcmp.eq.s32.totalorder %v372_v36, %v4860_v15  ;;  %v2372_v36 = vld [vmem:[%s7935_s3 + $0x168] sm:$0xff] }
 0x7fb   :  { %4579 = vmatpush3.bf16.msra.mxu1 %v8550_v40  ;;  %2569 = vmatprep.mubr.f32.mxu0 %v8462_v10  ;;  %vm7697_vm9 = vcmp.eq.s32.totalorder %v373_v29, %v4860_v15  ;;  %v8563_v54 = vpack.c.bf16 %v7357_v19, %v7337_v24  ;;  %v626_v6 = vmul.f32 0.00390625, %v4011_v51  ;;  %v627_v59 = vmul.f32 0.00390625, %v4012_v22 }
 0x7fc   :  { %4100 = vmatmul.mubr.msk.f32.gmra.mrb[20].mxu1 %vm1207_vm13, %v2364_v18  ;;  %vm7706_vm6 = vcmp.eq.s32.totalorder %v404_v30, %v4860_v15  ;;  %vm7711_vm0 = vcmp.eq.s32.totalorder %v405_v27, %v4860_v15  ;;  %4581 = vmatprep.subr.bf16.mxu1 %v4580_v33  ;;  %v658_v24 = vmul.f32 0.00390625, %v4043_v38  ;;  %v659_v19 = vmul.f32 0.00390625, %v4044_v16 }
 0x7fd   :  { %2706 = vmatprep.mubr.f32.mxu1 %v8462_v10  ;;  %4549 = vmatprep.subr.bf16.mxu0 %v8563_v54  ;;  %v4029_v61 = vsel %vm7667_vm5, 1.0, %v8462_v10  ;;  %v4030_v9 = vsel %vm7672_vm8, 1.0, %v8462_v10  ;;  %v4061_v32 = vsel %vm7677_vm4, 1.0, %v8462_v10  ;;  %v4062_v49 = vsel %vm7687_vm3, 1.0, %v8462_v10 }
 0x7fe   :  { %4551 = vmatpush3.bf16.msra.mxu0 %v4550_v56  ;;  %v4013_v50 = vsel %vm7692_vm11, 1.0, %v8462_v10  ;;  %v4014_v37 = vsel %vm7697_vm9, 1.0, %v8462_v10  ;;  %v4556_v55 = vpack.c.bf16 %v7637_v46, %v7586_v58  ;;  %v4045_v33 = vsel %vm7706_vm6, 1.0, %v8462_v10 }
 0x7ff   :  { %4089 = vmatmul.mubr.msk.f32.gmra.mrb[22].mxu0 %vm1207_vm13, %v2365_v31  ;;  %4583 = vmatpush3.bf16.msra.mxu1 %v4582_v25  ;;  %v4046_v56 = vsel %vm7711_vm0, 1.0, %v8462_v10  ;;  %v4588_v25 = vpack.c.bf16 %v675_v5, %v7642_v63  ;;  %v4558_v41 = vpack.c.bf16 %v627_v59, %v626_v6  ;;  %v644_v28 = vmul.f32 0.00390625, %v4029_v61 }
 0x800   :  { %4101 = vmatmul.mubr.msk.f32.gmra.mrb[22].mxu1 %vm1207_vm13, %v2365_v31  ;;  %2575 = vmatprep.mubr.f32.mxu0 %v8462_v10  ;;  %v645_v2 = vmul.f32 0.00390625, %v4030_v9  ;;  %v676_v58 = vmul.f32 0.00390625, %v4061_v32  ;;  %v677_v17 = vmul.f32 0.00390625, %v4062_v49  ;;  %v628_v18 = vmul.f32 0.00390625, %v4013_v50 }
 0x801   :  { %2712 = vmatprep.mubr.f32.mxu1 %v8462_v10  ;;  %4553 = vmatprep.subr.bf16.mxu0 %v4552_v26  ;;  %v629_v52 = vmul.f32 0.00390625, %v4014_v37  ;;  %v4590_v45 = vpack.c.bf16 %v659_v19, %v658_v24  ;;  %v660_v12 = vmul.f32 0.00390625, %v4045_v33  ;;  %v661_v26 = vmul.f32 0.00390625, %v4046_v56 }
 0x802   :  { %4585 = vmatprep.subr.bf16.mxu1 %v4584_v47  ;;  %4555 = vmatpush3.bf16.msra.mxu0 %v4554_v57  ;;  %v4560_v3 = vpack.c.bf16 %v645_v2, %v644_v28  ;;  %v4592_v11 = vpack.c.bf16 %v677_v17, %v676_v58  ;;  %v2370_v57 = vld [vmem:[%s7935_s3 + $0x138] sm:$0xff]  ;;  %v326_v29 = vadd.s32 240, %v8466_v0  ;;  %v327_v53 = vadd.s32 248, %v8466_v0 }
 0x803   :  { %4090 = vmatmul.mubr.msk.f32.gmra.mrb[24].mxu0 %vm1207_vm13, %v2366_v43  ;;  %4587 = vmatpush3.bf16.msra.mxu1 %v4586_v8  ;;  %v4562_v20 = vpack.c.bf16 %v629_v52, %v628_v18  ;;  %v4594_v47 = vpack.c.bf16 %v661_v26, %v660_v12  ;;  %v2371_v8 = vld [vmem:[%s7935_s3 + $0x150] sm:$0xff]  ;;  %v358_v48 = vadd.s32 496, %v8466_v0  ;;  %v359_v46 = vadd.s32 504, %v8466_v0  ;;  %v2393_v18 = vpop.permute.xlu0 %2392 }
 0x804   :  { %4102 = vmatmul.mubr.msk.f32.gmra.mrb[24].mxu1 %vm1207_vm13, %v2366_v43  ;;  %2581 = vmatprep.mubr.f32.mxu0 %v8462_v10  ;;  %v310_v35 = vadd.s32 112, %v8466_v0  ;;  %v311_v63 = vadd.s32 120, %v8466_v0  ;;  %v390_v30 = vshra.s32 %v326_v29, 8  ;;  %v391_v62 = vshra.s32 %v327_v53, 8 }
 0x805   :  { %2718 = vmatprep.mubr.f32.mxu1 %v8462_v10  ;;  %4557 = vmatprep.subr.bf16.mxu0 %v4556_v55  ;;  %v342_v42 = vadd.s32 368, %v8466_v0  ;;  %v343_v51 = vadd.s32 376, %v8466_v0  ;;  %v422_v22 = vshra.s32 %v358_v48, 8  ;;  %v423_v38 = vshra.s32 %v359_v46, 8  ;;  %v2388_v55 = vpop.permute.xlu1 %2387 }
 0x806   :  { %4589 = vmatprep.subr.bf16.mxu1 %v4588_v25  ;;  %4559 = vmatpush3.bf16.msra.mxu0 %v4558_v41  ;;  %v374_v27 = vshra.s32 %v310_v35, 8  ;;  %v375_v40 = vshra.s32 %v311_v63, 8  ;;  %vm455_vm14 = vcmp.eq.s32.totalorder %v391_v62, %v4860_v15  ;;  %v8568_v43 = vmov 0.0|0.0  }
 0x807   :  { %4091 = vmatmul.mubr.msk.f32.gmra.mrb[26].mxu0 %vm1207_vm13, %v2367_v7  ;;  %4591 = vmatpush3.bf16.msra.mxu1 %v4590_v45  ;;  %v406_v16 = vshra.s32 %v342_v42, 8  ;;  %v407_v1 = vshra.s32 %v343_v51, 8  ;;  %v4032_v23 = vsel %vm455_vm14, 1.0, %v8462_v10  ;;  %vm486_vm1 = vcmp.eq.s32.totalorder %v422_v22, %v4860_v15 }
 0x808   :  { %4103 = vmatmul.mubr.msk.f32.gmra.mrb[26].mxu1 %vm1207_vm13, %v2367_v7  ;;  %2587 = vmatprep.mubr.f32.mxu0 %v8462_v10  ;;  %vm487_vm15 = vcmp.eq.s32.totalorder %v423_v38, %v4860_v15  ;;  %v647_v5 = vmul.f32 0.00390625, %v4032_v23  ;;  %v4063_v60 = vsel %vm486_vm1, 1.0, %v8462_v10  ;;  %vm438_vm10 = vcmp.eq.s32.totalorder %v374_v27, %v4860_v15  ;;  %v2403_v38 = vpop.permute.xlu0 %2402 }
 0x809   :  { %2724 = vmatprep.mubr.f32.mxu1 %v8462_v10  ;;  %4561 = vmatprep.subr.bf16.mxu0 %v4560_v3  ;;  %v4064_v14 = vsel %vm487_vm15, 1.0, %v8462_v10  ;;  %v678_v44 = vmul.f32 0.00390625, %v4063_v60  ;;  %vm439_vm2 = vcmp.eq.s32.totalorder %v375_v40, %v4860_v15  ;;  %v4015_v59 = vsel %vm438_vm10, 1.0, %v8462_v10 }
 0x80a   :  { %4593 = vmatprep.subr.bf16.mxu1 %v4592_v11  ;;  %4563 = vmatpush3.bf16.msra.mxu0 %v4562_v20  ;;  %v679_v54 = vmul.f32 0.00390625, %v4064_v14  ;;  %v4016_v34 = vsel %vm439_vm2, 1.0, %v8462_v10  ;;  %vm470_vm7 = vcmp.eq.s32.totalorder %v406_v16, %v4860_v15  ;;  %v630_v24 = vmul.f32 0.00390625, %v4015_v59 }
 0x80b   :  { %4092 = vmatmul.mubr.msk.f32.gmra.mrb[28].mxu0 %vm1207_vm13, %v2368_v39  ;;  %4595 = vmatpush3.bf16.msra.mxu1 %v4594_v47  ;;  %v631_v19 = vmul.f32 0.00390625, %v4016_v34  ;;  %vm471_vm12 = vcmp.eq.s32.totalorder %v407_v1, %v4860_v15  ;;  %v4047_v61 = vsel %vm470_vm7, 1.0, %v8462_v10  ;;  %vm8569_vm5 = vmmov 0  }
 0x80c   :  { %4104 = vmatmul.mubr.msk.f32.gmra.mrb[28].mxu1 %vm1207_vm13, %v2368_v39  ;;  %2593 = vmatprep.mubr.f32.mxu0 %v8462_v10  ;;  %v4596_v21 = vpack.c.bf16 %v679_v54, %v678_v44  ;;  %v4048_v9 = vsel %vm471_vm12, 1.0, %v8462_v10  ;;  %v662_v49 = vmul.f32 0.00390625, %v4047_v61  ;;  %vm3102_vm8 = vcmask 785408  }
 0x80d   :  { %2730 = vmatprep.mubr.f32.mxu1 %v8462_v10  ;;  %v4566_v32 = vpack.c.bf16 %v631_v19, %v630_v24  ;;  %v663_v50 = vmul.f32 0.00390625, %v4048_v9  ;;  %vm8570_vm4 = vcmask 130048   ;;  %vm3188_vm0 = vcmp.ge.s32.totalorder %v4860_v15, 32 }
 0x80e   :  { %4597 = vmatprep.subr.bf16.mxu1 %v4596_v21  ;;  %vm8571_vm3 = vmmov %vm8570_vm4  ;;  %vm3176_vm14 = vcmp.eq.s32.totalorder %v4860_v15, 80 }
 0x80f   :  { %4093 = vmatmul.mubr.msk.f32.gmra.mrb[30].mxu0 %vm1207_vm13, %v2369_v4  ;;  %v4598_v37 = vpack.c.bf16 %v663_v50, %v662_v49  ;;  %vm8572_vm11 = vmmov %vm8571_vm3 }
 0x810   :  { %4105 = vmatmul.mubr.msk.f32.gmra.mrb[30].mxu1 %vm1207_vm13, %v2369_v4  ;;  %2599 = vmatprep.mubr.f32.mxu0 %v8462_v10  ;;  %vm8573_vm9 = vmmov %vm8571_vm3 }
 0x811   :  { %2736 = vmatprep.mubr.f32.mxu1 %v8462_v10  ;;  %4599 = vmatpush3.bf16.msra.mxu1 %v4598_v37  ;;  %vm8574_vm6 = vmmov %vm8571_vm3 }
 0x812   :  { %4618 = vmatprep.subr.bf16.mxu1 %v8568_v43 }
 0x813   :  { %4094 = vmatmul.mubr.msk.f32.gmra.mrb[32].mxu0 %vm1207_vm13, %v2370_v57 }
 0x814   :  { %4106 = vmatmul.mubr.msk.f32.gmra.mrb[32].mxu1 %vm1207_vm13, %v2370_v57  ;;  %2605 = vmatprep.mubr.f32.mxu0 %v8462_v10 }
 0x815   :  { %2742 = vmatprep.mubr.f32.mxu1 %v8462_v10 }
 0x817   :  { %4095 = vmatmul.mubr.msk.f32.gmra.mrb[34].mxu0 %vm1207_vm13, %v2371_v8 }
 0x818   :  { %4107 = vmatmul.mubr.msk.f32.gmra.mrb[34].mxu1 %vm1207_vm13, %v2371_v8  ;;  %2611 = vmatprep.mubr.f32.mxu0 %v8462_v10  ;;  %v2398_v8 = vpop.permute.xlu1 %2397 }
 0x819   :  { %2748 = vmatprep.mubr.f32.mxu1 %v8462_v10 }
 0x81b   :  { %4096 = vmatmul.mubr.msk.f32.gmra.mrb[36].mxu0 %vm1207_vm13, %v2372_v36 }
 0x81c   :  { %4108 = vmatmul.mubr.msk.f32.gmra.mrb[36].mxu1 %vm1207_vm13, %v2372_v36  ;;  %vm454_vm13 = vcmp.eq.s32.totalorder %v390_v30, %v4860_v15 }
 0x81d   :  { %v4031_v13 = vsel %vm454_vm13, 1.0, %v8462_v10  ;;  %vm3189_vm13 = vcmp.lt.s32.totalorder %v4860_v15, 40  ;;  %v3326_v15 = vsub.s32 2, %v8466_v0 }
 0x81e   :  { %v646_v31 = vmul.f32 0.00390625, %v4031_v13  ;;  %vm3190_vm1 = vmand %vm3188_vm0, %vm3189_vm13 }
 0x820   :  { %v4564_v6 = vpack.c.bf16 %v647_v5, %v646_v31 }
 0x822   :  { %4565 = vmatprep.subr.bf16.mxu0 %v4564_v6  ;;  %v2408_v6 = vpop.permute.xlu1 %2407 }
 0x823   :  { %4567 = vmatpush3.bf16.msra.mxu0 %v4566_v32 }
 0x824   :  { %4600 = vmatprep.subr.bf16.mxu0 %v8568_v43 }
 0x8c0   :  { %v2547_v33 = vpop.f32.mrb[14].mxu0 }
 0x8c1   :  { %v2548_v56 = vadd.f32 %v2547_v33, %v2388_v55  ;;  %v2549_v25 = vpop.f32.mrb[15].mxu0  ;;  %v2684_v41 = vpop.f32.mrb[14].mxu1 }
 0x8c2   :  { %v2550_v28 = vadd.f32 %v2549_v25, %v2388_v55  ;;  %v2685_v2 = vadd.f32 %v2684_v41, %v2388_v55  ;;  %v2686_v58 = vpop.f32.mrb[15].mxu1  ;;  %v2413_v33 = vpop.permute.xlu0 %2412 }
 0x8c3   :  { %v2687_v17 = vadd.f32 %v2686_v58, %v2388_v55  ;;  %v2755_v12 = vmax.f32 %v2548_v56, 0.0 }
 0x8c4   :  { %v2756_v52 = vmax.f32 %v2550_v28, 0.0  ;;  %v2553_v45 = vpop.f32.mrb[16].mxu0  ;;  %v2757_v20 = vmax.f32 %v2685_v2, 0.0 }
 0x8c5   :  { %v2758_v26 = vmax.f32 %v2687_v17, 0.0  ;;  %v2554_v7 = vadd.f32 %v2553_v45, %v2393_v18  ;;  %v2555_v3 = vpop.f32.mrb[17].mxu0  ;;  %v2690_v11 = vpop.f32.mrb[16].mxu1 }
 0x8c6   :  { %v2556_v47 = vadd.f32 %v2555_v3, %v2393_v18  ;;  %v2691_v39 = vadd.f32 %v2690_v11, %v2393_v18  ;;  %v2692_v4 = vpop.f32.mrb[17].mxu1  ;;  %2867 = vmatprep.mubr.f32.mxu0 %v2756_v52 }
 0x8c7   :  { %v2693_v57 = vadd.f32 %v2692_v4, %v2393_v18  ;;  %2868 = vmatmul.mubr.f32.vlgmr.msra.gmra.mrb[38].mxu0 %v2755_v12  ;;  %2992 = vmatprep.mubr.f32.mxu1 %v2758_v26  ;;  %v2759_v53 = vmax.f32 %v2554_v7, 0.0  ;;  %v2418_v7 = vpop.permute.xlu1 %2417 }
 0x8c8   :  { %v2760_v36 = vmax.f32 %v2556_v47, 0.0  ;;  %v2559_v29 = vpop.f32.mrb[18].mxu0  ;;  %2993 = vmatmul.mubr.f32.vlgmr.msra.gmra.mrb[38].mxu1 %v2757_v20  ;;  %v2761_v30 = vmax.f32 %v2691_v39, 0.0 }
 0x8c9   :  { %v2762_v48 = vmax.f32 %v2693_v57, 0.0  ;;  %v2560_v46 = vadd.f32 %v2559_v29, %v2398_v8  ;;  %v2561_v35 = vpop.f32.mrb[19].mxu0 }
 0x8ca   :  { %v2696_v63 = vpop.f32.mrb[18].mxu1  ;;  %v2562_v62 = vadd.f32 %v2561_v35, %v2398_v8  ;;  %2872 = vmatprep.mubr.f32.mxu0 %v2760_v36 }
 0x8cb   :  { %v2697_v42 = vadd.f32 %v2696_v63, %v2398_v8  ;;  %v2698_v51 = vpop.f32.mrb[19].mxu1  ;;  %2873 = vmatmul.mubr.f32.gmra.mrb[40].mxu0 %v2759_v53  ;;  %2997 = vmatprep.mubr.f32.mxu1 %v2762_v48  ;;  %v2763_v16 = vmax.f32 %v2560_v46, 0.0  ;;  %v2423_v46 = vpop.permute.xlu0 %2422 }
 0x8cc   :  { %v2699_v22 = vadd.f32 %v2698_v51, %v2398_v8  ;;  %v2764_v27 = vmax.f32 %v2562_v62, 0.0  ;;  %2998 = vmatmul.mubr.f32.gmra.mrb[40].mxu1 %v2761_v30 }
 0x8cd   :  { %v2565_v40 = vpop.f32.mrb[20].mxu0  ;;  %v2765_v5 = vmax.f32 %v2697_v42, 0.0 }
 0x8ce   :  { %v2766_v1 = vmax.f32 %v2699_v22, 0.0  ;;  %v2566_v13 = vadd.f32 %v2565_v40, %v2403_v38  ;;  %v2567_v23 = vpop.f32.mrb[21].mxu0  ;;  %2877 = vmatprep.mubr.f32.mxu0 %v2764_v27 }
 0x8cf   :  { %v2702_v31 = vpop.f32.mrb[20].mxu1  ;;  %v2568_v60 = vadd.f32 %v2567_v23, %v2403_v38  ;;  %2878 = vmatmul.mubr.f32.gmra.mrb[42].mxu0 %v2763_v16 }
 0x8d0   :  { %v2703_v14 = vadd.f32 %v2702_v31, %v2403_v38  ;;  %v2704_v44 = vpop.f32.mrb[21].mxu1  ;;  %3002 = vmatprep.mubr.f32.mxu1 %v2766_v1  ;;  %v2767_v21 = vmax.f32 %v2566_v13, 0.0  ;;  %v2428_v13 = vpop.permute.xlu1 %2427 }
 0x8d1   :  { %v2705_v54 = vadd.f32 %v2704_v44, %v2403_v38  ;;  %v2768_v59 = vmax.f32 %v2568_v60, 0.0  ;;  %3003 = vmatmul.mubr.f32.gmra.mrb[42].mxu1 %v2765_v5 }
 0x8d2   :  { %v2571_v34 = vpop.f32.mrb[22].mxu0  ;;  %v2769_v32 = vmax.f32 %v2703_v14, 0.0 }
 0x8d3   :  { %v2770_v24 = vmax.f32 %v2705_v54, 0.0  ;;  %v2572_v19 = vadd.f32 %v2571_v34, %v2408_v6  ;;  %v2573_v61 = vpop.f32.mrb[23].mxu0  ;;  %v2708_v9 = vpop.f32.mrb[22].mxu1  ;;  %2882 = vmatprep.mubr.f32.mxu0 %v2768_v59 }
 0x8d4   :  { %v2574_v49 = vadd.f32 %v2573_v61, %v2408_v6  ;;  %v2709_v50 = vadd.f32 %v2708_v9, %v2408_v6  ;;  %v2710_v37 = vpop.f32.mrb[23].mxu1  ;;  %2883 = vmatmul.mubr.f32.gmra.mrb[44].mxu0 %v2767_v21 }
 0x8d5   :  { %v2711_v55 = vadd.f32 %v2710_v37, %v2408_v6  ;;  %3007 = vmatprep.mubr.f32.mxu1 %v2770_v24  ;;  %v2771_v41 = vmax.f32 %v2572_v19, 0.0  ;;  %v2433_v19 = vpop.permute.xlu0 %2432 }
 0x8d6   :  { %v2772_v56 = vmax.f32 %v2574_v49, 0.0  ;;  %v2577_v25 = vpop.f32.mrb[24].mxu0  ;;  %3008 = vmatmul.mubr.f32.gmra.mrb[44].mxu1 %v2769_v32  ;;  %v2773_v18 = vmax.f32 %v2709_v50, 0.0 }
 0x8d7   :  { %v2774_v28 = vmax.f32 %v2711_v55, 0.0  ;;  %v2578_v2 = vadd.f32 %v2577_v25, %v2413_v33  ;;  %v2579_v58 = vpop.f32.mrb[25].mxu0  ;;  %v2714_v17 = vpop.f32.mrb[24].mxu1 }
 0x8d8   :  { %v2580_v52 = vadd.f32 %v2579_v58, %v2413_v33  ;;  %v2715_v45 = vadd.f32 %v2714_v17, %v2413_v33  ;;  %v2716_v12 = vpop.f32.mrb[25].mxu1  ;;  %2887 = vmatprep.mubr.f32.mxu0 %v2772_v56 }
 0x8d9   :  { %v2717_v26 = vadd.f32 %v2716_v12, %v2413_v33  ;;  %2888 = vmatmul.mubr.f32.gmra.mrb[46].mxu0 %v2771_v41  ;;  %3012 = vmatprep.mubr.f32.mxu1 %v2774_v28  ;;  %v2775_v20 = vmax.f32 %v2578_v2, 0.0  ;;  %v2438_v2 = vpop.permute.xlu1 %2437 }
 0x8da   :  { %v2776_v3 = vmax.f32 %v2580_v52, 0.0  ;;  %v2583_v11 = vpop.f32.mrb[26].mxu0  ;;  %3013 = vmatmul.mubr.f32.gmra.mrb[46].mxu1 %v2773_v18  ;;  %v2777_v8 = vmax.f32 %v2715_v45, 0.0 }
 0x8db   :  { %v2778_v47 = vmax.f32 %v2717_v26, 0.0  ;;  %v2584_v39 = vadd.f32 %v2583_v11, %v2418_v7  ;;  %v2585_v4 = vpop.f32.mrb[27].mxu0  ;;  %v2720_v57 = vpop.f32.mrb[26].mxu1 }
 0x8dc   :  { %v2586_v36 = vadd.f32 %v2585_v4, %v2418_v7  ;;  %v2721_v29 = vadd.f32 %v2720_v57, %v2418_v7  ;;  %v2722_v53 = vpop.f32.mrb[27].mxu1  ;;  %2892 = vmatprep.mubr.f32.mxu0 %v2776_v3 }
 0x8dd   :  { %v2723_v48 = vadd.f32 %v2722_v53, %v2418_v7  ;;  %2893 = vmatmul.mubr.f32.gmra.mrb[48].mxu0 %v2775_v20  ;;  %3017 = vmatprep.mubr.f32.mxu1 %v2778_v47  ;;  %v2779_v30 = vmax.f32 %v2584_v39, 0.0  ;;  %v2443_v39 = vpop.permute.xlu0 %2442 }
 0x8de   :  { %v2780_v35 = vmax.f32 %v2586_v36, 0.0  ;;  %v2589_v63 = vpop.f32.mrb[28].mxu0  ;;  %3018 = vmatmul.mubr.f32.gmra.mrb[48].mxu1 %v2777_v8  ;;  %v2781_v38 = vmax.f32 %v2721_v29, 0.0 }
 0x8df   :  { %v2782_v62 = vmax.f32 %v2723_v48, 0.0  ;;  %v2590_v42 = vadd.f32 %v2589_v63, %v2423_v46  ;;  %v2591_v51 = vpop.f32.mrb[29].mxu0  ;;  %v2726_v22 = vpop.f32.mrb[28].mxu1 }
 0x8e0   :  { %v2592_v27 = vadd.f32 %v2591_v51, %v2423_v46  ;;  %v2727_v40 = vadd.f32 %v2726_v22, %v2423_v46  ;;  %v2728_v16 = vpop.f32.mrb[29].mxu1  ;;  %2897 = vmatprep.mubr.f32.mxu0 %v2780_v35 }
 0x8e1   :  { %v2729_v1 = vadd.f32 %v2728_v16, %v2423_v46  ;;  %2898 = vmatmul.mubr.f32.gmra.mrb[50].mxu0 %v2779_v30  ;;  %3022 = vmatprep.mubr.f32.mxu1 %v2782_v62  ;;  %v2783_v5 = vmax.f32 %v2590_v42, 0.0  ;;  %v3055_v16 = vld [vmem:[#allocation2 + $0x10] sm:$0xff] }
 0x8e2   :  { %v2784_v23 = vmax.f32 %v2592_v27, 0.0  ;;  %v2595_v31 = vpop.f32.mrb[30].mxu0  ;;  %3023 = vmatmul.mubr.f32.gmra.mrb[50].mxu1 %v2781_v38  ;;  %v2785_v6 = vmax.f32 %v2727_v40, 0.0  ;;  %v3053_v27 = vld [vmem:[#allocation2] sm:$0xff]  ;;  %v3054_v40 = vld [vmem:[#allocation2 + $0x8] sm:$0xff] }
 0x8e3   :  { %v2786_v60 = vmax.f32 %v2729_v1, 0.0  ;;  %v2596_v14 = vadd.f32 %v2595_v31, %v2428_v13  ;;  %v2597_v44 = vpop.f32.mrb[31].mxu0  ;;  %v2732_v54 = vpop.f32.mrb[30].mxu1  ;;  %v4601_v1 = vpack.c.bf16 %v3054_v40, %v3053_v27  ;;  %v3057_v31 = vld [vmem:[#allocation2 + $0x20] sm:$0xff] }
 0x8e4   :  { %v2598_v59 = vadd.f32 %v2597_v44, %v2428_v13  ;;  %v2733_v34 = vadd.f32 %v2732_v54, %v2428_v13  ;;  %v2734_v21 = vpop.f32.mrb[31].mxu1  ;;  %2902 = vmatprep.mubr.f32.mxu0 %v2784_v23  ;;  %v3060_v44 = vld [vmem:[#allocation2 + $0x38] sm:$0xff] }
 0x8e5   :  { %v2735_v24 = vadd.f32 %v2734_v21, %v2428_v13  ;;  %2903 = vmatmul.mubr.f32.gmra.mrb[52].mxu0 %v2783_v5  ;;  %3027 = vmatprep.mubr.f32.mxu1 %v2786_v60  ;;  %v2787_v32 = vmax.f32 %v2596_v14, 0.0  ;;  %v3056_v13 = vld [vmem:[#allocation2 + $0x18] sm:$0xff]  ;;  %v3058_v5 = vld [vmem:[#allocation2 + $0x28] sm:$0xff]  ;;  %v3059_v14 = vld [vmem:[#allocation2 + $0x30] sm:$0xff] }
 0x8e6   :  { %v2788_v61 = vmax.f32 %v2598_v59, 0.0  ;;  %v2601_v9 = vpop.f32.mrb[32].mxu0  ;;  %3028 = vmatmul.mubr.f32.gmra.mrb[52].mxu1 %v2785_v6  ;;  %v2789_v33 = vmax.f32 %v2733_v34, 0.0  ;;  %4602 = vmatpush3.bf16.msra.mxu0 %v4601_v1  ;;  %v4604_v23 = vpack.c.bf16 %v3056_v13, %v3055_v16  ;;  %v4607_v60 = vpack.c.bf16 %v3058_v5, %v3057_v31  ;;  %v3061_v6 = vld [vmem:[#allocation2 + $0x40] sm:$0xff]  ;;  %v3062_v59 = vld [vmem:[#allocation2 + $0x48] sm:$0xff]  ;;  %v3063_v21 = vld [vmem:[#allocation2 + $0x50] sm:$0xff] }
 0x8e7   :  { %v2790_v49 = vmax.f32 %v2735_v24, 0.0  ;;  %v2602_v50 = vadd.f32 %v2601_v9, %v2433_v19  ;;  %v2603_v37 = vpop.f32.mrb[33].mxu0  ;;  %v2738_v55 = vpop.f32.mrb[32].mxu1  ;;  %4603 = vmatprep.subr.bf16.mxu0 %v8568_v43  ;;  %v4610_v54 = vpack.c.bf16 %v3060_v44, %v3059_v14  ;;  %v4613_v34 = vpack.c.bf16 %v3062_v59, %v3061_v6  ;;  %v3064_v24 = vld [vmem:[#allocation2 + $0x58] sm:$0xff] }
 0x8e8   :  { %v2604_v56 = vadd.f32 %v2603_v37, %v2433_v19  ;;  %v2739_v25 = vadd.f32 %v2738_v55, %v2433_v19  ;;  %v2740_v41 = vpop.f32.mrb[33].mxu1  ;;  %2907 = vmatprep.mubr.f32.mxu0 %v2788_v61 }
 0x8e9   :  { %v2741_v28 = vadd.f32 %v2740_v41, %v2433_v19  ;;  %2908 = vmatmul.mubr.f32.gmra.mrb[54].mxu0 %v2787_v32  ;;  %3032 = vmatprep.mubr.f32.mxu1 %v2790_v49  ;;  %v2791_v18 = vmax.f32 %v2602_v50, 0.0  ;;  %v4616_v19 = vpack.c.bf16 %v3064_v24, %v3063_v21 }
 0x8ea   :  { %v2792_v58 = vmax.f32 %v2604_v56, 0.0  ;;  %v2607_v17 = vpop.f32.mrb[34].mxu0  ;;  %3033 = vmatmul.mubr.f32.gmra.mrb[54].mxu1 %v2789_v33  ;;  %v2793_v7 = vmax.f32 %v2739_v25, 0.0  ;;  %4605 = vmatpush3.bf16.msra.mxu0 %v4604_v23 }
 0x8eb   :  { %v2794_v52 = vmax.f32 %v2741_v28, 0.0  ;;  %v2608_v45 = vadd.f32 %v2607_v17, %v2438_v2  ;;  %v2609_v12 = vpop.f32.mrb[35].mxu0  ;;  %v2744_v26 = vpop.f32.mrb[34].mxu1  ;;  %4606 = vmatprep.subr.bf16.mxu0 %v8568_v43 }
 0x8ec   :  { %v2610_v3 = vadd.f32 %v2609_v12, %v2438_v2  ;;  %v2745_v11 = vadd.f32 %v2744_v26, %v2438_v2  ;;  %v2746_v20 = vpop.f32.mrb[35].mxu1  ;;  %2912 = vmatprep.mubr.f32.mxu0 %v2792_v58 }
 0x8ed   :  { %v2747_v47 = vadd.f32 %v2746_v20, %v2438_v2  ;;  %2913 = vmatmul.mubr.f32.gmra.mrb[56].mxu0 %v2791_v18  ;;  %3037 = vmatprep.mubr.f32.mxu1 %v2794_v52  ;;  %v2795_v8 = vmax.f32 %v2608_v45, 0.0 }
 0x8ee   :  { %v2796_v4 = vmax.f32 %v2610_v3, 0.0  ;;  %v2613_v57 = vpop.f32.mrb[36].mxu0  ;;  %3038 = vmatmul.mubr.f32.gmra.mrb[56].mxu1 %v2793_v7  ;;  %v2797_v46 = vmax.f32 %v2745_v11, 0.0  ;;  %4608 = vmatpush3.bf16.msra.mxu0 %v4607_v60 }
 0x8ef   :  { %v2798_v36 = vmax.f32 %v2747_v47, 0.0  ;;  %v2614_v29 = vadd.f32 %v2613_v57, %v2443_v39  ;;  %v2615_v53 = vpop.f32.mrb[37].mxu0  ;;  %v2750_v48 = vpop.f32.mrb[36].mxu1  ;;  %4609 = vmatprep.subr.bf16.mxu0 %v8568_v43 }
 0x8f0   :  { %v2616_v35 = vadd.f32 %v2615_v53, %v2443_v39  ;;  %v2751_v63 = vadd.f32 %v2750_v48, %v2443_v39  ;;  %v2752_v30 = vpop.f32.mrb[37].mxu1  ;;  %2917 = vmatprep.mubr.f32.mxu0 %v2796_v4 }
 0x8f1   :  { %v2753_v62 = vadd.f32 %v2752_v30, %v2443_v39  ;;  %2918 = vmatmul.mubr.f32.gmra.mrb[58].mxu0 %v2795_v8  ;;  %3042 = vmatprep.mubr.f32.mxu1 %v2798_v36  ;;  %v2799_v51 = vmax.f32 %v2614_v29, 0.0 }
 0x8f2   :  { %v2800_v42 = vmax.f32 %v2616_v35, 0.0  ;;  %3043 = vmatmul.mubr.f32.gmra.mrb[58].mxu1 %v2797_v46  ;;  %v2801_v38 = vmax.f32 %v2751_v63, 0.0  ;;  %4611 = vmatpush3.bf16.msra.mxu0 %v4610_v54 }
 0x8f3   :  { %v2802_v22 = vmax.f32 %v2753_v62, 0.0  ;;  %4612 = vmatprep.subr.bf16.mxu0 %v8568_v43 }
 0x8f4   :  { %2922 = vmatprep.mubr.f32.mxu0 %v2800_v42 }
 0x8f5   :  { %2923 = vmatmul.mubr.f32.gmra.mrb[60].mxu0 %v2799_v51  ;;  %3047 = vmatprep.mubr.f32.mxu1 %v2802_v22 }
 0x8f6   :  { %3048 = vmatmul.mubr.f32.gmra.mrb[60].mxu1 %v2801_v38  ;;  %4315 = vmatprep.mubr.msk.f32.mxu0 %vm8569_vm5, %v8462_v10 }
 0x8f7   :  { %4322 = vmatprep.mubr.msk.f32.mxu1 %vm8569_vm5, %v8462_v10  ;;  %4614 = vmatpush3.bf16.msra.mxu0 %v4613_v34 }
 0x8f8   :  { %4615 = vmatprep.subr.bf16.mxu0 %v8568_v43  ;;  %v3284_v43 = vld [vmem:[%s7934_s2] sm:$0x3]  ;;  %s4774_s2 = smov 80  }
 0x8f9   :  { %3286 = vrot.lane.b32.xlu0 %v3284_v43, %s4760_s28 }
 0x8fb   :  { %4617 = vmatpush3.bf16.msra.mxu0 %v4616_v19 }
 0x99a   :  { %v4159_v61 = vpop.f32.mrb[38].mxu0 }
 0x99b   :  { %v4160_v9 = vpop.f32.mrb[39].mxu0  ;;  %v4227_v32 = vpop.f32.mrb[38].mxu1 }
 0x99c   :  { %v4161_v49 = vadd.f32 %v4160_v9, %v4159_v61  ;;  %v4228_v50 = vpop.f32.mrb[39].mxu1 }
 0x99d   :  { %v4229_v37 = vadd.f32 %v4228_v50, %v4227_v32 }
 0x99e   :  { %v4162_v55 = vpop.f32.mrb[40].mxu0 }
 0x99f   :  { %v2995_v33 = vadd.f32 %v4229_v37, %v4161_v49  ;;  %v4163_v56 = vpop.f32.mrb[41].mxu0  ;;  %v4230_v25 = vpop.f32.mrb[40].mxu1 }
 0x9a0   :  { %v4164_v41 = vadd.f32 %v4163_v56, %v4162_v55  ;;  %v4231_v28 = vpop.f32.mrb[41].mxu1 }
 0x9a1   :  { %v4232_v2 = vadd.f32 %v4231_v28, %v4230_v25  ;;  %3070 = vxpose.xlu1.b32.start [1/12] (short) (narrow) %v2995_v33, 8 }
 0x9a2   :  { %v4165_v58 = vpop.f32.mrb[42].mxu0 }
 0x9a3   :  { %v3000_v17 = vadd.f32 %v4232_v2, %v4164_v41  ;;  %v4166_v18 = vpop.f32.mrb[43].mxu0 }
 0x9a4   :  { %v4233_v52 = vpop.f32.mrb[42].mxu1  ;;  %v4167_v45 = vadd.f32 %v4166_v18, %v4165_v58 }
 0x9a5   :  { %v4234_v12 = vpop.f32.mrb[43].mxu1  ;;  %3071 = vxpose.xlu1.b32.cont [2/12] (short) (narrow) %v3000_v17, 8 }
 0x9a6   :  { %v4235_v26 = vadd.f32 %v4234_v12, %v4233_v52 }
 0x9a7   :  { %v4168_v7 = vpop.f32.mrb[44].mxu0 }
 0x9a8   :  { %v3005_v3 = vadd.f32 %v4235_v26, %v4167_v45  ;;  %v4169_v11 = vpop.f32.mrb[45].mxu0 }
 0x9a9   :  { %v4236_v20 = vpop.f32.mrb[44].mxu1  ;;  %v4170_v47 = vadd.f32 %v4169_v11, %v4168_v7 }
 0x9aa   :  { %v4237_v39 = vpop.f32.mrb[45].mxu1  ;;  %3072 = vxpose.xlu1.b32.cont [3/12] (short) (narrow) %v3005_v3, 8 }
 0x9ab   :  { %v4238_v4 = vadd.f32 %v4237_v39, %v4236_v20 }
 0x9ac   :  { %v4171_v57 = vpop.f32.mrb[46].mxu0 }
 0x9ad   :  { %v3010_v8 = vadd.f32 %v4238_v4, %v4170_v47  ;;  %v4172_v36 = vpop.f32.mrb[47].mxu0  ;;  %v4239_v29 = vpop.f32.mrb[46].mxu1  ;;  %v4109_v47 = vld [vmem:[#allocation2 + $0x60] ss:$0 sm:$0xff] }
 0x9ae   :  { %v4173_v53 = vadd.f32 %v4172_v36, %v4171_v57  ;;  %v4240_v48 = vpop.f32.mrb[47].mxu1 }
 0x9af   :  { %v4241_v46 = vadd.f32 %v4240_v48, %v4239_v29  ;;  %3073 = vxpose.xlu1.b32.cont [4/12] (short) (narrow) %v3010_v8, 8  ;;  %v3186_v48 = vld [vmem:[#allocation2 + $0x88] sm:$0xff] }
 0x9b0   :  { %v4174_v35 = vpop.f32.mrb[48].mxu0 }
 0x9b1   :  { %v3015_v63 = vadd.f32 %v4241_v46, %v4173_v53  ;;  %v4175_v30 = vpop.f32.mrb[49].mxu0  ;;  %v4242_v62 = vpop.f32.mrb[48].mxu1  ;;  %v3185_v53 = vld [vmem:[#allocation2 + $0x80] sm:$0xff] }
 0x9b2   :  { %v4176_v42 = vadd.f32 %v4175_v30, %v4174_v35  ;;  %v4243_v51 = vpop.f32.mrb[49].mxu1  ;;  %v4619_v46 = vpack.c.bf16 %v3186_v48, %v3185_v53  ;;  %v3338_v48 = vsub.s32 5, %v8466_v0 }
 0x9b3   :  { %v4244_v22 = vadd.f32 %v4243_v51, %v4242_v62  ;;  %3074 = vxpose.xlu1.b32.cont [5/12] (short) (narrow) %v3015_v63, 8  ;;  %v3287_v63 = vpop.permute.xlu0 %3286  ;;  %v3296_v62 = vld [vmem:[#allocation4 + $0x8] sm:$0xff]  ;;  %v3298_v51 = vld [vmem:[#allocation4 + $0x18] sm:$0xff] }
 0x9b4   :  { %v4177_v38 = vpop.f32.mrb[50].mxu0  ;;  %4620 = vmatpush3.bf16.msra.mxu1 %v4619_v46  ;;  %v3346_v46 = vsub.s32 7, %v8466_v0 }
 0x9b5   :  { %v3020_v27 = vadd.f32 %v4244_v22, %v4176_v42  ;;  %v4178_v40 = vpop.f32.mrb[51].mxu0  ;;  %v4245_v16 = vpop.f32.mrb[50].mxu1  ;;  %v3304_v42 = vld [vmem:[#allocation4 + $0x48] sm:$0xff] }
 0x9b6   :  { %v4179_v1 = vadd.f32 %v4178_v40, %v4177_v38  ;;  %v4246_v13 = vpop.f32.mrb[51].mxu1  ;;  %v4621_v38 = vpack.c.bf16 %v3304_v42, %v3296_v62  ;;  %v3295_v40 = vld [vmem:[#allocation4] sm:$0xff] }
 0x9b7   :  { %v4247_v23 = vadd.f32 %v4246_v13, %v4245_v16  ;;  %3075 = vxpose.xlu1.b32.cont [6/12] (short) (narrow) %v3020_v27, 8  ;;  %v3306_v27 = vld [vmem:[#allocation4 + $0x58] sm:$0xff]  ;;  %v3303_v16 = vld [vmem:[#allocation4 + $0x40] sm:$0xff] }
 0x9b8   :  { %v4180_v31 = vpop.f32.mrb[52].mxu0  ;;  %v4625_v13 = vpack.c.bf16 %v3306_v27, %v3298_v51  ;;  %4622 = vmatprep.subr.bf16.mxu0 %v4621_v38 }
 0x9b9   :  { %v3025_v5 = vadd.f32 %v4247_v23, %v4179_v1  ;;  %v4181_v60 = vpop.f32.mrb[53].mxu0  ;;  %v4248_v14 = vpop.f32.mrb[52].mxu1  ;;  %v4623_v23 = vpack.c.bf16 %v3303_v16, %v3295_v40 }
 0x9ba   :  { %v4182_v44 = vadd.f32 %v4181_v60, %v4180_v31  ;;  %v4249_v54 = vpop.f32.mrb[53].mxu1  ;;  %4626 = vmatprep.subr.bf16.mxu1 %v4625_v13  ;;  %v3308_v60 = vld [vmem:[#allocation4 + $0x68] sm:$0xff] }
 0x9bb   :  { %v4250_v6 = vadd.f32 %v4249_v54, %v4248_v14  ;;  %3076 = vxpose.xlu1.b32.cont [7/12] (short) (narrow) %v3025_v5, 8  ;;  %v3300_v5 = vld [vmem:[#allocation4 + $0x28] sm:$0xff] }
 0x9bc   :  { %v4183_v59 = vpop.f32.mrb[54].mxu0  ;;  %v4629_v14 = vpack.c.bf16 %v3308_v60, %v3300_v5 }
 0x9bd   :  { %v3030_v34 = vadd.f32 %v4250_v6, %v4182_v44  ;;  %v4184_v21 = vpop.f32.mrb[55].mxu0  ;;  %v4251_v24 = vpop.f32.mrb[54].mxu1  ;;  %v3297_v6 = vld [vmem:[#allocation4 + $0x10] sm:$0xff] }
 0x9be   :  { %v4185_v19 = vadd.f32 %v4184_v21, %v4183_v59  ;;  %v4252_v61 = vpop.f32.mrb[55].mxu1  ;;  %v3305_v59 = vld [vmem:[#allocation4 + $0x50] sm:$0xff]  ;;  %v3310_v21 = vld [vmem:[#allocation4 + $0x78] sm:$0xff] }
 0x9bf   :  { %v4253_v9 = vadd.f32 %v4252_v61, %v4251_v24  ;;  %3077 = vxpose.xlu1.b32.cont [8/12] (short) (narrow) %v3030_v34, 8  ;;  %v3302_v34 = vld [vmem:[#allocation4 + $0x38] sm:$0xff]  ;;  %v4627_v24 = vpack.c.bf16 %v3305_v59, %v3297_v6 }
 0x9c0   :  { %v4186_v32 = vpop.f32.mrb[56].mxu0 }
 0x9c1   :  { %v3035_v49 = vadd.f32 %v4253_v9, %v4185_v19  ;;  %v4187_v50 = vpop.f32.mrb[57].mxu0  ;;  %v4254_v37 = vpop.f32.mrb[56].mxu1  ;;  %v4633_v19 = vpack.c.bf16 %v3310_v21, %v3302_v34  ;;  %v3299_v9 = vld [vmem:[#allocation4 + $0x20] sm:$0xff] }
 0x9c2   :  { %v4188_v55 = vadd.f32 %v4187_v50, %v4186_v32  ;;  %v4255_v33 = vpop.f32.mrb[57].mxu1  ;;  %v3307_v32 = vld [vmem:[#allocation4 + $0x60] sm:$0xff]  ;;  %v3309_v50 = vld [vmem:[#allocation4 + $0x70] sm:$0xff] }
 0x9c3   :  { %v4256_v56 = vadd.f32 %v4255_v33, %v4254_v37  ;;  %3078 = vxpose.xlu1.b32.cont [9/12] (short) (narrow) %v3035_v49, 8  ;;  %v3301_v49 = vld [vmem:[#allocation4 + $0x30] sm:$0xff]  ;;  %v4631_v37 = vpack.c.bf16 %v3307_v32, %v3299_v9 }
 0x9c4   :  { %v4189_v25 = vpop.f32.mrb[58].mxu0 }
 0x9c5   :  { %v3040_v41 = vadd.f32 %v4256_v56, %v4188_v55  ;;  %v4190_v28 = vpop.f32.mrb[59].mxu0  ;;  %v4257_v2 = vpop.f32.mrb[58].mxu1  ;;  %v4635_v55 = vpack.c.bf16 %v3309_v50, %v3301_v49  ;;  %v4113_v56 = vld [vmem:[#allocation2 + $0x91] ss:$0 sm:$0xff] }
 0x9c6   :  { %v4191_v58 = vadd.f32 %v4190_v28, %v4189_v25  ;;  %v4258_v43 = vpop.f32.mrb[59].mxu1 }
 0x9c7   :  { %v4259_v17 = vadd.f32 %v4258_v43, %v4257_v2  ;;  %3079 = vxpose.xlu1.b32.cont [10/12] (short) (narrow) %v3040_v41, 8 }
 0x9c8   :  { %v4192_v18 = vpop.f32.mrb[60].mxu0 }
 0x9c9   :  { %v3045_v52 = vadd.f32 %v4259_v17, %v4191_v58  ;;  %v4193_v45 = vpop.f32.mrb[61].mxu0  ;;  %v4260_v12 = vpop.f32.mrb[60].mxu1 }
 0x9ca   :  { %v4194_v26 = vadd.f32 %v4193_v45, %v4192_v18  ;;  %v4261_v7 = vpop.f32.mrb[61].mxu1  ;;  %v4112_v18 = vsel %vm3190_vm1, 1.0, %v8462_v10  ;;  %v8575_v45 = vld [vmem:[#allocation8_spill] sm:$0xff] }
 0x9cb   :  { %v4262_v3 = vadd.f32 %v4261_v7, %v4260_v12  ;;  %3080 = vxpose.xlu1.b32.cont [11/12] (short) (narrow) %v3045_v52, 8 }
 0x9cd   :  { %v3050_v11 = vadd.f32 %v4262_v3, %v4194_v26  ;;  %v3312_v3 = vld [vmem:[#allocation4 + $0x80] ss:$8 sm:$0xf] }
 0x9cf   :  { %3081 = vxpose.xlu1.b32.end [12/12] (short) (narrow) %v3050_v11, 8  ;;  %v3313_v11 = vld [vmem:[#allocation4 + $0x80] ss:$8 sm:$0xf0] }
 0xa23   :  { %v3086_v20 = vpop.trf.xlu1 }
 0xa24   :  { %4316 = vmatmul.mubr.msk.f32.vlgmr.msra.gmra.mrb[62].mxu0 %vm3102_vm8, %v3086_v20  ;;  %v3314_v20 = vor.u32 %v3313_v11, %v3312_v3 }
 0xa25   :  { %3425 = vmatprep.mubr.f32.mxu0 %v8462_v10  ;;  %4624 = vmatpush1.bf16.msra.mxu0 %v4623_v23 }
 0xa26   :  { %4630 = vmatprep.subr.bf16.mxu0 %v4629_v14  ;;  %v3339_v16 = vrot.slane %v3314_v20, %v3338_v48 }
 0xaf7   :  { %v3172_v39 = vpop.f32.mrb[62].mxu0 }
 0xaf8   :  { %v7854_v4 = vadd.f32 %v4109_v47, %v3172_v39  ;;  %v4317_v57 = vpop.f32.mrb[63].mxu0  ;;  %v3318_v47 = vsub.s32 0, %v8466_v0  ;;  %v3322_v39 = vsub.s32 1, %v8466_v0 }
 0xaf9   :  { %v3327_v57 = vrot.slane %v3314_v20, %v3326_v15 }
 0xafa   :  { %v4111_v8 = vmul.f32 -1.442695, %v7854_v4  ;;  %v3281_v36 = vmul.f32 0.5, %v7854_v4 }
 0xafc   :  { %4677 = vpow2.f32 %v4111_v8  ;;  %v3282_v29 = vmul.f32 1.442695, %v3281_v36  ;;  %v3334_v8 = vsub.s32 4, %v8466_v0  ;;  %v3342_v36 = vsub.s32 6, %v8466_v0 }
 0xafe   :  { %4679 = vpow2.f32 %v3282_v29  ;;  %v3323_v29 = vrot.slane %v3314_v20, %v3322_v39  ;;  %v3343_v38 = vrot.slane %v3314_v20, %v3342_v36 }
 0xb06   :  { %v4678_v35 = vpop.eup %4677 }
 0xb07   :  { %v3180_v30 = vadd.f32 1.0, %v4678_v35 }
 0xb08   :  { %v4680_v22 = vpop.eup %4679 }
 0xb09   :  { %4681 = vrcp.f32 %v3180_v30  ;;  %v3289_v1 = vmul.f32 %v4680_v22, %v3287_v63  ;;  %v3335_v22 = vrot.slane %v3314_v20, %v3334_v8 }
 0xb0b   :  { %3291 = vrot.lane.b32.xlu0 %v3289_v1, %s4770_s24  ;;  %v3347_v1 = vrot.slane %v3314_v20, %v3346_v46 }
 0xb13   :  { %v4682_v31 = vpop.eup %4681 }
 0xb14   :  { %3198 = vrot.lane.b32.xlu0 %v4682_v31, %s4770_s24  ;;  %v3183_v17 = vsel %vm3176_vm14, %v4682_v31, %v7854_v4 }
 0xb15   :  { %v3184_v12 = vadd.f32 %v3183_v17, %v8575_v45 }
 0xb7d   :  { %v3292_v44 = vpop.permute.xlu0 %3291 }
 0xb7e   :  { %v3294_v54 = vadd.f32 %v3292_v44, %v7854_v4  ;;  %v3319_v4 = vrot.slane %v3314_v20, %v3318_v47 }
 0xb80   :  { %3357 = vrot.lane.b32.xlu0 %v3294_v54, %s4774_s2 }
 0xb86   :  { %v3199_v61 = vpop.permute.xlu0 %3198 }
 0xb87   :  { %4323 = vmatmul.mubr.msk.f32.vlgmr.msra.gmra.mrb[62].mxu1 %vm8570_vm4, %v3199_v61 }
 0xb88   :  { %4628 = vmatpush1.bf16.msra.mxu1 %v4627_v24  ;;  %3496 = vmatprep.mubr.f32.mxu1 %v8462_v10 }
 0xb89   :  { %4634 = vmatprep.subr.bf16.mxu1 %v4633_v19  ;;  %v8576_v19 = vld [vmem:[#allocation80_spill] sm:$0xff] }
 0xb8a   :  { %v8577_v50 = vrot.slane %v8576_v19, 1  ;;  %v8586_v46 = vrot.slane %v8576_v19, 3 }
 0xbf2   :  { %v3358_v33 = vpop.permute.xlu0 %3357 }
 0xbf3   :  { %4116 = vmatmul.mubr.msk.f32.vlgmr.msra.gmra.mrb[64].mxu0 %vm8571_vm3, %v3358_v33  ;;  %4117 = vmatmul.mubr.msk.f32.vlgmr.msra.gmra.mrb[64].mxu1 %vm8572_vm11, %v3358_v33 }
 0xbf4   :  { %4632 = vmatpush1.bf16.msra.mxu0 %v4631_v37  ;;  %4636 = vmatpush1.bf16.msra.mxu1 %v4635_v55 }
 0xbf5   :  { %3567 = vmatprep.mubr.f32.mxu0 %v8462_v10  ;;  %3638 = vmatprep.mubr.f32.mxu1 %v8462_v10  ;;  %v3330_v10 = vsub.s32 3, %v8466_v0 }
 0xbf7   :  { %4118 = vmatmul.mubr.msk.f32.vlgmr.msra.gmra.mrb[66].mxu0 %vm8573_vm9, %v3358_v33  ;;  %4119 = vmatmul.mubr.msk.f32.vlgmr.msra.gmra.mrb[66].mxu1 %vm8574_vm6, %v3358_v33  ;;  %v3331_v53 = vrot.slane %v3314_v20, %v3330_v10  ;;  %v8582_v20 = vld [vmem:[#allocation46_spill] sm:$0xff] }
 0xbf8   :  { %v8583_v10 = vrot.slane %v8582_v20, 1 }
 0xc5a   :  { %v3268_v25 = vpop.f32.mrb[62].mxu1 }
 0xc5b   :  { %v3269_v41 = vadd.f32 %v4113_v56, %v3268_v25  ;;  %v4324_v28 = vpop.f32.mrb[63].mxu1  ;;  %v8578_v25 = vld [vmem:[#allocation84_spill] sm:$0xff] }
 0xc5c   :  { %v8579_v28 = vld [vmem:[#allocation63_spill] sm:$0xff] }
 0xc5d   :  { %v4115_v2 = vmul.f32 -1.442695, %v3269_v41  ;;  %v8581_v45 = vrot.slane %v8579_v28, 1 }
 0xc5f   :  { %4683 = vpow2.f32 %v4115_v2 }
 0xc69   :  { %v4684_v58 = vpop.eup %4683 }
 0xc6a   :  { %v3275_v43 = vadd.f32 1.0, %v4684_v58 }
 0xc6c   :  { %4685 = vrcp.f32 %v3275_v43 }
 0xc76   :  { %v4686_v52 = vpop.eup %4685 }
 0xc77   :  { %v3278_v26 = vmul.f32 %v4686_v52, %v4112_v18  ;;  %v8580_v18 = vrot.slane %v8578_v25, 1 }
 0xc79   :  { %v3279_v7 = vadd.f32 %v3278_v26, %v3184_v12 }
 0xc7b   :  { %3280 = vst [vmem:[%s7940_s8] sm:$0x3] %v3279_v7 }
 0xcc6   :  { %v3427_v35 = vpop.f32.mrb[64].mxu0  ;;  %v3498_v63 = vpop.f32.mrb[64].mxu1 }
 0xcc7   :  { %v3428_v30 = vadd.f32 %v3427_v35, %v3319_v4  ;;  %v3499_v62 = vadd.f32 %v3498_v63, %v3327_v57  ;;  %v3429_v42 = vpop.f32.mrb[65].mxu0  ;;  %v3500_v51 = vpop.f32.mrb[65].mxu1  ;;  %v8584_v57 = vrot.slane %v8576_v19, 2 }
 0xcc8   :  { %v3430_v27 = vadd.f32 %v3429_v42, %v3323_v29  ;;  %v3501_v40 = vadd.f32 %v3500_v51, %v3331_v53  ;;  %v8585_v29 = vld [vmem:[#allocation82_spill] sm:$0xff]  ;;  %v8587_v42 = vrot.slane %v8578_v25, 2 }
 0xcc9   :  { %4687 = vtanh.f32 %v3428_v30 }
 0xcca   :  { %4689 = vtanh.f32 %v3499_v62  ;;  %v3569_v13 = vpop.f32.mrb[66].mxu0  ;;  %v3640_v23 = vpop.f32.mrb[66].mxu1 }
 0xccb   :  { %4691 = vtanh.f32 %v3430_v27  ;;  %v3570_v31 = vadd.f32 %v3569_v13, %v3335_v22  ;;  %v3641_v5 = vadd.f32 %v3640_v23, %v3343_v38  ;;  %v3571_v0 = vpop.f32.mrb[67].mxu0  ;;  %v3642_v60 = vpop.f32.mrb[67].mxu1  ;;  %v8588_v27 = vrot.slane %v8578_v25, 3 }
 0xccc   :  { %4693 = vtanh.f32 %v3501_v40  ;;  %v3572_v14 = vadd.f32 %v3571_v0, %v3339_v16  ;;  %v3643_v44 = vadd.f32 %v3642_v60, %v3347_v1  ;;  %v8589_v16 = vrot.slane %v8579_v28, 2 }
 0xccd   :  { %4695 = vtanh.f32 %v3570_v31 }
 0xcce   :  { %4697 = vtanh.f32 %v3641_v5  ;;  %v8590_v5 = vrot.slane %v8579_v28, 3 }
 0xccf   :  { %4699 = vtanh.f32 %v3572_v14 }
 0xcd0   :  { %4701 = vtanh.f32 %v3643_v44  ;;  %v8591_v44 = vrot.slane %v8582_v20, 2 }
 0xcd3   :  { %v4688_v54 = vpop.eup %4687 }
 0xcd4   :  { %v4690_v6 = vpop.eup %4689  ;;  %v3718_v59 = vmul.f32 0.1, %v4688_v54 }
 0xcd5   :  { %v4692_v34 = vpop.eup %4691  ;;  %v3720_v21 = vmul.f32 0.1, %v4690_v6 }
 0xcd6   :  { %v4694_v24 = vpop.eup %4693  ;;  %v3726_v61 = vadd.f32 %v3718_v59, %v8576_v19  ;;  %v3867_v9 = vrot.slane %v3718_v59, 1  ;;  %v3719_v32 = vmul.f32 0.1, %v4692_v34  ;;  %v8592_v34 = vrot.slane %v8582_v20, 3 }
 0xcd7   :  { %v4696_v49 = vpop.eup %4695  ;;  %v3728_v37 = vadd.f32 %v3720_v21, %v8577_v50  ;;  %v3869_v55 = vrot.slane %v3720_v21, 1  ;;  %v3721_v33 = vmul.f32 0.1, %v4694_v24 }
 0xcd8   :  { %v4698_v56 = vpop.eup %4697  ;;  %v3883_v41 = vadd.f32 %v3867_v9, %v8578_v25  ;;  %v3727_v2 = vadd.f32 %v3719_v32, %v8579_v28  ;;  %v3868_v58 = vrot.slane %v3719_v32, 1  ;;  %v3722_v43 = vmul.f32 0.1, %v4696_v49 }
 0xcd9   :  { %v4700_v17 = vpop.eup %4699  ;;  %v3885_v52 = vadd.f32 %v3869_v55, %v8580_v18  ;;  %v3729_v12 = vadd.f32 %v3721_v33, %v8581_v45  ;;  %v3870_v26 = vrot.slane %v3721_v33, 1  ;;  %v3724_v7 = vmul.f32 0.1, %v4698_v56 }
 0xcda   :  { %v4702_v3 = vpop.eup %4701  ;;  %v3742_v11 = vcombine.low %v3726_v61, %v3727_v2  ;;  %v3884_v47 = vadd.f32 %v3868_v58, %v8582_v20  ;;  %v3871_v15 = vrot.slane %v3722_v43, 1  ;;  %v3730_v8 = vadd.f32 %v3722_v43, %v8584_v57 }
 0xcdb   :  { %v3743_v39 = vcombine.low %v3728_v37, %v3729_v12  ;;  %v3886_v4 = vadd.f32 %v3870_v26, %v8583_v10  ;;  %v3873_v36 = vrot.slane %v3724_v7, 1  ;;  %v3732_v35 = vadd.f32 %v3724_v7, %v8586_v46 }
 0xcdc   :  { %v3752_v53 = vrot.slane %v3742_v11, %v8585_v29  ;;  %v3899_v48 = vcombine.low %v3883_v41, %v3884_v47  ;;  %v3723_v63 = vmul.f32 0.1, %v4700_v17  ;;  %v3887_v51 = vadd.f32 %v3871_v15, %v8587_v42 }
 0xcdd   :  { %v3759_v30 = vrot.slane %v3743_v39, %v8585_v29  ;;  %v3900_v62 = vcombine.low %v3885_v52, %v3886_v4  ;;  %v3725_v22 = vmul.f32 0.1, %v4702_v3  ;;  %v3889_v40 = vadd.f32 %v3873_v36, %v8588_v27 }
 0xcde   :  { %v3909_v38 = vrot.slane %v3899_v48, %v8585_v29  ;;  %v3731_v1 = vadd.f32 %v3723_v63, %v8589_v16  ;;  %v3872_v13 = vrot.slane %v3723_v63, 1 }
 0xcdf   :  { %v3774_v23 = vcombine.low %v3752_v53, %v3759_v30  ;;  %v3916_v31 = vrot.slane %v3900_v62, %v8585_v29  ;;  %v3733_v0 = vadd.f32 %v3725_v22, %v8590_v5  ;;  %v3874_v60 = vrot.slane %v3725_v22, 1 }
 0xce0   :  { %v3744_v14 = vcombine.low %v3730_v8, %v3731_v1  ;;  %v3888_v54 = vadd.f32 %v3872_v13, %v8591_v44 }
 0xce1   :  { %v3931_v6 = vcombine.low %v3909_v38, %v3916_v31  ;;  %v3745_v59 = vcombine.low %v3732_v35, %v3733_v0  ;;  %v3890_v21 = vadd.f32 %v3874_v60, %v8592_v34  ;;  %v3782_v37 = vrot.slane %v3774_v23, %v8585_v29 }
 0xce2   :  { %v3766_v24 = vrot.slane %v3744_v14, %v8585_v29  ;;  %v3901_v19 = vcombine.low %v3887_v51, %v3888_v54 }
 0xce3   :  { %v3773_v61 = vrot.slane %v3745_v59, %v8585_v29  ;;  %v3902_v9 = vcombine.low %v3889_v40, %v3890_v21  ;;  %v3939_v56 = vrot.slane %v3931_v6, %v8585_v29 }
 0xce4   :  { %v3923_v32 = vrot.slane %v3901_v19, %v8585_v29 }
 0xce5   :  { %v3775_v49 = vcombine.low %v3766_v24, %v3773_v61  ;;  %v3930_v50 = vrot.slane %v3902_v9, %v8585_v29 }
 0xce7   :  { %v3789_v55 = vrot.slane %v3775_v49, %v8585_v29  ;;  %v3932_v33 = vcombine.low %v3923_v32, %v3930_v50 }
 0xce9   :  { %v3790_v25 = vcombine.low %v3782_v37, %v3789_v55  ;;  %v3946_v41 = vrot.slane %v3932_v33, %v8585_v29 }
 0xceb   :  { %3792 = vst [vmem:[%s7939_s7] ss:$2 sm:$0xff] %v3790_v25  ;;  %v3947_v28 = vcombine.low %v3939_v56, %v3946_v41 }
 0xced   :  { %4121 = vst [vmem:[%s7939_s7 + $0x1] ss:$2 sm:$0xff] %v3947_v28 }
 0xcee   :  { %3963 = vsyncpa [#allocation3], 1 }
 0xcef   :  { %3964 = vsyncpa [#allocation5], 1 }

</bundles_post_ra>
